<compile_context>
chip_gen: v6e
topology: v6e:2x2x1
jax: 0.10.0
libtpu: 0.0.40
codegen_flags: <defaults>
</compile_context>

<pallas_src>
import math
import functools

import jax
import jax.numpy as jnp
from jax.experimental import pallas as pl
from jax.experimental.pallas import tpu as pltpu

LN_EPS = 1e-5          # PyTorch nn.LayerNorm default
NEG_BIAS = -1e30       # additive mask value (finite -> no NaN from -inf - max)

WEIGHT_KEYS = (
    "self_wqkv", "self_wp", "self_lnw", "self_lnb",
    "cross_wq", "cross_wkv", "cross_wp", "cross_lnw", "cross_lnb",
    "ffn_w1", "ffn_b1", "ffn_w2", "ffn_b2", "ffn_lnw", "ffn_lnb",
)


def _layernorm(y, w, b):
    y = y.astype(jnp.float32)
    mean = jnp.mean(y, axis=-1, keepdims=True)
    var = jnp.mean(jnp.square(y - mean), axis=-1, keepdims=True)
    return (y - mean) * jax.lax.rsqrt(var + LN_EPS) * w + b


# ---------------------------------------------------------------------------
# Fused whole-decoder kernel (one grid step = one batch row, all layers)
# ---------------------------------------------------------------------------
def make_decoder_kernel(num_layers, heads, emb_dim, seq_len, ctx_len,
                        compute_dtype=jnp.float32):
    E = emb_dim
    d = E // heads
    scale = 1.0 / math.sqrt(d)

    def cast(t):
        # For production on v5e/v6e/v7x set compute_dtype=jnp.bfloat16 to feed
        # bf16 into the MXU (accumulation stays f32 via preferred_element_type).
        return t.astype(compute_dtype)

    def split_heads(t):
        # (L, E) -> (heads, L, d): cheap lane slices stacked on a new leading
        # (batch) axis so the attention matmuls run as ONE batched dot each.
        return jnp.stack([t[:, h * d:(h + 1) * d] for h in range(heads)], axis=0)

    def attention(q, k, v, bias):
        # q: (Lq, E), k/v: (Lk, E); bias: (Lq, Lk) additive mask or None.
        qh, kh, vh = split_heads(q), split_heads(k), split_heads(v)
        s = jnp.einsum("hqd,hkd->hqk", cast(qh), cast(kh),
                       preferred_element_type=jnp.float32) * scale
        if bias is not None:
            s = s + bias[None, :, :]
        # one softmax over the whole (heads, Lq, Lk) slab
        s = s - jnp.max(s, axis=-1, keepdims=True)
        p = jnp.exp(s)
        p = p * pl.reciprocal(jnp.sum(p, axis=-1, keepdims=True), approx=True)
        o = jnp.einsum("hqk,hkd->hqd", cast(p), cast(vh),
                       preferred_element_type=jnp.float32)        # (heads, Lq, d)
        # head-major lane concat back to (Lq, E) (matches PyTorch rearrange)
        return jnp.concatenate([o[h] for h in range(heads)], axis=-1)

    def kernel(x_ref, ctx_ref,
               s_wqkv, s_wp, s_lnw, s_lnb,
               c_wq, c_wkv, c_wp, c_lnw, c_lnb,
               f_w1, f_b1, f_w2, f_b2, f_lnw, f_lnb,
               o_ref):
        x = x_ref[...].astype(jnp.float32)        # (Lq, E)
        ctx = ctx_ref[...].astype(jnp.float32)    # (Lc, E)

        # Causal mask built in-kernel: strictly-upper-triangular entries masked.
        row = jax.lax.broadcasted_iota(jnp.int32, (seq_len, seq_len), 0)
        col = jax.lax.broadcasted_iota(jnp.int32, (seq_len, seq_len), 1)
        causal_bias = jnp.where(col > row, NEG_BIAS, 0.0).astype(jnp.float32)

        for l in range(num_layers):               # static unroll over layers
            # ---- masked self-attention sublayer: LN(x + MHA(x, x, x, mask)) ----
            qkv = jnp.dot(cast(x), cast(s_wqkv[l]),
                          preferred_element_type=jnp.float32)      # (Lq, 3E)
            a = attention(qkv[:, :E], qkv[:, E:2 * E], qkv[:, 2 * E:], causal_bias)
            y = jnp.dot(cast(a), cast(s_wp[l]), preferred_element_type=jnp.float32)
            x = _layernorm(x + y, s_lnw[l], s_lnb[l])

            # ---- cross-attention sublayer: LN(x + MHA(x, ctx, ctx)) ----
            q = jnp.dot(cast(x), cast(c_wq[l]), preferred_element_type=jnp.float32)
            kv = jnp.dot(cast(ctx), cast(c_wkv[l]),
                         preferred_element_type=jnp.float32)       # (Lc, 2E)
            a = attention(q, kv[:, :E], kv[:, E:], None)
            y = jnp.dot(cast(a), cast(c_wp[l]), preferred_element_type=jnp.float32)
            x = _layernorm(x + y, c_lnw[l], c_lnb[l])

            # ---- FFN sublayer: LN(x + W2 relu(W1 x + b1) + b2) ----
            h = jnp.dot(cast(x), cast(f_w1[l]),
                        preferred_element_type=jnp.float32) + f_b1[l]
            h = jnp.maximum(h, 0.0)
            y = jnp.dot(cast(h), cast(f_w2[l]),
                        preferred_element_type=jnp.float32) + f_b2[l]
            x = _layernorm(x + y, f_lnw[l], f_lnb[l])

        o_ref[...] = x.astype(o_ref.dtype)
        # TODO(synk): nn.Dropout(0.0) is an identity at these settings; omitted.
        # TODO(synk): for production E/L, tile K / kv dims ("arbitrary" grid axis
        # + f32 accumulator scratch, flash-style online softmax) and pad the last
        # dim to a multiple of 128 for lane-dense stores; unnecessary at E=32.

    return kernel


def decoder_forward(x, context, params, heads, compute_dtype=jnp.float32):
    bs, Lq, E = x.shape
    Lc = context.shape[1]
    num_layers = params["self_wqkv"].shape[0]
    kernel = make_decoder_kernel(num_layers, heads, E, Lq, Lc, compute_dtype)

    weights = [params[k] for k in WEIGHT_KEYS]

    def act_spec(L_):
        # leading batch dim squeezed out of the kernel ref
        return pl.BlockSpec((None, L_, E), lambda b: (b, 0, 0))

    def weight_spec(shape):
        nd = len(shape)
        # same block every grid step -> weights stay VMEM-resident (DMA'd once)
        return pl.BlockSpec(shape, lambda b, _nd=nd: (0,) * _nd)

    return pl.pallas_call(
        kernel,
        out_shape=jax.ShapeDtypeStruct((bs, Lq, E), x.dtype),
        grid=(bs,),
        in_specs=[act_spec(Lq), act_spec(Lc)]
                 + [weight_spec(w.shape) for w in weights],
        out_specs=pl.BlockSpec((None, Lq, E), lambda b: (b, 0, 0)),
        compiler_params=pltpu.CompilerParams(
            dimension_semantics=("parallel",),   # batch axis -> both v7x TCs
        ),
    )(x, context, *weights)


# ---------------------------------------------------------------------------
# Deterministic parameter init (merged QKV / KV weights, stacked over layers)
# ---------------------------------------------------------------------------
def init_params(key, emb_dim, num_layers):
    E, Hf = emb_dim, 4 * emb_dim

    def lin(k, shape, s=0.05):
        return jax.random.normal(k, shape, jnp.float32) * s

    ks = jax.random.split(key, 9)
    return {
        "self_wqkv": lin(ks[0], (num_layers, E, 3 * E)),
        "self_wp":   lin(ks[1], (num_layers, E, E)),
        "self_lnw":  jnp.ones((num_layers, 1, E), jnp.float32),
        "self_lnb":  jnp.zeros((num_layers, 1, E), jnp.float32),
        "cross_wq":  lin(ks[2], (num_layers, E, E)),
        "cross_wkv": lin(ks[3], (num_layers, E, 2 * E)),
        "cross_wp":  lin(ks[4], (num_layers, E, E)),
        "cross_lnw": jnp.ones((num_layers, 1, E), jnp.float32),
        "cross_lnb": jnp.zeros((num_layers, 1, E), jnp.float32),
        "ffn_w1":    lin(ks[5], (num_layers, E, Hf)),
        "ffn_b1":    lin(ks[6], (num_layers, 1, Hf), 0.01),
        "ffn_w2":    lin(ks[7], (num_layers, Hf, E)),
        "ffn_b2":    lin(ks[8], (num_layers, 1, E), 0.01),
        "ffn_lnw":   jnp.ones((num_layers, 1, E), jnp.float32),
        "ffn_lnb":   jnp.zeros((num_layers, 1, E), jnp.float32),
    }


# ---------------------------------------------------------------------------
# Pure-JAX reference (mirrors the PyTorch forward exactly)
# ---------------------------------------------------------------------------
def _ref_mha(q_in, kv_in, wq, wk, wv, wp, heads, mask=None):
    bs, Lq, E = q_in.shape
    d = E // heads
    Q, K, V = q_in @ wq, kv_in @ wk, kv_in @ wv
    split = lambda t: t.reshape(t.shape[0], t.shape[1], heads, d).transpose(0, 2, 1, 3)
    Qh, Kh, Vh = split(Q), split(K), split(V)
    s = jnp.einsum("bhqd,bhkd->bhqk", Qh, Kh) / math.sqrt(d)
    if mask is not None:
        s = jnp.where(mask[None, None], -jnp.inf, s)
    a = jax.nn.softmax(s, axis=-1)
    o = jnp.einsum("bhqk,bhkd->bhqd", a, Vh).transpose(0, 2, 1, 3).reshape(bs, Lq, E)
    return o @ wp


def decoder_reference(x, context, params, heads):
    L, E = x.shape[1], x.shape[2]
    mask = jnp.tril(jnp.ones((L, L))) == 0          # True above diagonal (masked)
    num_layers = params["self_wqkv"].shape[0]
    for l in range(num_layers):
        wqkv = params["self_wqkv"][l]
        y = _ref_mha(x, x, wqkv[:, :E], wqkv[:, E:2 * E], wqkv[:, 2 * E:],
                     params["self_wp"][l], heads, mask)
        x = _layernorm(x + y, params["self_lnw"][l], params["self_lnb"][l])

        wkv = params["cross_wkv"][l]
        y = _ref_mha(x, context, params["cross_wq"][l], wkv[:, :E], wkv[:, E:],
                     params["cross_wp"][l], heads, None)
        x = _layernorm(x + y, params["cross_lnw"][l], params["cross_lnb"][l])

        h = jnp.maximum(x @ params["ffn_w1"][l] + params["ffn_b1"][l], 0.0)
        y = h @ params["ffn_w2"][l] + params["ffn_b2"][l]
        x = _layernorm(x + y, params["ffn_lnw"][l], params["ffn_lnb"][l])
    return x


if __name__ == "__main__":
    bs, seq_len, ctx_len, emb_dim, heads, num_layers = 2, 8, 16, 32, 4, 2

    key = jax.random.PRNGKey(0)
    kx, kc, kp = jax.random.split(key, 3)
    x = jax.random.normal(kx, (bs, seq_len, emb_dim), jnp.float32)
    context = jax.random.normal(kc, (bs, ctx_len, emb_dim), jnp.float32)
    params = init_params(kp, emb_dim, num_layers)

    fwd = jax.jit(functools.partial(decoder_forward, heads=heads))
    out = jax.block_until_ready(fwd(x, context, params))

    ref = decoder_reference(x, context, params, heads)
    assert out.shape == (bs, seq_len, emb_dim)
    max_err = float(jnp.max(jnp.abs(out - ref)))
    assert jnp.allclose(out, ref, atol=1e-2, rtol=1e-2), \
        f"mismatch vs reference (max abs err {max_err})"

    print("KERNEL_OK")
</pallas_src>

<mosaic_0001>
module attributes {stable_mosaic.version = 11 : i64} {
  func.func @kernel(%arg0: i32, %arg1: memref<1x8x32xf32, #tpu.memory_space<vmem>>, %arg2: memref<1x16x32xf32, #tpu.memory_space<vmem>>, %arg3: memref<2x32x96xf32, #tpu.memory_space<vmem>>, %arg4: memref<2x32x32xf32, #tpu.memory_space<vmem>>, %arg5: memref<2x1x32xf32, #tpu.memory_space<vmem>>, %arg6: memref<2x1x32xf32, #tpu.memory_space<vmem>>, %arg7: memref<2x32x32xf32, #tpu.memory_space<vmem>>, %arg8: memref<2x32x64xf32, #tpu.memory_space<vmem>>, %arg9: memref<2x32x32xf32, #tpu.memory_space<vmem>>, %arg10: memref<2x1x32xf32, #tpu.memory_space<vmem>>, %arg11: memref<2x1x32xf32, #tpu.memory_space<vmem>>, %arg12: memref<2x32x128xf32, #tpu.memory_space<vmem>>, %arg13: memref<2x1x128xf32, #tpu.memory_space<vmem>>, %arg14: memref<2x128x32xf32, #tpu.memory_space<vmem>>, %arg15: memref<2x1x32xf32, #tpu.memory_space<vmem>>, %arg16: memref<2x1x32xf32, #tpu.memory_space<vmem>>, %arg17: memref<2x1x32xf32, #tpu.memory_space<vmem>>, %arg18: memref<1x8x32xf32, #tpu.memory_space<vmem>>) attributes {dimension_semantics = [#tpu.dimension_semantics<parallel>], iteration_bounds = array<i64: 2>, scalar_prefetch = 0 : i64, scratch_operands = 0 : i64, tpu.core_type = #tpu.core_type<tc>, window_params = [{transform_indices = @transform_0, window_bounds = array<i64: 1, 8, 32>}, {transform_indices = @transform_1, window_bounds = array<i64: 1, 16, 32>}, {pipeline_mode = #tpu.pipeline_mode<synchronous>, transform_indices = @transform_2, window_bounds = array<i64: 2, 32, 96>}, {pipeline_mode = #tpu.pipeline_mode<synchronous>, transform_indices = @transform_3, window_bounds = array<i64: 2, 32, 32>}, {pipeline_mode = #tpu.pipeline_mode<synchronous>, transform_indices = @transform_4, window_bounds = array<i64: 2, 1, 32>}, {pipeline_mode = #tpu.pipeline_mode<synchronous>, transform_indices = @transform_5, window_bounds = array<i64: 2, 1, 32>}, {pipeline_mode = #tpu.pipeline_mode<synchronous>, transform_indices = @transform_6, window_bounds = array<i64: 2, 32, 32>}, {pipeline_mode = #tpu.pipeline_mode<synchronous>, transform_indices = @transform_7, window_bounds = array<i64: 2, 32, 64>}, {pipeline_mode = #tpu.pipeline_mode<synchronous>, transform_indices = @transform_8, window_bounds = array<i64: 2, 32, 32>}, {pipeline_mode = #tpu.pipeline_mode<synchronous>, transform_indices = @transform_9, window_bounds = array<i64: 2, 1, 32>}, {pipeline_mode = #tpu.pipeline_mode<synchronous>, transform_indices = @transform_10, window_bounds = array<i64: 2, 1, 32>}, {pipeline_mode = #tpu.pipeline_mode<synchronous>, transform_indices = @transform_11, window_bounds = array<i64: 2, 32, 128>}, {pipeline_mode = #tpu.pipeline_mode<synchronous>, transform_indices = @transform_12, window_bounds = array<i64: 2, 1, 128>}, {pipeline_mode = #tpu.pipeline_mode<synchronous>, transform_indices = @transform_13, window_bounds = array<i64: 2, 128, 32>}, {pipeline_mode = #tpu.pipeline_mode<synchronous>, transform_indices = @transform_14, window_bounds = array<i64: 2, 1, 32>}, {pipeline_mode = #tpu.pipeline_mode<synchronous>, transform_indices = @transform_15, window_bounds = array<i64: 2, 1, 32>}, {pipeline_mode = #tpu.pipeline_mode<synchronous>, transform_indices = @transform_16, window_bounds = array<i64: 2, 1, 32>}, {transform_indices = @transform_17, window_bounds = array<i64: 1, 8, 32>}]} {
    %c0 = arith.constant 0 : index
    %c0_0 = arith.constant 0 : index
    %c0_1 = arith.constant 0 : index
    %0 = vector.load %arg1[%c0, %c0_0, %c0_1] : memref<1x8x32xf32, #tpu.memory_space<vmem>>, vector<1x8x32xf32>
    %1 = vector.shape_cast %0 : vector<1x8x32xf32> to vector<8x32xf32>
    %c0_2 = arith.constant 0 : index
    %c0_3 = arith.constant 0 : index
    %c0_4 = arith.constant 0 : index
    %2 = vector.load %arg2[%c0_2, %c0_3, %c0_4] : memref<1x16x32xf32, #tpu.memory_space<vmem>>, vector<1x16x32xf32>
    %3 = vector.shape_cast %2 : vector<1x16x32xf32> to vector<16x32xf32>
    %4 = tpu.iota {dimensions = array<i32: 0>} : vector<8x8xi32>
    %5 = tpu.iota {dimensions = array<i32: 1>} : vector<8x8xi32>
    %6 = arith.cmpi sgt, %5, %4 : vector<8x8xi32>
    %cst = arith.constant -1.000000e+30 : f32
    %cst_5 = arith.constant 0.000000e+00 : f32
    %7 = vector.broadcast %cst : f32 to vector<8x8xf32>
    %8 = vector.broadcast %cst_5 : f32 to vector<8x8xf32>
    %9 = arith.select %6, %7, %8 : vector<8x8xi1>, vector<8x8xf32>
    %c0_6 = arith.constant 0 : index
    %c0_7 = arith.constant 0 : index
    %c0_8 = arith.constant 0 : index
    %10 = vector.load %arg3[%c0_6, %c0_7, %c0_8] : memref<2x32x96xf32, #tpu.memory_space<vmem>>, vector<1x32x96xf32>
    %11 = vector.shape_cast %10 : vector<1x32x96xf32> to vector<32x96xf32>
    %cst_9 = arith.constant dense<0.000000e+00> : vector<8x96xf32>
    %12 = tpu.matmul %1, %11, %cst_9 {dimension_numbers = #tpu.dot_dimension_numbers<[1], [0], [0], [1], [0, 0, 1, 1], [], []>} : vector<8x32xf32>, vector<32x96xf32>, vector<8x96xf32> -> vector<8x96xf32>
    %13 = vector.extract_strided_slice %12 {offsets = [0, 0], sizes = [8, 32], strides = [1, 1]} : vector<8x96xf32> to vector<8x32xf32>
    %14 = vector.extract_strided_slice %12 {offsets = [0, 32], sizes = [8, 32], strides = [1, 1]} : vector<8x96xf32> to vector<8x32xf32>
    %15 = vector.extract_strided_slice %12 {offsets = [0, 64], sizes = [8, 32], strides = [1, 1]} : vector<8x96xf32> to vector<8x32xf32>
    %16 = vector.extract_strided_slice %13 {offsets = [0, 0], sizes = [8, 8], strides = [1, 1]} : vector<8x32xf32> to vector<8x8xf32>
    %17 = vector.extract_strided_slice %13 {offsets = [0, 8], sizes = [8, 8], strides = [1, 1]} : vector<8x32xf32> to vector<8x8xf32>
    %18 = vector.extract_strided_slice %13 {offsets = [0, 16], sizes = [8, 8], strides = [1, 1]} : vector<8x32xf32> to vector<8x8xf32>
    %19 = vector.extract_strided_slice %13 {offsets = [0, 24], sizes = [8, 8], strides = [1, 1]} : vector<8x32xf32> to vector<8x8xf32>
    %20 = vector.shape_cast %16 : vector<8x8xf32> to vector<1x8x8xf32>
    %21 = vector.shape_cast %17 : vector<8x8xf32> to vector<1x8x8xf32>
    %22 = vector.shape_cast %18 : vector<8x8xf32> to vector<1x8x8xf32>
    %23 = vector.shape_cast %19 : vector<8x8xf32> to vector<1x8x8xf32>
    %24 = tpu.concatenate %20, %21, %22, %23 in 0 : vector<1x8x8xf32>, vector<1x8x8xf32>, vector<1x8x8xf32>, vector<1x8x8xf32> -> vector<4x8x8xf32>
    %25 = vector.extract_strided_slice %14 {offsets = [0, 0], sizes = [8, 8], strides = [1, 1]} : vector<8x32xf32> to vector<8x8xf32>
    %26 = vector.extract_strided_slice %14 {offsets = [0, 8], sizes = [8, 8], strides = [1, 1]} : vector<8x32xf32> to vector<8x8xf32>
    %27 = vector.extract_strided_slice %14 {offsets = [0, 16], sizes = [8, 8], strides = [1, 1]} : vector<8x32xf32> to vector<8x8xf32>
    %28 = vector.extract_strided_slice %14 {offsets = [0, 24], sizes = [8, 8], strides = [1, 1]} : vector<8x32xf32> to vector<8x8xf32>
    %29 = vector.shape_cast %25 : vector<8x8xf32> to vector<1x8x8xf32>
    %30 = vector.shape_cast %26 : vector<8x8xf32> to vector<1x8x8xf32>
    %31 = vector.shape_cast %27 : vector<8x8xf32> to vector<1x8x8xf32>
    %32 = vector.shape_cast %28 : vector<8x8xf32> to vector<1x8x8xf32>
    %33 = tpu.concatenate %29, %30, %31, %32 in 0 : vector<1x8x8xf32>, vector<1x8x8xf32>, vector<1x8x8xf32>, vector<1x8x8xf32> -> vector<4x8x8xf32>
    %34 = vector.extract_strided_slice %15 {offsets = [0, 0], sizes = [8, 8], strides = [1, 1]} : vector<8x32xf32> to vector<8x8xf32>
    %35 = vector.extract_strided_slice %15 {offsets = [0, 8], sizes = [8, 8], strides = [1, 1]} : vector<8x32xf32> to vector<8x8xf32>
    %36 = vector.extract_strided_slice %15 {offsets = [0, 16], sizes = [8, 8], strides = [1, 1]} : vector<8x32xf32> to vector<8x8xf32>
    %37 = vector.extract_strided_slice %15 {offsets = [0, 24], sizes = [8, 8], strides = [1, 1]} : vector<8x32xf32> to vector<8x8xf32>
    %38 = vector.shape_cast %34 : vector<8x8xf32> to vector<1x8x8xf32>
    %39 = vector.shape_cast %35 : vector<8x8xf32> to vector<1x8x8xf32>
    %40 = vector.shape_cast %36 : vector<8x8xf32> to vector<1x8x8xf32>
    %41 = vector.shape_cast %37 : vector<8x8xf32> to vector<1x8x8xf32>
    %42 = tpu.concatenate %38, %39, %40, %41 in 0 : vector<1x8x8xf32>, vector<1x8x8xf32>, vector<1x8x8xf32>, vector<1x8x8xf32> -> vector<4x8x8xf32>
    "tpu.trace_start"() <{level = 10 : i32, message = "hqd,hkd->hqk"}> : () -> ()
    %cst_10 = arith.constant dense<0.000000e+00> : vector<4x8x8xf32>
    %43 = tpu.matmul %24, %33, %cst_10 {dimension_numbers = #tpu.dot_dimension_numbers<[2], [2], [1], [1], [0, 0, 0, 1, 1, 1], [0], [0]>} : vector<4x8x8xf32>, vector<4x8x8xf32>, vector<4x8x8xf32> -> vector<4x8x8xf32>
    "tpu.trace_stop"() : () -> ()
    %cst_11 = arith.constant 0.353553385 : f32
    %44 = vector.broadcast %cst_11 : f32 to vector<4x8x8xf32>
    %45 = arith.mulf %43, %44 : vector<4x8x8xf32>
    %46 = vector.shape_cast %9 : vector<8x8xf32> to vector<1x8x8xf32>
    %47 = vector.broadcast %46 : vector<1x8x8xf32> to vector<4x8x8xf32>
    %48 = arith.addf %45, %47 : vector<4x8x8xf32>
    %cst_12 = arith.constant dense<0xFF800000> : vector<4x8xf32>
    %49 = vector.multi_reduction <maximumf>, %48, %cst_12 [2] : vector<4x8x8xf32> to vector<4x8xf32>
    %50 = vector.shape_cast %49 : vector<4x8xf32> to vector<4x8x1xf32>
    %51 = vector.broadcast %50 : vector<4x8x1xf32> to vector<4x8x8xf32>
    %52 = arith.subf %48, %51 : vector<4x8x8xf32>
    %53 = math.exp %52 : vector<4x8x8xf32>
    %cst_13 = arith.constant dense<0.000000e+00> : vector<4x8xf32>
    %54 = vector.multi_reduction <add>, %53, %cst_13 [2] : vector<4x8x8xf32> to vector<4x8xf32>
    %55 = vector.shape_cast %54 : vector<4x8xf32> to vector<4x8x1xf32>
    %56 = tpu.reciprocal %55 {approx = true} : vector<4x8x1xf32> -> vector<4x8x1xf32>
    %57 = vector.broadcast %56 : vector<4x8x1xf32> to vector<4x8x8xf32>
    %58 = arith.mulf %53, %57 : vector<4x8x8xf32>
    "tpu.trace_start"() <{level = 10 : i32, message = "hqk,hkd->hqd"}> : () -> ()
    %cst_14 = arith.constant dense<0.000000e+00> : vector<4x8x8xf32>
    %59 = tpu.matmul %58, %42, %cst_14 {dimension_numbers = #tpu.dot_dimension_numbers<[2], [1], [1], [2], [0, 0, 0, 1, 1, 2], [0], [0]>} : vector<4x8x8xf32>, vector<4x8x8xf32>, vector<4x8x8xf32> -> vector<4x8x8xf32>
    "tpu.trace_stop"() : () -> ()
    %60 = vector.extract_strided_slice %59 {offsets = [0, 0, 0], sizes = [1, 8, 8], strides = [1, 1, 1]} : vector<4x8x8xf32> to vector<1x8x8xf32>
    %61 = vector.shape_cast %60 : vector<1x8x8xf32> to vector<8x8xf32>
    %62 = vector.extract_strided_slice %59 {offsets = [1, 0, 0], sizes = [1, 8, 8], strides = [1, 1, 1]} : vector<4x8x8xf32> to vector<1x8x8xf32>
    %63 = vector.shape_cast %62 : vector<1x8x8xf32> to vector<8x8xf32>
    %64 = vector.extract_strided_slice %59 {offsets = [2, 0, 0], sizes = [1, 8, 8], strides = [1, 1, 1]} : vector<4x8x8xf32> to vector<1x8x8xf32>
    %65 = vector.shape_cast %64 : vector<1x8x8xf32> to vector<8x8xf32>
    %66 = vector.extract_strided_slice %59 {offsets = [3, 0, 0], sizes = [1, 8, 8], strides = [1, 1, 1]} : vector<4x8x8xf32> to vector<1x8x8xf32>
    %67 = vector.shape_cast %66 : vector<1x8x8xf32> to vector<8x8xf32>
    %68 = tpu.concatenate %61, %63, %65, %67 in 1 : vector<8x8xf32>, vector<8x8xf32>, vector<8x8xf32>, vector<8x8xf32> -> vector<8x32xf32>
    %c0_15 = arith.constant 0 : index
    %c0_16 = arith.constant 0 : index
    %c0_17 = arith.constant 0 : index
    %69 = vector.load %arg4[%c0_15, %c0_16, %c0_17] : memref<2x32x32xf32, #tpu.memory_space<vmem>>, vector<1x32x32xf32>
    %70 = vector.shape_cast %69 : vector<1x32x32xf32> to vector<32x32xf32>
    %cst_18 = arith.constant dense<0.000000e+00> : vector<8x32xf32>
    %71 = tpu.matmul %68, %70, %cst_18 {dimension_numbers = #tpu.dot_dimension_numbers<[1], [0], [0], [1], [0, 0, 1, 1], [], []>} : vector<8x32xf32>, vector<32x32xf32>, vector<8x32xf32> -> vector<8x32xf32>
    %72 = arith.addf %1, %71 : vector<8x32xf32>
    %c0_19 = arith.constant 0 : index
    %c0_20 = arith.constant 0 : index
    %c0_21 = arith.constant 0 : index
    %73 = vector.load %arg5[%c0_19, %c0_20, %c0_21] : memref<2x1x32xf32, #tpu.memory_space<vmem>>, vector<1x1x32xf32>
    %74 = vector.shape_cast %73 : vector<1x1x32xf32> to vector<1x32xf32>
    %c0_22 = arith.constant 0 : index
    %c0_23 = arith.constant 0 : index
    %c0_24 = arith.constant 0 : index
    %75 = vector.load %arg6[%c0_22, %c0_23, %c0_24] : memref<2x1x32xf32, #tpu.memory_space<vmem>>, vector<1x1x32xf32>
    %76 = vector.shape_cast %75 : vector<1x1x32xf32> to vector<1x32xf32>
    %cst_25 = arith.constant dense<0.000000e+00> : vector<8xf32>
    %77 = vector.multi_reduction <add>, %72, %cst_25 [1] : vector<8x32xf32> to vector<8xf32>
    %78 = vector.shape_cast %77 : vector<8xf32> to vector<8x1xf32>
    %cst_26 = arith.constant 3.200000e+01 : f32
    %79 = vector.broadcast %cst_26 : f32 to vector<8x1xf32>
    %80 = arith.divf %78, %79 : vector<8x1xf32>
    %81 = vector.broadcast %80 : vector<8x1xf32> to vector<8x32xf32>
    %82 = arith.subf %72, %81 : vector<8x32xf32>
    %83 = arith.mulf %82, %82 : vector<8x32xf32>
    %cst_27 = arith.constant dense<0.000000e+00> : vector<8xf32>
    %84 = vector.multi_reduction <add>, %83, %cst_27 [1] : vector<8x32xf32> to vector<8xf32>
    %85 = vector.shape_cast %84 : vector<8xf32> to vector<8x1xf32>
    %cst_28 = arith.constant 3.200000e+01 : f32
    %86 = vector.broadcast %cst_28 : f32 to vector<8x1xf32>
    %87 = arith.divf %85, %86 : vector<8x1xf32>
    %88 = vector.broadcast %80 : vector<8x1xf32> to vector<8x32xf32>
    %89 = arith.subf %72, %88 : vector<8x32xf32>
    %cst_29 = arith.constant 9.99999974E-6 : f32
    %90 = vector.broadcast %cst_29 : f32 to vector<8x1xf32>
    %91 = arith.addf %87, %90 : vector<8x1xf32>
    %92 = math.rsqrt %91 : vector<8x1xf32>
    %93 = vector.broadcast %92 : vector<8x1xf32> to vector<8x32xf32>
    %94 = arith.mulf %89, %93 : vector<8x32xf32>
    %95 = vector.broadcast %74 : vector<1x32xf32> to vector<8x32xf32>
    %96 = arith.mulf %94, %95 : vector<8x32xf32>
    %97 = vector.broadcast %76 : vector<1x32xf32> to vector<8x32xf32>
    %98 = arith.addf %96, %97 : vector<8x32xf32>
    %c0_30 = arith.constant 0 : index
    %c0_31 = arith.constant 0 : index
    %c0_32 = arith.constant 0 : index
    %99 = vector.load %arg7[%c0_30, %c0_31, %c0_32] : memref<2x32x32xf32, #tpu.memory_space<vmem>>, vector<1x32x32xf32>
    %100 = vector.shape_cast %99 : vector<1x32x32xf32> to vector<32x32xf32>
    %cst_33 = arith.constant dense<0.000000e+00> : vector<8x32xf32>
    %101 = tpu.matmul %98, %100, %cst_33 {dimension_numbers = #tpu.dot_dimension_numbers<[1], [0], [0], [1], [0, 0, 1, 1], [], []>} : vector<8x32xf32>, vector<32x32xf32>, vector<8x32xf32> -> vector<8x32xf32>
    %c0_34 = arith.constant 0 : index
    %c0_35 = arith.constant 0 : index
    %c0_36 = arith.constant 0 : index
    %102 = vector.load %arg8[%c0_34, %c0_35, %c0_36] : memref<2x32x64xf32, #tpu.memory_space<vmem>>, vector<1x32x64xf32>
    %103 = vector.shape_cast %102 : vector<1x32x64xf32> to vector<32x64xf32>
    %cst_37 = arith.constant dense<0.000000e+00> : vector<16x64xf32>
    %104 = tpu.matmul %3, %103, %cst_37 {dimension_numbers = #tpu.dot_dimension_numbers<[1], [0], [0], [1], [0, 0, 1, 1], [], []>} : vector<16x32xf32>, vector<32x64xf32>, vector<16x64xf32> -> vector<16x64xf32>
    %105 = vector.extract_strided_slice %104 {offsets = [0, 0], sizes = [16, 32], strides = [1, 1]} : vector<16x64xf32> to vector<16x32xf32>
    %106 = vector.extract_strided_slice %104 {offsets = [0, 32], sizes = [16, 32], strides = [1, 1]} : vector<16x64xf32> to vector<16x32xf32>
    %107 = vector.extract_strided_slice %101 {offsets = [0, 0], sizes = [8, 8], strides = [1, 1]} : vector<8x32xf32> to vector<8x8xf32>
    %108 = vector.extract_strided_slice %101 {offsets = [0, 8], sizes = [8, 8], strides = [1, 1]} : vector<8x32xf32> to vector<8x8xf32>
    %109 = vector.extract_strided_slice %101 {offsets = [0, 16], sizes = [8, 8], strides = [1, 1]} : vector<8x32xf32> to vector<8x8xf32>
    %110 = vector.extract_strided_slice %101 {offsets = [0, 24], sizes = [8, 8], strides = [1, 1]} : vector<8x32xf32> to vector<8x8xf32>
    %111 = vector.shape_cast %107 : vector<8x8xf32> to vector<1x8x8xf32>
    %112 = vector.shape_cast %108 : vector<8x8xf32> to vector<1x8x8xf32>
    %113 = vector.shape_cast %109 : vector<8x8xf32> to vector<1x8x8xf32>
    %114 = vector.shape_cast %110 : vector<8x8xf32> to vector<1x8x8xf32>
    %115 = tpu.concatenate %111, %112, %113, %114 in 0 : vector<1x8x8xf32>, vector<1x8x8xf32>, vector<1x8x8xf32>, vector<1x8x8xf32> -> vector<4x8x8xf32>
    %116 = vector.extract_strided_slice %105 {offsets = [0, 0], sizes = [16, 8], strides = [1, 1]} : vector<16x32xf32> to vector<16x8xf32>
    %117 = vector.extract_strided_slice %105 {offsets = [0, 8], sizes = [16, 8], strides = [1, 1]} : vector<16x32xf32> to vector<16x8xf32>
    %118 = vector.extract_strided_slice %105 {offsets = [0, 16], sizes = [16, 8], strides = [1, 1]} : vector<16x32xf32> to vector<16x8xf32>
    %119 = vector.extract_strided_slice %105 {offsets = [0, 24], sizes = [16, 8], strides = [1, 1]} : vector<16x32xf32> to vector<16x8xf32>
    %120 = vector.shape_cast %116 : vector<16x8xf32> to vector<1x16x8xf32>
    %121 = vector.shape_cast %117 : vector<16x8xf32> to vector<1x16x8xf32>
    %122 = vector.shape_cast %118 : vector<16x8xf32> to vector<1x16x8xf32>
    %123 = vector.shape_cast %119 : vector<16x8xf32> to vector<1x16x8xf32>
    %124 = tpu.concatenate %120, %121, %122, %123 in 0 : vector<1x16x8xf32>, vector<1x16x8xf32>, vector<1x16x8xf32>, vector<1x16x8xf32> -> vector<4x16x8xf32>
    %125 = vector.extract_strided_slice %106 {offsets = [0, 0], sizes = [16, 8], strides = [1, 1]} : vector<16x32xf32> to vector<16x8xf32>
    %126 = vector.extract_strided_slice %106 {offsets = [0, 8], sizes = [16, 8], strides = [1, 1]} : vector<16x32xf32> to vector<16x8xf32>
    %127 = vector.extract_strided_slice %106 {offsets = [0, 16], sizes = [16, 8], strides = [1, 1]} : vector<16x32xf32> to vector<16x8xf32>
    %128 = vector.extract_strided_slice %106 {offsets = [0, 24], sizes = [16, 8], strides = [1, 1]} : vector<16x32xf32> to vector<16x8xf32>
    %129 = vector.shape_cast %125 : vector<16x8xf32> to vector<1x16x8xf32>
    %130 = vector.shape_cast %126 : vector<16x8xf32> to vector<1x16x8xf32>
    %131 = vector.shape_cast %127 : vector<16x8xf32> to vector<1x16x8xf32>
    %132 = vector.shape_cast %128 : vector<16x8xf32> to vector<1x16x8xf32>
    %133 = tpu.concatenate %129, %130, %131, %132 in 0 : vector<1x16x8xf32>, vector<1x16x8xf32>, vector<1x16x8xf32>, vector<1x16x8xf32> -> vector<4x16x8xf32>
    "tpu.trace_start"() <{level = 10 : i32, message = "hqd,hkd->hqk"}> : () -> ()
    %cst_38 = arith.constant dense<0.000000e+00> : vector<4x8x16xf32>
    %134 = tpu.matmul %115, %124, %cst_38 {dimension_numbers = #tpu.dot_dimension_numbers<[2], [2], [1], [1], [0, 0, 0, 1, 1, 1], [0], [0]>} : vector<4x8x8xf32>, vector<4x16x8xf32>, vector<4x8x16xf32> -> vector<4x8x16xf32>
    "tpu.trace_stop"() : () -> ()
    %cst_39 = arith.constant 0.353553385 : f32
    %135 = vector.broadcast %cst_39 : f32 to vector<4x8x16xf32>
    %136 = arith.mulf %134, %135 : vector<4x8x16xf32>
    %cst_40 = arith.constant dense<0xFF800000> : vector<4x8xf32>
    %137 = vector.multi_reduction <maximumf>, %136, %cst_40 [2] : vector<4x8x16xf32> to vector<4x8xf32>
    %138 = vector.shape_cast %137 : vector<4x8xf32> to vector<4x8x1xf32>
    %139 = vector.broadcast %138 : vector<4x8x1xf32> to vector<4x8x16xf32>
    %140 = arith.subf %136, %139 : vector<4x8x16xf32>
    %141 = math.exp %140 : vector<4x8x16xf32>
    %cst_41 = arith.constant dense<0.000000e+00> : vector<4x8xf32>
    %142 = vector.multi_reduction <add>, %141, %cst_41 [2] : vector<4x8x16xf32> to vector<4x8xf32>
    %143 = vector.shape_cast %142 : vector<4x8xf32> to vector<4x8x1xf32>
    %144 = tpu.reciprocal %143 {approx = true} : vector<4x8x1xf32> -> vector<4x8x1xf32>
    %145 = vector.broadcast %144 : vector<4x8x1xf32> to vector<4x8x16xf32>
    %146 = arith.mulf %141, %145 : vector<4x8x16xf32>
    "tpu.trace_start"() <{level = 10 : i32, message = "hqk,hkd->hqd"}> : () -> ()
    %cst_42 = arith.constant dense<0.000000e+00> : vector<4x8x8xf32>
    %147 = tpu.matmul %146, %133, %cst_42 {dimension_numbers = #tpu.dot_dimension_numbers<[2], [1], [1], [2], [0, 0, 0, 1, 1, 2], [0], [0]>} : vector<4x8x16xf32>, vector<4x16x8xf32>, vector<4x8x8xf32> -> vector<4x8x8xf32>
    "tpu.trace_stop"() : () -> ()
    %148 = vector.extract_strided_slice %147 {offsets = [0, 0, 0], sizes = [1, 8, 8], strides = [1, 1, 1]} : vector<4x8x8xf32> to vector<1x8x8xf32>
    %149 = vector.shape_cast %148 : vector<1x8x8xf32> to vector<8x8xf32>
    %150 = vector.extract_strided_slice %147 {offsets = [1, 0, 0], sizes = [1, 8, 8], strides = [1, 1, 1]} : vector<4x8x8xf32> to vector<1x8x8xf32>
    %151 = vector.shape_cast %150 : vector<1x8x8xf32> to vector<8x8xf32>
    %152 = vector.extract_strided_slice %147 {offsets = [2, 0, 0], sizes = [1, 8, 8], strides = [1, 1, 1]} : vector<4x8x8xf32> to vector<1x8x8xf32>
    %153 = vector.shape_cast %152 : vector<1x8x8xf32> to vector<8x8xf32>
    %154 = vector.extract_strided_slice %147 {offsets = [3, 0, 0], sizes = [1, 8, 8], strides = [1, 1, 1]} : vector<4x8x8xf32> to vector<1x8x8xf32>
    %155 = vector.shape_cast %154 : vector<1x8x8xf32> to vector<8x8xf32>
    %156 = tpu.concatenate %149, %151, %153, %155 in 1 : vector<8x8xf32>, vector<8x8xf32>, vector<8x8xf32>, vector<8x8xf32> -> vector<8x32xf32>
    %c0_43 = arith.constant 0 : index
    %c0_44 = arith.constant 0 : index
    %c0_45 = arith.constant 0 : index
    %157 = vector.load %arg9[%c0_43, %c0_44, %c0_45] : memref<2x32x32xf32, #tpu.memory_space<vmem>>, vector<1x32x32xf32>
    %158 = vector.shape_cast %157 : vector<1x32x32xf32> to vector<32x32xf32>
    %cst_46 = arith.constant dense<0.000000e+00> : vector<8x32xf32>
    %159 = tpu.matmul %156, %158, %cst_46 {dimension_numbers = #tpu.dot_dimension_numbers<[1], [0], [0], [1], [0, 0, 1, 1], [], []>} : vector<8x32xf32>, vector<32x32xf32>, vector<8x32xf32> -> vector<8x32xf32>
    %160 = arith.addf %98, %159 : vector<8x32xf32>
    %c0_47 = arith.constant 0 : index
    %c0_48 = arith.constant 0 : index
    %c0_49 = arith.constant 0 : index
    %161 = vector.load %arg10[%c0_47, %c0_48, %c0_49] : memref<2x1x32xf32, #tpu.memory_space<vmem>>, vector<1x1x32xf32>
    %162 = vector.shape_cast %161 : vector<1x1x32xf32> to vector<1x32xf32>
    %c0_50 = arith.constant 0 : index
    %c0_51 = arith.constant 0 : index
    %c0_52 = arith.constant 0 : index
    %163 = vector.load %arg11[%c0_50, %c0_51, %c0_52] : memref<2x1x32xf32, #tpu.memory_space<vmem>>, vector<1x1x32xf32>
    %164 = vector.shape_cast %163 : vector<1x1x32xf32> to vector<1x32xf32>
    %cst_53 = arith.constant dense<0.000000e+00> : vector<8xf32>
    %165 = vector.multi_reduction <add>, %160, %cst_53 [1] : vector<8x32xf32> to vector<8xf32>
    %166 = vector.shape_cast %165 : vector<8xf32> to vector<8x1xf32>
    %cst_54 = arith.constant 3.200000e+01 : f32
    %167 = vector.broadcast %cst_54 : f32 to vector<8x1xf32>
    %168 = arith.divf %166, %167 : vector<8x1xf32>
    %169 = vector.broadcast %168 : vector<8x1xf32> to vector<8x32xf32>
    %170 = arith.subf %160, %169 : vector<8x32xf32>
    %171 = arith.mulf %170, %170 : vector<8x32xf32>
    %cst_55 = arith.constant dense<0.000000e+00> : vector<8xf32>
    %172 = vector.multi_reduction <add>, %171, %cst_55 [1] : vector<8x32xf32> to vector<8xf32>
    %173 = vector.shape_cast %172 : vector<8xf32> to vector<8x1xf32>
    %cst_56 = arith.constant 3.200000e+01 : f32
    %174 = vector.broadcast %cst_56 : f32 to vector<8x1xf32>
    %175 = arith.divf %173, %174 : vector<8x1xf32>
    %176 = vector.broadcast %168 : vector<8x1xf32> to vector<8x32xf32>
    %177 = arith.subf %160, %176 : vector<8x32xf32>
    %cst_57 = arith.constant 9.99999974E-6 : f32
    %178 = vector.broadcast %cst_57 : f32 to vector<8x1xf32>
    %179 = arith.addf %175, %178 : vector<8x1xf32>
    %180 = math.rsqrt %179 : vector<8x1xf32>
    %181 = vector.broadcast %180 : vector<8x1xf32> to vector<8x32xf32>
    %182 = arith.mulf %177, %181 : vector<8x32xf32>
    %183 = vector.broadcast %162 : vector<1x32xf32> to vector<8x32xf32>
    %184 = arith.mulf %182, %183 : vector<8x32xf32>
    %185 = vector.broadcast %164 : vector<1x32xf32> to vector<8x32xf32>
    %186 = arith.addf %184, %185 : vector<8x32xf32>
    %c0_58 = arith.constant 0 : index
    %c0_59 = arith.constant 0 : index
    %c0_60 = arith.constant 0 : index
    %187 = vector.load %arg12[%c0_58, %c0_59, %c0_60] : memref<2x32x128xf32, #tpu.memory_space<vmem>>, vector<1x32x128xf32>
    %188 = vector.shape_cast %187 : vector<1x32x128xf32> to vector<32x128xf32>
    %cst_61 = arith.constant dense<0.000000e+00> : vector<8x128xf32>
    %189 = tpu.matmul %186, %188, %cst_61 {dimension_numbers = #tpu.dot_dimension_numbers<[1], [0], [0], [1], [0, 0, 1, 1], [], []>} : vector<8x32xf32>, vector<32x128xf32>, vector<8x128xf32> -> vector<8x128xf32>
    %c0_62 = arith.constant 0 : index
    %c0_63 = arith.constant 0 : index
    %c0_64 = arith.constant 0 : index
    %190 = vector.load %arg13[%c0_62, %c0_63, %c0_64] : memref<2x1x128xf32, #tpu.memory_space<vmem>>, vector<1x1x128xf32>
    %191 = vector.shape_cast %190 : vector<1x1x128xf32> to vector<1x128xf32>
    %192 = vector.broadcast %191 : vector<1x128xf32> to vector<8x128xf32>
    %193 = arith.addf %189, %192 : vector<8x128xf32>
    %cst_65 = arith.constant 0.000000e+00 : f32
    %194 = vector.broadcast %cst_65 : f32 to vector<8x128xf32>
    %195 = arith.maximumf %193, %194 : vector<8x128xf32>
    %c0_66 = arith.constant 0 : index
    %c0_67 = arith.constant 0 : index
    %c0_68 = arith.constant 0 : index
    %196 = vector.load %arg14[%c0_66, %c0_67, %c0_68] : memref<2x128x32xf32, #tpu.memory_space<vmem>>, vector<1x128x32xf32>
    %197 = vector.shape_cast %196 : vector<1x128x32xf32> to vector<128x32xf32>
    %cst_69 = arith.constant dense<0.000000e+00> : vector<8x32xf32>
    %198 = tpu.matmul %195, %197, %cst_69 {dimension_numbers = #tpu.dot_dimension_numbers<[1], [0], [0], [1], [0, 0, 1, 1], [], []>} : vector<8x128xf32>, vector<128x32xf32>, vector<8x32xf32> -> vector<8x32xf32>
    %c0_70 = arith.constant 0 : index
    %c0_71 = arith.constant 0 : index
    %c0_72 = arith.constant 0 : index
    %199 = vector.load %arg15[%c0_70, %c0_71, %c0_72] : memref<2x1x32xf32, #tpu.memory_space<vmem>>, vector<1x1x32xf32>
    %200 = vector.shape_cast %199 : vector<1x1x32xf32> to vector<1x32xf32>
    %201 = vector.broadcast %200 : vector<1x32xf32> to vector<8x32xf32>
    %202 = arith.addf %198, %201 : vector<8x32xf32>
    %203 = arith.addf %186, %202 : vector<8x32xf32>
    %c0_73 = arith.constant 0 : index
    %c0_74 = arith.constant 0 : index
    %c0_75 = arith.constant 0 : index
    %204 = vector.load %arg16[%c0_73, %c0_74, %c0_75] : memref<2x1x32xf32, #tpu.memory_space<vmem>>, vector<1x1x32xf32>
    %205 = vector.shape_cast %204 : vector<1x1x32xf32> to vector<1x32xf32>
    %c0_76 = arith.constant 0 : index
    %c0_77 = arith.constant 0 : index
    %c0_78 = arith.constant 0 : index
    %206 = vector.load %arg17[%c0_76, %c0_77, %c0_78] : memref<2x1x32xf32, #tpu.memory_space<vmem>>, vector<1x1x32xf32>
    %207 = vector.shape_cast %206 : vector<1x1x32xf32> to vector<1x32xf32>
    %cst_79 = arith.constant dense<0.000000e+00> : vector<8xf32>
    %208 = vector.multi_reduction <add>, %203, %cst_79 [1] : vector<8x32xf32> to vector<8xf32>
    %209 = vector.shape_cast %208 : vector<8xf32> to vector<8x1xf32>
    %cst_80 = arith.constant 3.200000e+01 : f32
    %210 = vector.broadcast %cst_80 : f32 to vector<8x1xf32>
    %211 = arith.divf %209, %210 : vector<8x1xf32>
    %212 = vector.broadcast %211 : vector<8x1xf32> to vector<8x32xf32>
    %213 = arith.subf %203, %212 : vector<8x32xf32>
    %214 = arith.mulf %213, %213 : vector<8x32xf32>
    %cst_81 = arith.constant dense<0.000000e+00> : vector<8xf32>
    %215 = vector.multi_reduction <add>, %214, %cst_81 [1] : vector<8x32xf32> to vector<8xf32>
    %216 = vector.shape_cast %215 : vector<8xf32> to vector<8x1xf32>
    %cst_82 = arith.constant 3.200000e+01 : f32
    %217 = vector.broadcast %cst_82 : f32 to vector<8x1xf32>
    %218 = arith.divf %216, %217 : vector<8x1xf32>
    %219 = vector.broadcast %211 : vector<8x1xf32> to vector<8x32xf32>
    %220 = arith.subf %203, %219 : vector<8x32xf32>
    %cst_83 = arith.constant 9.99999974E-6 : f32
    %221 = vector.broadcast %cst_83 : f32 to vector<8x1xf32>
    %222 = arith.addf %218, %221 : vector<8x1xf32>
    %223 = math.rsqrt %222 : vector<8x1xf32>
    %224 = vector.broadcast %223 : vector<8x1xf32> to vector<8x32xf32>
    %225 = arith.mulf %220, %224 : vector<8x32xf32>
    %226 = vector.broadcast %205 : vector<1x32xf32> to vector<8x32xf32>
    %227 = arith.mulf %225, %226 : vector<8x32xf32>
    %228 = vector.broadcast %207 : vector<1x32xf32> to vector<8x32xf32>
    %229 = arith.addf %227, %228 : vector<8x32xf32>
    %c1 = arith.constant 1 : index
    %c0_84 = arith.constant 0 : index
    %c0_85 = arith.constant 0 : index
    %230 = vector.load %arg3[%c1, %c0_84, %c0_85] : memref<2x32x96xf32, #tpu.memory_space<vmem>>, vector<1x32x96xf32>
    %231 = vector.shape_cast %230 : vector<1x32x96xf32> to vector<32x96xf32>
    %cst_86 = arith.constant dense<0.000000e+00> : vector<8x96xf32>
    %232 = tpu.matmul %229, %231, %cst_86 {dimension_numbers = #tpu.dot_dimension_numbers<[1], [0], [0], [1], [0, 0, 1, 1], [], []>} : vector<8x32xf32>, vector<32x96xf32>, vector<8x96xf32> -> vector<8x96xf32>
    %233 = vector.extract_strided_slice %232 {offsets = [0, 0], sizes = [8, 32], strides = [1, 1]} : vector<8x96xf32> to vector<8x32xf32>
    %234 = vector.extract_strided_slice %232 {offsets = [0, 32], sizes = [8, 32], strides = [1, 1]} : vector<8x96xf32> to vector<8x32xf32>
    %235 = vector.extract_strided_slice %232 {offsets = [0, 64], sizes = [8, 32], strides = [1, 1]} : vector<8x96xf32> to vector<8x32xf32>
    %236 = vector.extract_strided_slice %233 {offsets = [0, 0], sizes = [8, 8], strides = [1, 1]} : vector<8x32xf32> to vector<8x8xf32>
    %237 = vector.extract_strided_slice %233 {offsets = [0, 8], sizes = [8, 8], strides = [1, 1]} : vector<8x32xf32> to vector<8x8xf32>
    %238 = vector.extract_strided_slice %233 {offsets = [0, 16], sizes = [8, 8], strides = [1, 1]} : vector<8x32xf32> to vector<8x8xf32>
    %239 = vector.extract_strided_slice %233 {offsets = [0, 24], sizes = [8, 8], strides = [1, 1]} : vector<8x32xf32> to vector<8x8xf32>
    %240 = vector.shape_cast %236 : vector<8x8xf32> to vector<1x8x8xf32>
    %241 = vector.shape_cast %237 : vector<8x8xf32> to vector<1x8x8xf32>
    %242 = vector.shape_cast %238 : vector<8x8xf32> to vector<1x8x8xf32>
    %243 = vector.shape_cast %239 : vector<8x8xf32> to vector<1x8x8xf32>
    %244 = tpu.concatenate %240, %241, %242, %243 in 0 : vector<1x8x8xf32>, vector<1x8x8xf32>, vector<1x8x8xf32>, vector<1x8x8xf32> -> vector<4x8x8xf32>
    %245 = vector.extract_strided_slice %234 {offsets = [0, 0], sizes = [8, 8], strides = [1, 1]} : vector<8x32xf32> to vector<8x8xf32>
    %246 = vector.extract_strided_slice %234 {offsets = [0, 8], sizes = [8, 8], strides = [1, 1]} : vector<8x32xf32> to vector<8x8xf32>
    %247 = vector.extract_strided_slice %234 {offsets = [0, 16], sizes = [8, 8], strides = [1, 1]} : vector<8x32xf32> to vector<8x8xf32>
    %248 = vector.extract_strided_slice %234 {offsets = [0, 24], sizes = [8, 8], strides = [1, 1]} : vector<8x32xf32> to vector<8x8xf32>
    %249 = vector.shape_cast %245 : vector<8x8xf32> to vector<1x8x8xf32>
    %250 = vector.shape_cast %246 : vector<8x8xf32> to vector<1x8x8xf32>
    %251 = vector.shape_cast %247 : vector<8x8xf32> to vector<1x8x8xf32>
    %252 = vector.shape_cast %248 : vector<8x8xf32> to vector<1x8x8xf32>
    %253 = tpu.concatenate %249, %250, %251, %252 in 0 : vector<1x8x8xf32>, vector<1x8x8xf32>, vector<1x8x8xf32>, vector<1x8x8xf32> -> vector<4x8x8xf32>
    %254 = vector.extract_strided_slice %235 {offsets = [0, 0], sizes = [8, 8], strides = [1, 1]} : vector<8x32xf32> to vector<8x8xf32>
    %255 = vector.extract_strided_slice %235 {offsets = [0, 8], sizes = [8, 8], strides = [1, 1]} : vector<8x32xf32> to vector<8x8xf32>
    %256 = vector.extract_strided_slice %235 {offsets = [0, 16], sizes = [8, 8], strides = [1, 1]} : vector<8x32xf32> to vector<8x8xf32>
    %257 = vector.extract_strided_slice %235 {offsets = [0, 24], sizes = [8, 8], strides = [1, 1]} : vector<8x32xf32> to vector<8x8xf32>
    %258 = vector.shape_cast %254 : vector<8x8xf32> to vector<1x8x8xf32>
    %259 = vector.shape_cast %255 : vector<8x8xf32> to vector<1x8x8xf32>
    %260 = vector.shape_cast %256 : vector<8x8xf32> to vector<1x8x8xf32>
    %261 = vector.shape_cast %257 : vector<8x8xf32> to vector<1x8x8xf32>
    %262 = tpu.concatenate %258, %259, %260, %261 in 0 : vector<1x8x8xf32>, vector<1x8x8xf32>, vector<1x8x8xf32>, vector<1x8x8xf32> -> vector<4x8x8xf32>
    "tpu.trace_start"() <{level = 10 : i32, message = "hqd,hkd->hqk"}> : () -> ()
    %cst_87 = arith.constant dense<0.000000e+00> : vector<4x8x8xf32>
    %263 = tpu.matmul %244, %253, %cst_87 {dimension_numbers = #tpu.dot_dimension_numbers<[2], [2], [1], [1], [0, 0, 0, 1, 1, 1], [0], [0]>} : vector<4x8x8xf32>, vector<4x8x8xf32>, vector<4x8x8xf32> -> vector<4x8x8xf32>
    "tpu.trace_stop"() : () -> ()
    %cst_88 = arith.constant 0.353553385 : f32
    %264 = vector.broadcast %cst_88 : f32 to vector<4x8x8xf32>
    %265 = arith.mulf %263, %264 : vector<4x8x8xf32>
    %266 = vector.shape_cast %9 : vector<8x8xf32> to vector<1x8x8xf32>
    %267 = vector.broadcast %266 : vector<1x8x8xf32> to vector<4x8x8xf32>
    %268 = arith.addf %265, %267 : vector<4x8x8xf32>
    %cst_89 = arith.constant dense<0xFF800000> : vector<4x8xf32>
    %269 = vector.multi_reduction <maximumf>, %268, %cst_89 [2] : vector<4x8x8xf32> to vector<4x8xf32>
    %270 = vector.shape_cast %269 : vector<4x8xf32> to vector<4x8x1xf32>
    %271 = vector.broadcast %270 : vector<4x8x1xf32> to vector<4x8x8xf32>
    %272 = arith.subf %268, %271 : vector<4x8x8xf32>
    %273 = math.exp %272 : vector<4x8x8xf32>
    %cst_90 = arith.constant dense<0.000000e+00> : vector<4x8xf32>
    %274 = vector.multi_reduction <add>, %273, %cst_90 [2] : vector<4x8x8xf32> to vector<4x8xf32>
    %275 = vector.shape_cast %274 : vector<4x8xf32> to vector<4x8x1xf32>
    %276 = tpu.reciprocal %275 {approx = true} : vector<4x8x1xf32> -> vector<4x8x1xf32>
    %277 = vector.broadcast %276 : vector<4x8x1xf32> to vector<4x8x8xf32>
    %278 = arith.mulf %273, %277 : vector<4x8x8xf32>
    "tpu.trace_start"() <{level = 10 : i32, message = "hqk,hkd->hqd"}> : () -> ()
    %cst_91 = arith.constant dense<0.000000e+00> : vector<4x8x8xf32>
    %279 = tpu.matmul %278, %262, %cst_91 {dimension_numbers = #tpu.dot_dimension_numbers<[2], [1], [1], [2], [0, 0, 0, 1, 1, 2], [0], [0]>} : vector<4x8x8xf32>, vector<4x8x8xf32>, vector<4x8x8xf32> -> vector<4x8x8xf32>
    "tpu.trace_stop"() : () -> ()
    %280 = vector.extract_strided_slice %279 {offsets = [0, 0, 0], sizes = [1, 8, 8], strides = [1, 1, 1]} : vector<4x8x8xf32> to vector<1x8x8xf32>
    %281 = vector.shape_cast %280 : vector<1x8x8xf32> to vector<8x8xf32>
    %282 = vector.extract_strided_slice %279 {offsets = [1, 0, 0], sizes = [1, 8, 8], strides = [1, 1, 1]} : vector<4x8x8xf32> to vector<1x8x8xf32>
    %283 = vector.shape_cast %282 : vector<1x8x8xf32> to vector<8x8xf32>
    %284 = vector.extract_strided_slice %279 {offsets = [2, 0, 0], sizes = [1, 8, 8], strides = [1, 1, 1]} : vector<4x8x8xf32> to vector<1x8x8xf32>
    %285 = vector.shape_cast %284 : vector<1x8x8xf32> to vector<8x8xf32>
    %286 = vector.extract_strided_slice %279 {offsets = [3, 0, 0], sizes = [1, 8, 8], strides = [1, 1, 1]} : vector<4x8x8xf32> to vector<1x8x8xf32>
    %287 = vector.shape_cast %286 : vector<1x8x8xf32> to vector<8x8xf32>
    %288 = tpu.concatenate %281, %283, %285, %287 in 1 : vector<8x8xf32>, vector<8x8xf32>, vector<8x8xf32>, vector<8x8xf32> -> vector<8x32xf32>
    %c1_92 = arith.constant 1 : index
    %c0_93 = arith.constant 0 : index
    %c0_94 = arith.constant 0 : index
    %289 = vector.load %arg4[%c1_92, %c0_93, %c0_94] : memref<2x32x32xf32, #tpu.memory_space<vmem>>, vector<1x32x32xf32>
    %290 = vector.shape_cast %289 : vector<1x32x32xf32> to vector<32x32xf32>
    %cst_95 = arith.constant dense<0.000000e+00> : vector<8x32xf32>
    %291 = tpu.matmul %288, %290, %cst_95 {dimension_numbers = #tpu.dot_dimension_numbers<[1], [0], [0], [1], [0, 0, 1, 1], [], []>} : vector<8x32xf32>, vector<32x32xf32>, vector<8x32xf32> -> vector<8x32xf32>
    %292 = arith.addf %229, %291 : vector<8x32xf32>
    %c1_96 = arith.constant 1 : index
    %c0_97 = arith.constant 0 : index
    %c0_98 = arith.constant 0 : index
    %293 = vector.load %arg5[%c1_96, %c0_97, %c0_98] : memref<2x1x32xf32, #tpu.memory_space<vmem>>, vector<1x1x32xf32>
    %294 = vector.shape_cast %293 : vector<1x1x32xf32> to vector<1x32xf32>
    %c1_99 = arith.constant 1 : index
    %c0_100 = arith.constant 0 : index
    %c0_101 = arith.constant 0 : index
    %295 = vector.load %arg6[%c1_99, %c0_100, %c0_101] : memref<2x1x32xf32, #tpu.memory_space<vmem>>, vector<1x1x32xf32>
    %296 = vector.shape_cast %295 : vector<1x1x32xf32> to vector<1x32xf32>
    %cst_102 = arith.constant dense<0.000000e+00> : vector<8xf32>
    %297 = vector.multi_reduction <add>, %292, %cst_102 [1] : vector<8x32xf32> to vector<8xf32>
    %298 = vector.shape_cast %297 : vector<8xf32> to vector<8x1xf32>
    %cst_103 = arith.constant 3.200000e+01 : f32
    %299 = vector.broadcast %cst_103 : f32 to vector<8x1xf32>
    %300 = arith.divf %298, %299 : vector<8x1xf32>
    %301 = vector.broadcast %300 : vector<8x1xf32> to vector<8x32xf32>
    %302 = arith.subf %292, %301 : vector<8x32xf32>
    %303 = arith.mulf %302, %302 : vector<8x32xf32>
    %cst_104 = arith.constant dense<0.000000e+00> : vector<8xf32>
    %304 = vector.multi_reduction <add>, %303, %cst_104 [1] : vector<8x32xf32> to vector<8xf32>
    %305 = vector.shape_cast %304 : vector<8xf32> to vector<8x1xf32>
    %cst_105 = arith.constant 3.200000e+01 : f32
    %306 = vector.broadcast %cst_105 : f32 to vector<8x1xf32>
    %307 = arith.divf %305, %306 : vector<8x1xf32>
    %308 = vector.broadcast %300 : vector<8x1xf32> to vector<8x32xf32>
    %309 = arith.subf %292, %308 : vector<8x32xf32>
    %cst_106 = arith.constant 9.99999974E-6 : f32
    %310 = vector.broadcast %cst_106 : f32 to vector<8x1xf32>
    %311 = arith.addf %307, %310 : vector<8x1xf32>
    %312 = math.rsqrt %311 : vector<8x1xf32>
    %313 = vector.broadcast %312 : vector<8x1xf32> to vector<8x32xf32>
    %314 = arith.mulf %309, %313 : vector<8x32xf32>
    %315 = vector.broadcast %294 : vector<1x32xf32> to vector<8x32xf32>
    %316 = arith.mulf %314, %315 : vector<8x32xf32>
    %317 = vector.broadcast %296 : vector<1x32xf32> to vector<8x32xf32>
    %318 = arith.addf %316, %317 : vector<8x32xf32>
    %c1_107 = arith.constant 1 : index
    %c0_108 = arith.constant 0 : index
    %c0_109 = arith.constant 0 : index
    %319 = vector.load %arg7[%c1_107, %c0_108, %c0_109] : memref<2x32x32xf32, #tpu.memory_space<vmem>>, vector<1x32x32xf32>
    %320 = vector.shape_cast %319 : vector<1x32x32xf32> to vector<32x32xf32>
    %cst_110 = arith.constant dense<0.000000e+00> : vector<8x32xf32>
    %321 = tpu.matmul %318, %320, %cst_110 {dimension_numbers = #tpu.dot_dimension_numbers<[1], [0], [0], [1], [0, 0, 1, 1], [], []>} : vector<8x32xf32>, vector<32x32xf32>, vector<8x32xf32> -> vector<8x32xf32>
    %c1_111 = arith.constant 1 : index
    %c0_112 = arith.constant 0 : index
    %c0_113 = arith.constant 0 : index
    %322 = vector.load %arg8[%c1_111, %c0_112, %c0_113] : memref<2x32x64xf32, #tpu.memory_space<vmem>>, vector<1x32x64xf32>
    %323 = vector.shape_cast %322 : vector<1x32x64xf32> to vector<32x64xf32>
    %cst_114 = arith.constant dense<0.000000e+00> : vector<16x64xf32>
    %324 = tpu.matmul %3, %323, %cst_114 {dimension_numbers = #tpu.dot_dimension_numbers<[1], [0], [0], [1], [0, 0, 1, 1], [], []>} : vector<16x32xf32>, vector<32x64xf32>, vector<16x64xf32> -> vector<16x64xf32>
    %325 = vector.extract_strided_slice %324 {offsets = [0, 0], sizes = [16, 32], strides = [1, 1]} : vector<16x64xf32> to vector<16x32xf32>
    %326 = vector.extract_strided_slice %324 {offsets = [0, 32], sizes = [16, 32], strides = [1, 1]} : vector<16x64xf32> to vector<16x32xf32>
    %327 = vector.extract_strided_slice %321 {offsets = [0, 0], sizes = [8, 8], strides = [1, 1]} : vector<8x32xf32> to vector<8x8xf32>
    %328 = vector.extract_strided_slice %321 {offsets = [0, 8], sizes = [8, 8], strides = [1, 1]} : vector<8x32xf32> to vector<8x8xf32>
    %329 = vector.extract_strided_slice %321 {offsets = [0, 16], sizes = [8, 8], strides = [1, 1]} : vector<8x32xf32> to vector<8x8xf32>
    %330 = vector.extract_strided_slice %321 {offsets = [0, 24], sizes = [8, 8], strides = [1, 1]} : vector<8x32xf32> to vector<8x8xf32>
    %331 = vector.shape_cast %327 : vector<8x8xf32> to vector<1x8x8xf32>
    %332 = vector.shape_cast %328 : vector<8x8xf32> to vector<1x8x8xf32>
    %333 = vector.shape_cast %329 : vector<8x8xf32> to vector<1x8x8xf32>
    %334 = vector.shape_cast %330 : vector<8x8xf32> to vector<1x8x8xf32>
    %335 = tpu.concatenate %331, %332, %333, %334 in 0 : vector<1x8x8xf32>, vector<1x8x8xf32>, vector<1x8x8xf32>, vector<1x8x8xf32> -> vector<4x8x8xf32>
    %336 = vector.extract_strided_slice %325 {offsets = [0, 0], sizes = [16, 8], strides = [1, 1]} : vector<16x32xf32> to vector<16x8xf32>
    %337 = vector.extract_strided_slice %325 {offsets = [0, 8], sizes = [16, 8], strides = [1, 1]} : vector<16x32xf32> to vector<16x8xf32>
    %338 = vector.extract_strided_slice %325 {offsets = [0, 16], sizes = [16, 8], strides = [1, 1]} : vector<16x32xf32> to vector<16x8xf32>
    %339 = vector.extract_strided_slice %325 {offsets = [0, 24], sizes = [16, 8], strides = [1, 1]} : vector<16x32xf32> to vector<16x8xf32>
    %340 = vector.shape_cast %336 : vector<16x8xf32> to vector<1x16x8xf32>
    %341 = vector.shape_cast %337 : vector<16x8xf32> to vector<1x16x8xf32>
    %342 = vector.shape_cast %338 : vector<16x8xf32> to vector<1x16x8xf32>
    %343 = vector.shape_cast %339 : vector<16x8xf32> to vector<1x16x8xf32>
    %344 = tpu.concatenate %340, %341, %342, %343 in 0 : vector<1x16x8xf32>, vector<1x16x8xf32>, vector<1x16x8xf32>, vector<1x16x8xf32> -> vector<4x16x8xf32>
    %345 = vector.extract_strided_slice %326 {offsets = [0, 0], sizes = [16, 8], strides = [1, 1]} : vector<16x32xf32> to vector<16x8xf32>
    %346 = vector.extract_strided_slice %326 {offsets = [0, 8], sizes = [16, 8], strides = [1, 1]} : vector<16x32xf32> to vector<16x8xf32>
    %347 = vector.extract_strided_slice %326 {offsets = [0, 16], sizes = [16, 8], strides = [1, 1]} : vector<16x32xf32> to vector<16x8xf32>
    %348 = vector.extract_strided_slice %326 {offsets = [0, 24], sizes = [16, 8], strides = [1, 1]} : vector<16x32xf32> to vector<16x8xf32>
    %349 = vector.shape_cast %345 : vector<16x8xf32> to vector<1x16x8xf32>
    %350 = vector.shape_cast %346 : vector<16x8xf32> to vector<1x16x8xf32>
    %351 = vector.shape_cast %347 : vector<16x8xf32> to vector<1x16x8xf32>
    %352 = vector.shape_cast %348 : vector<16x8xf32> to vector<1x16x8xf32>
    %353 = tpu.concatenate %349, %350, %351, %352 in 0 : vector<1x16x8xf32>, vector<1x16x8xf32>, vector<1x16x8xf32>, vector<1x16x8xf32> -> vector<4x16x8xf32>
    "tpu.trace_start"() <{level = 10 : i32, message = "hqd,hkd->hqk"}> : () -> ()
    %cst_115 = arith.constant dense<0.000000e+00> : vector<4x8x16xf32>
    %354 = tpu.matmul %335, %344, %cst_115 {dimension_numbers = #tpu.dot_dimension_numbers<[2], [2], [1], [1], [0, 0, 0, 1, 1, 1], [0], [0]>} : vector<4x8x8xf32>, vector<4x16x8xf32>, vector<4x8x16xf32> -> vector<4x8x16xf32>
    "tpu.trace_stop"() : () -> ()
    %cst_116 = arith.constant 0.353553385 : f32
    %355 = vector.broadcast %cst_116 : f32 to vector<4x8x16xf32>
    %356 = arith.mulf %354, %355 : vector<4x8x16xf32>
    %cst_117 = arith.constant dense<0xFF800000> : vector<4x8xf32>
    %357 = vector.multi_reduction <maximumf>, %356, %cst_117 [2] : vector<4x8x16xf32> to vector<4x8xf32>
    %358 = vector.shape_cast %357 : vector<4x8xf32> to vector<4x8x1xf32>
    %359 = vector.broadcast %358 : vector<4x8x1xf32> to vector<4x8x16xf32>
    %360 = arith.subf %356, %359 : vector<4x8x16xf32>
    %361 = math.exp %360 : vector<4x8x16xf32>
    %cst_118 = arith.constant dense<0.000000e+00> : vector<4x8xf32>
    %362 = vector.multi_reduction <add>, %361, %cst_118 [2] : vector<4x8x16xf32> to vector<4x8xf32>
    %363 = vector.shape_cast %362 : vector<4x8xf32> to vector<4x8x1xf32>
    %364 = tpu.reciprocal %363 {approx = true} : vector<4x8x1xf32> -> vector<4x8x1xf32>
    %365 = vector.broadcast %364 : vector<4x8x1xf32> to vector<4x8x16xf32>
    %366 = arith.mulf %361, %365 : vector<4x8x16xf32>
    "tpu.trace_start"() <{level = 10 : i32, message = "hqk,hkd->hqd"}> : () -> ()
    %cst_119 = arith.constant dense<0.000000e+00> : vector<4x8x8xf32>
    %367 = tpu.matmul %366, %353, %cst_119 {dimension_numbers = #tpu.dot_dimension_numbers<[2], [1], [1], [2], [0, 0, 0, 1, 1, 2], [0], [0]>} : vector<4x8x16xf32>, vector<4x16x8xf32>, vector<4x8x8xf32> -> vector<4x8x8xf32>
    "tpu.trace_stop"() : () -> ()
    %368 = vector.extract_strided_slice %367 {offsets = [0, 0, 0], sizes = [1, 8, 8], strides = [1, 1, 1]} : vector<4x8x8xf32> to vector<1x8x8xf32>
    %369 = vector.shape_cast %368 : vector<1x8x8xf32> to vector<8x8xf32>
    %370 = vector.extract_strided_slice %367 {offsets = [1, 0, 0], sizes = [1, 8, 8], strides = [1, 1, 1]} : vector<4x8x8xf32> to vector<1x8x8xf32>
    %371 = vector.shape_cast %370 : vector<1x8x8xf32> to vector<8x8xf32>
    %372 = vector.extract_strided_slice %367 {offsets = [2, 0, 0], sizes = [1, 8, 8], strides = [1, 1, 1]} : vector<4x8x8xf32> to vector<1x8x8xf32>
    %373 = vector.shape_cast %372 : vector<1x8x8xf32> to vector<8x8xf32>
    %374 = vector.extract_strided_slice %367 {offsets = [3, 0, 0], sizes = [1, 8, 8], strides = [1, 1, 1]} : vector<4x8x8xf32> to vector<1x8x8xf32>
    %375 = vector.shape_cast %374 : vector<1x8x8xf32> to vector<8x8xf32>
    %376 = tpu.concatenate %369, %371, %373, %375 in 1 : vector<8x8xf32>, vector<8x8xf32>, vector<8x8xf32>, vector<8x8xf32> -> vector<8x32xf32>
    %c1_120 = arith.constant 1 : index
    %c0_121 = arith.constant 0 : index
    %c0_122 = arith.constant 0 : index
    %377 = vector.load %arg9[%c1_120, %c0_121, %c0_122] : memref<2x32x32xf32, #tpu.memory_space<vmem>>, vector<1x32x32xf32>
    %378 = vector.shape_cast %377 : vector<1x32x32xf32> to vector<32x32xf32>
    %cst_123 = arith.constant dense<0.000000e+00> : vector<8x32xf32>
    %379 = tpu.matmul %376, %378, %cst_123 {dimension_numbers = #tpu.dot_dimension_numbers<[1], [0], [0], [1], [0, 0, 1, 1], [], []>} : vector<8x32xf32>, vector<32x32xf32>, vector<8x32xf32> -> vector<8x32xf32>
    %380 = arith.addf %318, %379 : vector<8x32xf32>
    %c1_124 = arith.constant 1 : index
    %c0_125 = arith.constant 0 : index
    %c0_126 = arith.constant 0 : index
    %381 = vector.load %arg10[%c1_124, %c0_125, %c0_126] : memref<2x1x32xf32, #tpu.memory_space<vmem>>, vector<1x1x32xf32>
    %382 = vector.shape_cast %381 : vector<1x1x32xf32> to vector<1x32xf32>
    %c1_127 = arith.constant 1 : index
    %c0_128 = arith.constant 0 : index
    %c0_129 = arith.constant 0 : index
    %383 = vector.load %arg11[%c1_127, %c0_128, %c0_129] : memref<2x1x32xf32, #tpu.memory_space<vmem>>, vector<1x1x32xf32>
    %384 = vector.shape_cast %383 : vector<1x1x32xf32> to vector<1x32xf32>
    %cst_130 = arith.constant dense<0.000000e+00> : vector<8xf32>
    %385 = vector.multi_reduction <add>, %380, %cst_130 [1] : vector<8x32xf32> to vector<8xf32>
    %386 = vector.shape_cast %385 : vector<8xf32> to vector<8x1xf32>
    %cst_131 = arith.constant 3.200000e+01 : f32
    %387 = vector.broadcast %cst_131 : f32 to vector<8x1xf32>
    %388 = arith.divf %386, %387 : vector<8x1xf32>
    %389 = vector.broadcast %388 : vector<8x1xf32> to vector<8x32xf32>
    %390 = arith.subf %380, %389 : vector<8x32xf32>
    %391 = arith.mulf %390, %390 : vector<8x32xf32>
    %cst_132 = arith.constant dense<0.000000e+00> : vector<8xf32>
    %392 = vector.multi_reduction <add>, %391, %cst_132 [1] : vector<8x32xf32> to vector<8xf32>
    %393 = vector.shape_cast %392 : vector<8xf32> to vector<8x1xf32>
    %cst_133 = arith.constant 3.200000e+01 : f32
    %394 = vector.broadcast %cst_133 : f32 to vector<8x1xf32>
    %395 = arith.divf %393, %394 : vector<8x1xf32>
    %396 = vector.broadcast %388 : vector<8x1xf32> to vector<8x32xf32>
    %397 = arith.subf %380, %396 : vector<8x32xf32>
    %cst_134 = arith.constant 9.99999974E-6 : f32
    %398 = vector.broadcast %cst_134 : f32 to vector<8x1xf32>
    %399 = arith.addf %395, %398 : vector<8x1xf32>
    %400 = math.rsqrt %399 : vector<8x1xf32>
    %401 = vector.broadcast %400 : vector<8x1xf32> to vector<8x32xf32>
    %402 = arith.mulf %397, %401 : vector<8x32xf32>
    %403 = vector.broadcast %382 : vector<1x32xf32> to vector<8x32xf32>
    %404 = arith.mulf %402, %403 : vector<8x32xf32>
    %405 = vector.broadcast %384 : vector<1x32xf32> to vector<8x32xf32>
    %406 = arith.addf %404, %405 : vector<8x32xf32>
    %c1_135 = arith.constant 1 : index
    %c0_136 = arith.constant 0 : index
    %c0_137 = arith.constant 0 : index
    %407 = vector.load %arg12[%c1_135, %c0_136, %c0_137] : memref<2x32x128xf32, #tpu.memory_space<vmem>>, vector<1x32x128xf32>
    %408 = vector.shape_cast %407 : vector<1x32x128xf32> to vector<32x128xf32>
    %cst_138 = arith.constant dense<0.000000e+00> : vector<8x128xf32>
    %409 = tpu.matmul %406, %408, %cst_138 {dimension_numbers = #tpu.dot_dimension_numbers<[1], [0], [0], [1], [0, 0, 1, 1], [], []>} : vector<8x32xf32>, vector<32x128xf32>, vector<8x128xf32> -> vector<8x128xf32>
    %c1_139 = arith.constant 1 : index
    %c0_140 = arith.constant 0 : index
    %c0_141 = arith.constant 0 : index
    %410 = vector.load %arg13[%c1_139, %c0_140, %c0_141] : memref<2x1x128xf32, #tpu.memory_space<vmem>>, vector<1x1x128xf32>
    %411 = vector.shape_cast %410 : vector<1x1x128xf32> to vector<1x128xf32>
    %412 = vector.broadcast %411 : vector<1x128xf32> to vector<8x128xf32>
    %413 = arith.addf %409, %412 : vector<8x128xf32>
    %cst_142 = arith.constant 0.000000e+00 : f32
    %414 = vector.broadcast %cst_142 : f32 to vector<8x128xf32>
    %415 = arith.maximumf %413, %414 : vector<8x128xf32>
    %c1_143 = arith.constant 1 : index
    %c0_144 = arith.constant 0 : index
    %c0_145 = arith.constant 0 : index
    %416 = vector.load %arg14[%c1_143, %c0_144, %c0_145] : memref<2x128x32xf32, #tpu.memory_space<vmem>>, vector<1x128x32xf32>
    %417 = vector.shape_cast %416 : vector<1x128x32xf32> to vector<128x32xf32>
    %cst_146 = arith.constant dense<0.000000e+00> : vector<8x32xf32>
    %418 = tpu.matmul %415, %417, %cst_146 {dimension_numbers = #tpu.dot_dimension_numbers<[1], [0], [0], [1], [0, 0, 1, 1], [], []>} : vector<8x128xf32>, vector<128x32xf32>, vector<8x32xf32> -> vector<8x32xf32>
    %c1_147 = arith.constant 1 : index
    %c0_148 = arith.constant 0 : index
    %c0_149 = arith.constant 0 : index
    %419 = vector.load %arg15[%c1_147, %c0_148, %c0_149] : memref<2x1x32xf32, #tpu.memory_space<vmem>>, vector<1x1x32xf32>
    %420 = vector.shape_cast %419 : vector<1x1x32xf32> to vector<1x32xf32>
    %421 = vector.broadcast %420 : vector<1x32xf32> to vector<8x32xf32>
    %422 = arith.addf %418, %421 : vector<8x32xf32>
    %423 = arith.addf %406, %422 : vector<8x32xf32>
    %c1_150 = arith.constant 1 : index
    %c0_151 = arith.constant 0 : index
    %c0_152 = arith.constant 0 : index
    %424 = vector.load %arg16[%c1_150, %c0_151, %c0_152] : memref<2x1x32xf32, #tpu.memory_space<vmem>>, vector<1x1x32xf32>
    %425 = vector.shape_cast %424 : vector<1x1x32xf32> to vector<1x32xf32>
    %c1_153 = arith.constant 1 : index
    %c0_154 = arith.constant 0 : index
    %c0_155 = arith.constant 0 : index
    %426 = vector.load %arg17[%c1_153, %c0_154, %c0_155] : memref<2x1x32xf32, #tpu.memory_space<vmem>>, vector<1x1x32xf32>
    %427 = vector.shape_cast %426 : vector<1x1x32xf32> to vector<1x32xf32>
    %cst_156 = arith.constant dense<0.000000e+00> : vector<8xf32>
    %428 = vector.multi_reduction <add>, %423, %cst_156 [1] : vector<8x32xf32> to vector<8xf32>
    %429 = vector.shape_cast %428 : vector<8xf32> to vector<8x1xf32>
    %cst_157 = arith.constant 3.200000e+01 : f32
    %430 = vector.broadcast %cst_157 : f32 to vector<8x1xf32>
    %431 = arith.divf %429, %430 : vector<8x1xf32>
    %432 = vector.broadcast %431 : vector<8x1xf32> to vector<8x32xf32>
    %433 = arith.subf %423, %432 : vector<8x32xf32>
    %434 = arith.mulf %433, %433 : vector<8x32xf32>
    %cst_158 = arith.constant dense<0.000000e+00> : vector<8xf32>
    %435 = vector.multi_reduction <add>, %434, %cst_158 [1] : vector<8x32xf32> to vector<8xf32>
    %436 = vector.shape_cast %435 : vector<8xf32> to vector<8x1xf32>
    %cst_159 = arith.constant 3.200000e+01 : f32
    %437 = vector.broadcast %cst_159 : f32 to vector<8x1xf32>
    %438 = arith.divf %436, %437 : vector<8x1xf32>
    %439 = vector.broadcast %431 : vector<8x1xf32> to vector<8x32xf32>
    %440 = arith.subf %423, %439 : vector<8x32xf32>
    %cst_160 = arith.constant 9.99999974E-6 : f32
    %441 = vector.broadcast %cst_160 : f32 to vector<8x1xf32>
    %442 = arith.addf %438, %441 : vector<8x1xf32>
    %443 = math.rsqrt %442 : vector<8x1xf32>
    %444 = vector.broadcast %443 : vector<8x1xf32> to vector<8x32xf32>
    %445 = arith.mulf %440, %444 : vector<8x32xf32>
    %446 = vector.broadcast %425 : vector<1x32xf32> to vector<8x32xf32>
    %447 = arith.mulf %445, %446 : vector<8x32xf32>
    %448 = vector.broadcast %427 : vector<1x32xf32> to vector<8x32xf32>
    %449 = arith.addf %447, %448 : vector<8x32xf32>
    %c0_161 = arith.constant 0 : index
    %c0_162 = arith.constant 0 : index
    %c0_163 = arith.constant 0 : index
    %450 = vector.load %arg18[%c0_161, %c0_162, %c0_163] : memref<1x8x32xf32, #tpu.memory_space<vmem>>, vector<1x8x32xf32>
    %451 = vector.shape_cast %450 : vector<1x8x32xf32> to vector<8x32xf32>
    %452 = vector.shape_cast %449 : vector<8x32xf32> to vector<1x8x32xf32>
    tpu.vector_store %arg18[%c0_161, %c0_162, %c0_163], %452 {strides = array<i32>} : memref<1x8x32xf32, #tpu.memory_space<vmem>>, vector<1x8x32xf32>,
    return
  }
  func.func @transform_0(%arg0: i32) -> (i32, i32, i32) {
    %c0_i32 = arith.constant 0 : i32
    %c0_i32_0 = arith.constant 0 : i32
    %c0_i32_1 = arith.constant 0 : i32
    return %arg0, %c0_i32, %c0_i32_0 : i32, i32, i32
  }
  func.func @transform_1(%arg0: i32) -> (i32, i32, i32) {
    %c0_i32 = arith.constant 0 : i32
    %c0_i32_0 = arith.constant 0 : i32
    %c0_i32_1 = arith.constant 0 : i32
    return %arg0, %c0_i32, %c0_i32_0 : i32, i32, i32
  }
  func.func @transform_2(%arg0: i32) -> (i32, i32, i32) {
    %c0_i32 = arith.constant 0 : i32
    %c0_i32_0 = arith.constant 0 : i32
    %c0_i32_1 = arith.constant 0 : i32
    %c0_i32_2 = arith.constant 0 : i32
    return %c0_i32, %c0_i32_0, %c0_i32_1 : i32, i32, i32
  }
  func.func @transform_3(%arg0: i32) -> (i32, i32, i32) {
    %c0_i32 = arith.constant 0 : i32
    %c0_i32_0 = arith.constant 0 : i32
    %c0_i32_1 = arith.constant 0 : i32
    %c0_i32_2 = arith.constant 0 : i32
    return %c0_i32, %c0_i32_0, %c0_i32_1 : i32, i32, i32
  }
  func.func @transform_4(%arg0: i32) -> (i32, i32, i32) {
    %c0_i32 = arith.constant 0 : i32
    %c0_i32_0 = arith.constant 0 : i32
    %c0_i32_1 = arith.constant 0 : i32
    %c0_i32_2 = arith.constant 0 : i32
    return %c0_i32, %c0_i32_0, %c0_i32_1 : i32, i32, i32
  }
  func.func @transform_5(%arg0: i32) -> (i32, i32, i32) {
    %c0_i32 = arith.constant 0 : i32
    %c0_i32_0 = arith.constant 0 : i32
    %c0_i32_1 = arith.constant 0 : i32
    %c0_i32_2 = arith.constant 0 : i32
    return %c0_i32, %c0_i32_0, %c0_i32_1 : i32, i32, i32
  }
  func.func @transform_6(%arg0: i32) -> (i32, i32, i32) {
    %c0_i32 = arith.constant 0 : i32
    %c0_i32_0 = arith.constant 0 : i32
    %c0_i32_1 = arith.constant 0 : i32
    %c0_i32_2 = arith.constant 0 : i32
    return %c0_i32, %c0_i32_0, %c0_i32_1 : i32, i32, i32
  }
  func.func @transform_7(%arg0: i32) -> (i32, i32, i32) {
    %c0_i32 = arith.constant 0 : i32
    %c0_i32_0 = arith.constant 0 : i32
    %c0_i32_1 = arith.constant 0 : i32
    %c0_i32_2 = arith.constant 0 : i32
    return %c0_i32, %c0_i32_0, %c0_i32_1 : i32, i32, i32
  }
  func.func @transform_8(%arg0: i32) -> (i32, i32, i32) {
    %c0_i32 = arith.constant 0 : i32
    %c0_i32_0 = arith.constant 0 : i32
    %c0_i32_1 = arith.constant 0 : i32
    %c0_i32_2 = arith.constant 0 : i32
    return %c0_i32, %c0_i32_0, %c0_i32_1 : i32, i32, i32
  }
  func.func @transform_9(%arg0: i32) -> (i32, i32, i32) {
    %c0_i32 = arith.constant 0 : i32
    %c0_i32_0 = arith.constant 0 : i32
    %c0_i32_1 = arith.constant 0 : i32
    %c0_i32_2 = arith.constant 0 : i32
    return %c0_i32, %c0_i32_0, %c0_i32_1 : i32, i32, i32
  }
  func.func @transform_10(%arg0: i32) -> (i32, i32, i32) {
    %c0_i32 = arith.constant 0 : i32
    %c0_i32_0 = arith.constant 0 : i32
    %c0_i32_1 = arith.constant 0 : i32
    %c0_i32_2 = arith.constant 0 : i32
    return %c0_i32, %c0_i32_0, %c0_i32_1 : i32, i32, i32
  }
  func.func @transform_11(%arg0: i32) -> (i32, i32, i32) {
    %c0_i32 = arith.constant 0 : i32
    %c0_i32_0 = arith.constant 0 : i32
    %c0_i32_1 = arith.constant 0 : i32
    %c0_i32_2 = arith.constant 0 : i32
    return %c0_i32, %c0_i32_0, %c0_i32_1 : i32, i32, i32
  }
  func.func @transform_12(%arg0: i32) -> (i32, i32, i32) {
    %c0_i32 = arith.constant 0 : i32
    %c0_i32_0 = arith.constant 0 : i32
    %c0_i32_1 = arith.constant 0 : i32
    %c0_i32_2 = arith.constant 0 : i32
    return %c0_i32, %c0_i32_0, %c0_i32_1 : i32, i32, i32
  }
  func.func @transform_13(%arg0: i32) -> (i32, i32, i32) {
    %c0_i32 = arith.constant 0 : i32
    %c0_i32_0 = arith.constant 0 : i32
    %c0_i32_1 = arith.constant 0 : i32
    %c0_i32_2 = arith.constant 0 : i32
    return %c0_i32, %c0_i32_0, %c0_i32_1 : i32, i32, i32
  }
  func.func @transform_14(%arg0: i32) -> (i32, i32, i32) {
    %c0_i32 = arith.constant 0 : i32
    %c0_i32_0 = arith.constant 0 : i32
    %c0_i32_1 = arith.constant 0 : i32
    %c0_i32_2 = arith.constant 0 : i32
    return %c0_i32, %c0_i32_0, %c0_i32_1 : i32, i32, i32
  }
  func.func @transform_15(%arg0: i32) -> (i32, i32, i32) {
    %c0_i32 = arith.constant 0 : i32
    %c0_i32_0 = arith.constant 0 : i32
    %c0_i32_1 = arith.constant 0 : i32
    %c0_i32_2 = arith.constant 0 : i32
    return %c0_i32, %c0_i32_0, %c0_i32_1 : i32, i32, i32
  }
  func.func @transform_16(%arg0: i32) -> (i32, i32, i32) {
    %c0_i32 = arith.constant 0 : i32
    %c0_i32_0 = arith.constant 0 : i32
    %c0_i32_1 = arith.constant 0 : i32
    %c0_i32_2 = arith.constant 0 : i32
    return %c0_i32, %c0_i32_0, %c0_i32_1 : i32, i32, i32
  }
  func.func @transform_17(%arg0: i32) -> (i32, i32, i32) {
    %c0_i32 = arith.constant 0 : i32
    %c0_i32_0 = arith.constant 0 : i32
    %c0_i32_1 = arith.constant 0 : i32
    return %arg0, %c0_i32, %c0_i32_0 : i32, i32, i32
  }
}

</mosaic_0001>

<bundles_post_ra>
// kernel: decoder_forward.1
= control target key start
LH: loop header
LB: loop body
LE: loop exit
PB: predicated region body
PF: predicated region fallthrough
CT: control target
= control target key end

     0   :  { %s7100_s0 = inlined_call_operand.hbm [shape: f32[2,8,32], index: 0, kind: input, shape index: {}]   ;;  %s7101_s1 = inlined_call_operand.hbm [shape: f32[2,16,32], index: 1, kind: input, shape index: {}]   ;;  %s7102_s2 = inlined_call_operand.vmem [shape: f32[2,32,96], index: 2, kind: input, shape index: {}]   ;;  %s7103_s3 = inlined_call_operand.vmem [shape: f32[2,32,32], index: 3, kind: input, shape index: {}]   ;;  %s7104_s4 = inlined_call_operand.vmem [shape: f32[2,1,32], index: 4, kind: input, shape index: {}]   ;;  %s7105_s5 = inlined_call_operand.vmem [shape: f32[2,1,32], index: 5, kind: input, shape index: {}]   ;;  %s7106_s6 = inlined_call_operand.vmem [shape: f32[2,32,32], index: 6, kind: input, shape index: {}]   ;;  %s7107_s7 = inlined_call_operand.vmem [shape: f32[2,32,64], index: 7, kind: input, shape index: {}]   ;;  %s7108_s8 = inlined_call_operand.vmem [shape: f32[2,32,32], index: 8, kind: input, shape index: {}]   ;;  %s7109_s9 = inlined_call_operand.hbm [shape: f32[2,1,32], index: 9, kind: input, shape index: {}]   ;;  %s7110_s10 = inlined_call_operand.hbm [shape: f32[2,1,32], index: 10, kind: input, shape index: {}]   ;;  %s7111_s11 = inlined_call_operand.hbm [shape: f32[2,32,128], index: 11, kind: input, shape index: {}]   ;;  %s7112_s12 = inlined_call_operand.vmem [shape: f32[2,1,128], index: 12, kind: input, shape index: {}]   ;;  %s7113_s13 = inlined_call_operand.vmem [shape: f32[2,128,32], index: 13, kind: input, shape index: {}]   ;;  %s7114_s14 = inlined_call_operand.vmem [shape: f32[2,1,32], index: 14, kind: input, shape index: {}]   ;;  %s7115_s15 = inlined_call_operand.vmem [shape: f32[2,1,32], index: 15, kind: input, shape index: {}]   ;;  %s7116_s16 = inlined_call_operand.vmem [shape: f32[2,1,32], index: 16, kind: input, shape index: {}]   ;;  %s7117_s17 = inlined_call_operand.hbm [shape: f32[2,8,32], index: 17, kind: output, shape index: {}]  }
   0x1   :  { %7144 = sst [smem:[#allocation23_spill]] %s7100_s0 }
   0x2   :  { %7145 = sst [smem:[#allocation24_spill]] %s7101_s1 }
   0x3   :  { %7146 = sst [smem:[#allocation25_spill]] %s7109_s9 }
   0x4   :  { %7147 = sst [smem:[#allocation26_spill]] %s7110_s10 }
   0x5   :  { %7148 = sst [smem:[#allocation27_spill]] %s7111_s11 }
   0x6   :  { %7149 = sst [smem:[#allocation28_spill]] %s7116_s16 }
   0x7   :  { %7150 = sst [smem:[#allocation29_spill]] %s7117_s17 }
   0x8   :  { %22 = vsyncpa [#allocation3], 0 }
   0x9   :  { %24 = vsyncpa [#allocation3 + $0x1], 0 }
   0xa   :  { %25 = vsyncpa [#allocation6], 0 }
   0xb   :  { %27 = vsyncpa [#allocation6 + $0x1], 0 }
   0xc   :  { %28 = vsyncpa [#allocation9], 0 }
   0xd   :  { %29 = vsyncpa [#allocation4], 0 }
   0xe   :  { %31 = vsyncpa [#allocation4 + $0x1], 0  ;;  %s6116_s24 = smov 0   ;;  %s6118_s25 = smov 0  }
   0xf   :  { %s6120_s26 = smov 0   ;;  %s6122_s27 = smov 0  }
  0x10 LB: > { %7151 = sst [smem:[#allocation17_spill]] %s5992_s24  ;;  %s6137_s28 = sadd.s32 4294967295, %s6004_s27   ;;  %s6004_s27 = sphi %s6122_s27, %s7190_s27   ;;  %s6000_s26 = sphi %s6120_s26, %s7192_s26   ;;  %s5996_s25 = sphi %s6118_s25, %s7194_s25   ;;  %s5992_s24 = sphi %s6116_s24, %s7193_s24  }
  0x11   : > { %7152 = sst [smem:[#allocation18_spill]] %s6000_s26  ;;  %s4900_s29 = sadd.s32 4294967294, %s6004_s27  }
  0x12   : > { %p57_p0 = scmp.ne.s32.totalorder %s5996_s25, %s5992_s24  ;;  %p7123_p1 = scmp.eq.s32.totalorder %s6137_s28, 0 }
  0x13   : > { %p428_p3 = scmp.eq.s32.totalorder %s4900_s29, 1  ;;  %p4901_p5 = scmp.ge.s32.totalorder %s6004_s27, 1 }
  0x14   : > { %p6146_p4 = por %p7123_p1, %p57_p0  ;;  %p435_p7 = scmp.lt.s32.totalorder %s6004_s27, 3 }
  0x15   : > { %p6151_p6 = por %p428_p3, %p57_p0  ;;  %s6006_s19 = smov [#allocation7]  }
  0x16   : > { %s7153_s0 = scalar_select %p6146_p4, 1, 0 }
  0x17   : > { %s7154_s30 = scalar_select %p6151_p6, 1, 0 }
  0x18   : > { %p6156_p8 = pnand %p4901_p5, %p435_p7  ;;  %s468_s1 = sshll.u32 %s6006_s19, 4  ;;  %s469_s1 = int_to_ptr.vmem [resolvable:$true] %s468_s1 }
  0x19   : > { %7155 = sst [smem:[#allocation19_spill]] %s7154_s30  ;;  %s6007_s21 = smov [#allocation8]  }
  0x1a   : > { %s7156_s18 = scalar_select %p6156_p8, 1, 0 }
  0x1b   : > { %p5639_p9 = pneg %p6156_p8  ;;  %s481_s22 = sshll.u32 %s6007_s21, 4  ;;  %s482_s22 = int_to_ptr.vmem [resolvable:$true] %s481_s22 }
  0x1c   : > { %s6008_s23 = smov [#allocation10]   ;;  %s5805_s30 = scalar_lea.vmem %s469_s1, 32 }
  0x1d   : > { %p6165_p11 = pnand %p5639_p9, %p7123_p1  ;;  %s494_s29 = sshll.u32 %s6008_s23, 4  ;;  %s495_s29 = int_to_ptr.vmem [resolvable:$true] %s494_s29 }
  0x1e   : > { %p5806_p13 = scmp.ne.s32.totalorder %s469_s1, %s5805_s30  ;;  %p5813_p5 = scmp.lt.s32.totalorder %s469_s1, %s469_s1 }
  0x1f   : > { %p5796_p12 = pneg %p6165_p11  ;;  %p5814_p7 = scmp.lt.s32.totalorder %s5805_s30, %s5805_s30 }
  0x21   : > { %p5808_p0 = pnand %p5806_p13, %p5796_p12  ;;  %p5815_p9 = por %p5814_p7, %p5813_p5 }
  0x23   : > { %p5809_p3 = pneg %p5808_p0 }
  0x25   : > { %p5816_p10 = pnand %p5815_p9, %p5809_p3 }
  0x27   : > { %5819 = shalt.err (!%p5816_p10)
}
  0x28   : > { %s6009_s19 = smov 16   ;;  %s6010_s21 = smov 1  }
  0x29   : > { %s7158_s9 = sld [smem:[#allocation25_spill]]  ;;  %s5831_s17 = scalar_lea.vmem %s482_s22, 32 }
  0x2a   : > { %p5832_p1 = scmp.ne.s32.totalorder %s482_s22, %s5831_s17  ;;  %p5839_p2 = scmp.lt.s32.totalorder %s482_s22, %s482_s22 }
  0x2b   : > { %p5840_p6 = scmp.lt.s32.totalorder %s5831_s17, %s5831_s17 }
  0x2c   : > { %p5834_p13 = pnand %p5832_p1, %p5796_p12 }
  0x2d   : > { %p5841_p5 = por %p5840_p6, %p5839_p2 }
  0x2e   : > { %p5835_p0 = pneg %p5834_p13 }
  0x2f   : > { %5642 = dma.hbm_to_vmem [thread:$0]  (!%p6165_p11), %s7158_s9, 32, %s469_s1, [#allocation6], %s6009_s19, %s6009_s19, %s6010_s21  }
  0x30   : > { %p5842_p3 = pnand %p5841_p5, %p5835_p0 }
  0x32   : > { %5845 = shalt.err (!%p5842_p3)
}
  0x33   : > { %s7159_s10 = sld [smem:[#allocation26_spill]]  ;;  %s5857_s24 = scalar_lea.vmem %s495_s29, 1024 }
  0x34   : > { %p5858_p10 = scmp.ne.s32.totalorder %s495_s29, %s5857_s24  ;;  %p5865_p9 = scmp.lt.s32.totalorder %s495_s29, %s495_s29 }
  0x35   : > { %p5866_p13 = scmp.lt.s32.totalorder %s5857_s24, %s5857_s24 }
  0x36   : > { %p5860_p7 = pnand %p5858_p10, %p5796_p12 }
  0x37   : > { %p5867_p4 = por %p5866_p13, %p5865_p9 }
  0x38   : > { %p5861_p1 = pneg %p5860_p7 }
  0x39   : > { %5645 = dma.hbm_to_vmem [thread:$0]  (!%p6165_p11), %s7159_s10, 32, %s482_s22, [#allocation9], %s6009_s19, %s6009_s19, %s6010_s21  }
  0x3a   : > { %p5868_p2 = pnand %p5867_p4, %p5861_p1 }
  0x3c   : > { %5871 = shalt.err (!%p5868_p2)
}
  0x3d   : > { %s7126_s17 = smov 128   ;;  %s7127_s16 = smov 8  }
  0x3e   : > { %s7160_s11 = sld [smem:[#allocation27_spill]]  ;;  %s6199_s19 = sadd.s32 1, %s6004_s27  }
  0x3f   : > { %7161 = sst [smem:[#allocation20_spill]] %s6199_s19  ;;  %s41_s21 = ssub.s32 %s6004_s27, %s6199_s19 }
  0x40   : > { %s44_s23 = sadd.s32 1, %s6000_s26  ;;  %p42_p4 = scmp.eq.s32.totalorder %s41_s21, 0 }
  0x41   : > { %p51_p6 = scmp.ne.s32.totalorder %s6000_s26, %s5996_s25  ;;  %p52_p12 = scmp.eq.s32.totalorder %s6004_s27, 0 }
  0x42   : > { %p5663_p0 = scmp.lt.s32.totalorder %s6004_s27, 2  ;;  %p7163_p3 = scmp.eq.s32.totalorder %s6137_s28, 1 }
  0x43   : > { %s6209_s30 = scalar_select %p42_p4, %s6000_s26, %s44_s23  }
  0x44   : > { %5648 = dma.hbm_to_vmem [thread:$0]  (!%p6165_p11), %s7160_s11, 1024, %s495_s29, [#allocation9], %s7126_s17, %s7126_s17, %s7127_s16  }
  0x45   : > { %7162 = sst [smem:[#allocation21_spill]] %s6209_s30  ;;  %p53_p5 = por %p52_p12, %p51_p6 }
  0x46   : > { %p6213_p10 = por %p7163_p3, %p51_p6  ;;  %s6218_s24 = sand.u32 1, %s6000_s26  }
  0x47   : > { %s4907_s29 = sshll.u32 %s6004_s27, 7  ;;  %s4906_s1 = sshll.u32 %s6218_s24, 3 }
  0x48   : > { %s7164_s20 = scalar_select %p6213_p10, 1, 0 }
  0x49   : > { %s7166_s17 = sld [smem:[#allocation23_spill]]  ;;  %s527_s23 = scalar_lea.vmem [#allocation2], %s4906_s1 }
  0x4a   : > { %7165 = sst [smem:[#allocation22_spill]] %s7164_s20  ;;  %s534_s9 = sshll.u32 %s527_s23, 4  ;;  %s535_s9 = int_to_ptr.vmem [resolvable:$true] %s534_s9 }
  0x4b   : > { %p6227_p11 = pnand %p5663_p0, %p53_p5  ;;  %s4908_s11 = sshll.u32 %s6218_s24, 4 }
  0x4c   : > { %s524_s30 = scalar_lea.sflag [#allocation3], %s6218_s24 }
  0x4d   : > { %p5874_p1 = pneg %p6227_p11 }
  0x4f   : > { %s6225_s16 = scalar_lea.hbm %s7166_s17, %s4907_s29  ;;  %s5877_s22 = scalar_lea.hbm %s7166_s17, 256 }
  0x50   : > { %s5872_s26 = scalar_lea.hbm %s6225_s16, 128  ;;  %p5878_p2 = scmp.lt.s32.totalorder %s6225_s16, %s7166_s17 }
  0x51   : > { %p5873_p7 = scmp.ne.s32.totalorder %s6225_s16, %s5872_s26  ;;  %p5879_p4 = scmp.lt.s32.totalorder %s5877_s22, %s5872_s26 }
  0x53   : > { %p5875_p9 = pnand %p5874_p1, %p5873_p7  ;;  %p5880_p6 = por %p5879_p4, %p5878_p2 }
  0x55   : > { %p5876_p13 = pneg %p5875_p9 }
  0x57   : > { %p5881_p12 = pnand %p5880_p6, %p5876_p13 }
  0x59   : > { %5884 = shalt.err (!%p5881_p12)
}
  0x5a   : > { %s5885_s24 = scalar_lea.vmem %s535_s9, 128  ;;  %s6013_s19 = smov [#allocation2]  }
  0x5b   : > { %p5886_p0 = scmp.ne.s32.totalorder %s535_s9, %s5885_s24  ;;  %s5890_s20 = sshll.u32 %s6013_s19, 4  ;;  %s5891_s20 = int_to_ptr.vmem [resolvable:$false] %s5890_s20 }
  0x5c   : > { %s5892_s29 = scalar_lea.vmem %s5891_s20, 256  ;;  %p5893_p7 = scmp.lt.s32.totalorder %s535_s9, %s5891_s20 }
  0x5d   : > { %p5888_p5 = pnand %p5886_p0, %p5874_p1  ;;  %p5894_p9 = scmp.lt.s32.totalorder %s5892_s29, %s5885_s24 }
  0x5f   : > { %p5889_p3 = pneg %p5888_p5  ;;  %p5895_p10 = por %p5894_p9, %p5893_p7 }
  0x61   : > { %p5896_p8 = pnand %p5895_p10, %p5889_p3 }
  0x63   : > { %5899 = shalt.err (!%p5896_p8)
}
  0x64   : > { %5652 = dma.hbm_to_vmem [thread:$0]  (!%p6227_p11), %s6225_s16, 128, %s535_s9, %s524_s30  }
  0x65   : > { %s545_s26 = scalar_lea.vmem [#allocation5], %s4908_s11  ;;  %s541_s22 = sand.u32 1, %s6004_s27  }
  0x66   : > { %s552_s1 = sshll.u32 %s545_s26, 4  ;;  %s5050_s19 = sshll.u32 %s6004_s27, 8  ;;  %s6254_s1 = int_to_ptr.vmem [resolvable:$true] %s552_s1 }
  0x67   : > { %s7168_s20 = sld [smem:[#allocation24_spill]]  ;;  %s542_s29 = scalar_lea.sflag [#allocation6], %s541_s22 }
  0x6d   : > { %s6260_s24 = scalar_lea.hbm %s7168_s20, %s5050_s19  ;;  %s5905_s16 = scalar_lea.hbm %s7168_s20, 512 }
  0x6e   : > { %s5900_s17 = scalar_lea.hbm %s6260_s24, 256  ;;  %p5906_p2 = scmp.lt.s32.totalorder %s6260_s24, %s7168_s20 }
  0x6f   : > { %p5901_p8 = scmp.ne.s32.totalorder %s6260_s24, %s5900_s17  ;;  %p5907_p4 = scmp.lt.s32.totalorder %s5905_s16, %s5900_s17 }
  0x71   : > { %p5903_p10 = pnand %p5901_p8, %p5874_p1  ;;  %p5908_p6 = por %p5907_p4, %p5906_p2 }
  0x73   : > { %p5904_p13 = pneg %p5903_p10 }
  0x75   : > { %p5909_p12 = pnand %p5908_p6, %p5904_p13 }
  0x77   : > { %5912 = shalt.err (!%p5909_p12)
}
  0x78   : > { %s5913_s22 = scalar_lea.vmem %s6254_s1, 256  ;;  %s6014_s19 = smov [#allocation5]  }
  0x79   : > { %p5914_p0 = scmp.ne.s32.totalorder %s6254_s1, %s5913_s22  ;;  %s5918_s21 = sshll.u32 %s6014_s19, 4  ;;  %s5919_s21 = int_to_ptr.vmem [resolvable:$false] %s5918_s21 }
  0x7a   : > { %s5920_s23 = scalar_lea.vmem %s5919_s21, 512  ;;  %p5921_p7 = scmp.lt.s32.totalorder %s6254_s1, %s5919_s21 }
  0x7b   : > { %p5916_p5 = pnand %p5914_p0, %p5874_p1  ;;  %p5922_p9 = scmp.lt.s32.totalorder %s5920_s23, %s5913_s22 }
  0x7d   : > { %p5917_p3 = pneg %p5916_p5  ;;  %p5923_p8 = por %p5922_p9, %p5921_p7 }
  0x7f   : > { %p5924_p10 = pnand %p5923_p8, %p5917_p3 }
  0x81   : > { %5927 = shalt.err (!%p5924_p10)
}
  0x82   : > { %s7169_s17 = smov 8   ;;  %s7170_s9 = smov 128  }
  0x83   : > { %5655 = dma.hbm_to_vmem [thread:$0]  (!%p6227_p11), %s6260_s24, 256, %s6254_s1, %s542_s29, %s7170_s9, %s7170_s9, %s7169_s17  }
  0x84   : > { %p7171_p1 = scmp.ne.s32.totalorder %s7156_s18, 0 }
  0x85   : > { %s6290_s11 = sand.u32 (!%p7171_p1), 1, %s5996_s25   ;;  %p7172_p13 = scmp.ne.s32.totalorder (!%p7171_p1), %s7153_s0, 0 }
  0x86   : > { %564 = sbr.rel (%p7171_p1) target bundleno = 8359 (0x20a7), region = 88  ;;  %s7136_s16 = sshll.u32 (!%p7171_p1), %s6290_s11, 3 }
  0x87   : > { %s567_s30 = scalar_lea.sflag (!%p7171_p1), [#allocation3], %s6290_s11  ;;  %s570_s10 = scalar_lea.vmem (!%p7171_p1), [#allocation2], %s7136_s16 }
  0x8b   : > { %5971 = dma.done.wait (%p7172_p13), %s567_s30, 128  }
  0x8c   : > { %5973 = vsyncadd (%p7172_p13), %s567_s30, 4294967168  ;;  %s575_s18 = sand.u32 1, %s6137_s28   ;;  %s4913_s1 = sshll.u32 %s6290_s11, 4 }
  0x8d   : > { %s576_s24 = scalar_lea.sflag [#allocation6], %s575_s18  ;;  %s6302_s29 = scalar_lea.vmem [#allocation5], %s4913_s1 }
  0x8e   : > { %5975 = dma.done.wait (%p7172_p13), %s576_s24, 256  }
  0x8f   : > { %5977 = vsyncadd (%p7172_p13), %s576_s24, 4294967040  ;;  %p7173_p11 = scmp.eq.s32.totalorder %s6137_s28, 0 }
  0x91   : > { %5979 = dma.done.wait (%p7173_p11), [#allocation6], 32   ;;  %p7174_p2 = pmov %p7173_p11 }
  0x93   : > { %5981 = vsyncadd (%p7174_p2), [#allocation6], 4294967264  ;;  %p7175_p4 = pmov %p7174_p2 }
  0x94   : > { %p7176_p6 = pmov %p7174_p2 }
  0x95   : > { %5983 = dma.done.wait (%p7175_p4), [#allocation9], 1056  }
  0x96   : > { %5985 = vsyncadd (%p7176_p6), [#allocation9], 4294966240  ;;  %v6015_v0 = vmov 0.0   ;;  %vm6016_vm0 = vmmov 0   ;;  %v659_v1 = vld [vmem:[%s7102_s2 + $0x18] sm:$0xff]  ;;  %v658_v2 = vld [vmem:[%s7102_s2 + $0x10] sm:$0xff]  ;;  %v650_v15 = vlaneseq }
  0x97   : > { %5227 = vmatprep.subr.mxu1 %v6015_v0  ;;  %5235 = vmatprep.mubr.msk.f32.mxu1 %vm6016_vm0, %v6015_v0  ;;  %v657_v3 = vld [vmem:[%s7102_s2 + $0x8] sm:$0xff]  ;;  %v656_v4 = vld [vmem:[%s7102_s2] sm:$0xff]  ;;  %vm660_vm1 = vcmask 261120   ;;  %s6017_s30 = smov 104   ;;  %s6019_s18 = smov 96   ;;  %vm743_vm2 = vcmask 64512  }
  0x98   : > { %5248 = vmatprep.subr.mxu0 %v6015_v0  ;;  %5250 = vmatprep.mubr.msk.f32.mxu0 %vm6016_vm0, %v6015_v0  ;;  %v6336_v5 = vld [vmem:[%s570_s10] sm:$0xff]  ;;  %s6018_s10 = smov 120   ;;  %s6020_s1 = smov 112   ;;  %v651_v16 = vshrl.u32 %v650_v15, 7  ;;  %v653_v17 = vand.u32 127, %v650_v15  ;;  %vm1415_vm4 = vcmask 130048  }
  0x99   : > { %5228 = vmatpush3.msra.mxu1 %v659_v1  ;;  %s7137_s24 = smov 64   ;;  %s7143_s0 = smov 8   ;;  %vm1417_vm5 = vcmask 195584  }
  0x9a   : > { %5229 = vmatprep.subr.mxu1 %v6015_v0  ;;  %vm654_vm3 = vcmp.gt.s32.totalorder %v653_v17, %v651_v16  ;;  %v1421_v16 = vld [vmem:[%s7103_s3 + $0x10] sm:$0xff]  ;;  %v1420_v17 = vld [vmem:[%s7103_s3 + $0x8] sm:$0xff]  ;;  %s7141_s26 = smov 24   ;;  %s7139_s22 = smov 16  }
  0x9b   : > { %5230 = vmatpush3.msra.mxu1 %v658_v2  ;;  %v6387_v19 = vsel %vm654_vm3, -1e+30, %v6015_v0  ;;  %s7179_s21 = smov 64   ;;  %s7180_s16 = smov 24  }
  0x9c   : > { %5231 = vmatprep.subr.mxu1 %v6015_v0  ;;  %s7181_s9 = smov 8   ;;  %s6025_s17 = smov [#allocation11]  }
  0x9d   : > { %5232 = vmatpush3.msra.mxu1 %v657_v3 }
  0x9e   : > { %5233 = vmatprep.subr.mxu1 %v6015_v0 }
  0x9f   : > { %5234 = vmatpush3.msra.mxu1 %v656_v4 }
  0xa0   : > { %5236 = vmatmul.mubr.msk.f32.vlgmr.msra.gmra.mxu1 %vm660_vm1, %v6336_v5  ;;  %5238 = vmatprep.subr.mxu1 %v6015_v0 }
  0xa1   : > { %5240 = vmatprep.mubr.msk.f32.mxu1 %vm6016_vm0, %v6015_v0 }
 0x160   : > { %v6344_v6 = vpop.f32.mrf.mxu1 }
 0x161   : > { %739 = vrot.lane.b32.xlu1 %v6344_v6, %s6017_s30  ;;  %735 = vrot.lane.b32.xlu0 %v6344_v6, %s6018_s10 }
 0x162   : > { %v5237_v7 = vpop.f32.mrf.mxu1 }
 0x165   : > { %741 = vrot.lane.b32.xlu1 %v6344_v6, %s6019_s18  ;;  %737 = vrot.lane.b32.xlu0 %v6344_v6, %s6020_s1 }
 0x1d3   : > { %v6354_v8 = vpop.permute.xlu1 %739  ;;  %v736_v9 = vpop.permute.xlu0 %735 }
 0x1d4   : > { %818 = vrot.lane.b32.xlu0 %v736_v9, %s6019_s18 }
 0x1d7   : > { %v742_v10 = vpop.permute.xlu1 %741  ;;  %v6357_v11 = vpop.permute.xlu0 %737 }
 0x1d8   : > { %5239 = vmatpush3.xpose.msk.msra.mxu1 %vm743_vm2, %v742_v10  ;;  %970 = vrot.lane.b32.xlu0 %v6354_v8, %s6019_s18 }
 0x1d9   : > { %894 = vrot.lane.b32.xlu1 %v6357_v11, %s6019_s18  ;;  %5243 = vmatprep.subr.mxu1 %v6015_v0 }
 0x1db   : > { %5241 = vmatmul.mubr.msk.f32.vlgmr.msra.gmra.mxu1 %vm743_vm2, %v6344_v6 }
 0x1dc   : > { %5245 = vmatprep.mubr.msk.f32.mxu1 %vm6016_vm0, %v6015_v0 }
 0x246   : > { %v819_v12 = vpop.permute.xlu0 %818 }
 0x247   : > { %5244 = vmatpush3.xpose.msk.msra.mxu1 %vm743_vm2, %v819_v12 }
 0x248   : > { %5253 = vmatprep.subr.mxu1 %v6015_v0 }
 0x24a   : > { %5246 = vmatmul.mubr.msk.f32.vlgmr.msra.gmra.mxu1 %vm743_vm2, %v736_v9  ;;  %v971_v13 = vpop.permute.xlu0 %970 }
 0x24b   : > { %v895_v14 = vpop.permute.xlu1 %894  ;;  %5254 = vmatpush3.xpose.msk.msra.mxu1 %vm743_vm2, %v971_v13  ;;  %5255 = vmatprep.mubr.msk.f32.mxu1 %vm6016_vm0, %v6015_v0  ;;  %v1422_v13 = vld [vmem:[%s7103_s3 + $0x18] sm:$0xff] }
 0x24c   : > { %5249 = vmatpush3.xpose.msk.msra.mxu0 %vm743_vm2, %v895_v14  ;;  %5263 = vmatprep.subr.mxu1 %v6015_v0 }
 0x24d   : > { %5258 = vmatprep.subr.mxu0 %v6015_v0 }
 0x24e   : > { %5256 = vmatmul.mubr.msk.f32.vlgmr.msra.gmra.mxu1 %vm743_vm2, %v6354_v8 }
 0x24f   : > { %5251 = vmatmul.mubr.msk.f32.vlgmr.msra.gmra.mxu0 %vm743_vm2, %v6357_v11  ;;  %5265 = vmatprep.mubr.msk.f32.mxu1 %vm6016_vm0, %v6015_v0 }
 0x250   : > { %5260 = vmatprep.mubr.msk.f32.mxu0 %vm6016_vm0, %v6015_v0 }
 0x29b   : > { %v814_v18 = vpop.f32.mrf.mxu1 }
 0x29c   : > { %v1046_v20 = vmul.f32 0.35355338, %v814_v18  ;;  %v1419_v18 = vld [vmem:[%s7103_s3] sm:$0xff] }
 0x29d   : > { %v5242_v21 = vpop.f32.mrf.mxu1 }
 0x29e   : > { %v1050_v22 = vadd.f32 %v1046_v20, %v6387_v19 }
 0x2a0   : > { %v1054_v23 = vsel %vm743_vm2, %v1050_v22, -inf }
 0x2a1   : > { %1055 = vmax.xlane.f32.xlu1 %v1054_v23 }
 0x30a   : > { %v890_v24 = vpop.f32.mrf.mxu1 }
 0x30b   : > { %v1047_v25 = vmul.f32 0.35355338, %v890_v24 }
 0x30c   : > { %v5247_v26 = vpop.f32.mrf.mxu1 }
 0x30d   : > { %v1051_v27 = vadd.f32 %v1047_v25, %v6387_v19 }
 0x30e   : > { %v1042_v28 = vpop.f32.mrf.mxu1 }
 0x30f   : > { %v966_v29 = vpop.f32.mrf.mxu0  ;;  %v1049_v30 = vmul.f32 0.35355338, %v1042_v28  ;;  %v1057_v31 = vsel %vm743_vm2, %v1051_v27, -inf }
 0x310   : > { %v1048_v32 = vmul.f32 0.35355338, %v966_v29  ;;  %1058 = vmax.xlane.f32.xlu0 %v1057_v31  ;;  %v5257_v33 = vpop.f32.mrf.mxu1 }
 0x311   : > { %v5252_v34 = vpop.f32.mrf.mxu0  ;;  %v1053_v35 = vadd.f32 %v1049_v30, %v6387_v19 }
 0x312   : > { %v1052_v36 = vadd.f32 %v1048_v32, %v6387_v19 }
 0x313   : > { %v1063_v37 = vsel %vm743_vm2, %v1053_v35, -inf }
 0x314   : > { %v1060_v38 = vsel %vm743_vm2, %v1052_v36, -inf  ;;  %1064 = vmax.xlane.f32.xlu1 %v1063_v37  ;;  %v1606_v37 = vld [vmem:[%s7107_s7 + $0x10] sm:$0xff] }
 0x315   : > { %1061 = vmax.xlane.f32.xlu0 %v1060_v38 }
 0x325   : > { %1174 = vrot.lane.b32.xlu1 %v736_v9, %s7137_s24 }
 0x32a   : > { %v1056_v39 = vpop.xlane.xlu1 %1055 }
 0x32b   : > { %1098 = vrot.lane.b32.xlu0 %v6344_v6, %s7137_s24  ;;  %v1066_v40 = vsub.f32 %v1050_v22, %v1056_v39 }
 0x32d   : > { %v1070_v41 = vmul.f32 1.442695, %v1066_v40 }
 0x32f   : > { %5717 = vpow2.f32 %v1070_v41 }
 0x33c   : > { %v5718_v42 = vpop.eup %5717 }
 0x33d   : > { %v1078_v43 = vsel %vm743_vm2, %v5718_v42, 0.0 }
 0x34a   : > { %1079 = vadd.xlane.f32.xlu0 %v1078_v43  ;;  %v1604_v43 = vld [vmem:[%s7107_s7] sm:$0xff] }
 0x399   : > { %v1059_v44 = vpop.xlane.xlu0 %1058 }
 0x39a   : > { %v1067_v45 = vsub.f32 %v1051_v27, %v1059_v44  ;;  %v6462_v44 = vld [vmem:[%s6302_s29] sm:$0xff] }
 0x39c   : > { %v1072_v46 = vmul.f32 1.442695, %v1067_v45  ;;  %v649_v45 = vld [vmem:[%s6302_s29 + $0x8] sm:$0xff] }
 0x39d   : > { %v1065_v47 = vpop.xlane.xlu1 %1064 }
 0x39e   : > { %5719 = vpow2.f32 %v1072_v46  ;;  %v1062_v48 = vpop.xlane.xlu0 %1061  ;;  %v1069_v49 = vsub.f32 %v1053_v35, %v1065_v47  ;;  %v1530_v46 = vld [vmem:[%s7106_s6 + $0x18] sm:$0xff]  ;;  %v1529_v47 = vld [vmem:[%s7106_s6 + $0x10] sm:$0xff] }
 0x39f   : > { %v1068_v50 = vsub.f32 %v1052_v36, %v1062_v48  ;;  %v1607_v36 = vld [vmem:[%s7107_s7 + $0x18] sm:$0xff]  ;;  %v1528_v48 = vld [vmem:[%s7106_s6 + $0x8] sm:$0xff] }
 0x3a0   : > { %v1076_v51 = vmul.f32 1.442695, %v1069_v49  ;;  %v1527_v49 = vld [vmem:[%s7106_s6] sm:$0xff] }
 0x3a1   : > { %v1074_v52 = vmul.f32 1.442695, %v1068_v50  ;;  %v1175_v53 = vpop.permute.xlu1 %1174 }
 0x3a2   : > { %5721 = vpow2.f32 %v1076_v51  ;;  %v1099_v54 = vpop.permute.xlu0 %1098  ;;  %5264 = vmatpush3.msra.mxu1 %v1175_v53 }
 0x3a3   : > { %5723 = vpow2.f32 %v1074_v52  ;;  %5259 = vmatpush3.msra.mxu0 %v1099_v54  ;;  %5273 = vmatprep.subr.mxu1 %v6015_v0  ;;  %v4932_v54 = vld [vmem:[%s7104_s4] ss:$0 sm:$0xff] }
 0x3a4   : > { %5268 = vmatprep.subr.mxu0 %v6015_v0 }
 0x3ab   : > { %v5720_v55 = vpop.eup %5719 }
 0x3ac   : > { %v1081_v56 = vsel %vm743_vm2, %v5720_v55, 0.0 }
 0x3ad   : > { %1082 = vadd.xlane.f32.xlu1 %v1081_v56  ;;  %v4933_v56 = vld [vmem:[%s7105_s5] ss:$0 sm:$0xff] }
 0x3af   : > { %v5722_v57 = vpop.eup %5721 }
 0x3b0   : > { %v5724_v58 = vpop.eup %5723  ;;  %v1087_v59 = vsel %vm743_vm2, %v5722_v57, 0.0 }
 0x3b1   : > { %v1084_v60 = vsel %vm743_vm2, %v5724_v58, 0.0  ;;  %1088 = vadd.xlane.f32.xlu1 %v1087_v59 }
 0x3b2   : > { %1085 = vadd.xlane.f32.xlu0 %v1084_v60 }
 0x3c2   : > { %1250 = vrot.lane.b32.xlu1 %v6357_v11, %s7137_s24 }
 0x3c8   : > { %1326 = vrot.lane.b32.xlu0 %v6354_v8, %s7137_s24  ;;  %s7177_s24 = smov 16  }
 0x3d3   : > { %v1080_v61 = vpop.xlane.xlu0 %1079 }
 0x3d4   : > { %5725 = vrcp.f32 %v1080_v61 }
 0x3e1   : > { %v5726_v62 = vpop.eup %5725 }
 0x3e2   : > { %v1094_v63 = vmul.f32 %v5726_v62, %v5718_v42  ;;  %v1605_v42 = vld [vmem:[%s7107_s7 + $0x8] sm:$0xff] }
 0x3e4   : > { %5261 = vmatmul.mubr.msk.f32.vlgmr.msra.gmra.mxu0 %vm743_vm2, %v1094_v63 }
 0x3e5   : > { %5270 = vmatprep.mubr.msk.f32.mxu0 %vm6016_vm0, %v6015_v0 }
 0x436   : > { %v1083_v1 = vpop.xlane.xlu1 %1082 }
 0x437   : > { %5727 = vrcp.f32 %v1083_v1 }
 0x43a   : > { %v1089_v2 = vpop.xlane.xlu1 %1088 }
 0x43b   : > { %v1086_v3 = vpop.xlane.xlu0 %1085  ;;  %5729 = vrcp.f32 %v1089_v2 }
 0x43c   : > { %5731 = vrcp.f32 %v1086_v3 }
 0x43e   : > { %v1251_v4 = vpop.permute.xlu1 %1250 }
 0x43f   : > { %5269 = vmatpush3.msra.mxu0 %v1251_v4  ;;  %v1327_v8 = vpop.permute.xlu0 %1326 }
 0x440   : > { %5300 = vmatprep.subr.mxu0 %v1607_v36 }
 0x444   : > { %v5728_v6 = vpop.eup %5727 }
 0x445   : > { %v1095_v7 = vmul.f32 %v5728_v6, %v5720_v55 }
 0x447   : > { %5266 = vmatmul.mubr.msk.f32.vlgmr.msra.gmra.mxu1 %vm743_vm2, %v1095_v7 }
 0x448   : > { %v5730_v9 = vpop.eup %5729  ;;  %5274 = vmatpush3.msra.mxu1 %v1327_v8  ;;  %5275 = vmatprep.mubr.msk.f32.mxu1 %vm6016_vm0, %v6015_v0 }
 0x449   : > { %v5732_v10 = vpop.eup %5731  ;;  %v1097_v11 = vmul.f32 %v5730_v9, %v5722_v57  ;;  %5278 = vmatprep.subr.mxu1 %v6015_v0 }
 0x44a   : > { %v1096_v12 = vmul.f32 %v5732_v10, %v5724_v58 }
 0x44b   : > { %5276 = vmatmul.mubr.msk.f32.vlgmr.msra.gmra.mxu1 %vm743_vm2, %v1097_v11 }
 0x44c   : > { %5271 = vmatmul.mubr.msk.f32.vlgmr.msra.gmra.mxu0 %vm743_vm2, %v1096_v12  ;;  %5286 = vmatprep.mubr.msk.f32.mxu1 %vm6016_vm0, %v6015_v0 }
 0x44d   : > { %5279 = vmatpush3.msra.mxu1 %v1422_v13  ;;  %5301 = vmatpush3.msra.mxu0 %v1607_v36 }
 0x44e   : > { %5280 = vmatprep.subr.mxu1 %v6015_v0  ;;  %5302 = vmatprep.subr.mxu0 %v1606_v37 }
 0x44f   : > { %5281 = vmatpush3.msra.mxu1 %v1421_v16  ;;  %5303 = vmatpush3.msra.mxu0 %v1606_v37 }
 0x450   : > { %5282 = vmatprep.subr.mxu1 %v6015_v0  ;;  %5304 = vmatprep.subr.mxu0 %v1605_v42 }
 0x451   : > { %5283 = vmatpush3.msra.mxu1 %v1420_v17  ;;  %5305 = vmatpush3.msra.mxu0 %v1605_v42 }
 0x452   : > { %5284 = vmatprep.subr.mxu1 %v6015_v0  ;;  %5306 = vmatprep.subr.mxu0 %v1604_v43 }
 0x453   : > { %5285 = vmatpush3.msra.mxu1 %v1419_v18  ;;  %5307 = vmatpush3.msra.mxu0 %v1604_v43 }
 0x454   : > { %5289 = vmatprep.subr.mxu1 %v6015_v0  ;;  %5308 = vmatprep.mubr.msk.f32.mxu0 %vm660_vm1, %v6462_v44 }
 0x455   : > { %5309 = vmatmul.mubr.msk.f32.vlgmr.msra.gmra.mxu0 %vm660_vm1, %v649_v45  ;;  %5318 = vmatprep.subr.mxu0 %v6015_v0 }
 0x456   : > { %5322 = vmatprep.mubr.msk.f32.mxu0 %vm6016_vm0, %v6015_v0 }
 0x4a4   : > { %v1170_v14 = vpop.f32.mrf.mxu0 }
 0x4a6   : > { %v5262_v15 = vpop.f32.mrf.mxu0 }
 0x507   : > { %v1246_v20 = vpop.f32.mrf.mxu1 }
 0x508   : > { %1403 = vrot.lane.b32.xlu1 %v1246_v20, %s7143_s0 }
 0x509   : > { %v5267_v21 = vpop.f32.mrf.mxu1 }
 0x50b   : > { %v1398_v22 = vpop.f32.mrf.mxu1 }
 0x50c   : > { %v1322_v23 = vpop.f32.mrf.mxu0  ;;  %1411 = vrot.lane.b32.xlu1 %v1398_v22, %s7141_s26 }
 0x50d   : > { %1407 = vrot.lane.b32.xlu0 %v1322_v23, %s7139_s22  ;;  %v5277_v24 = vpop.f32.mrf.mxu1  ;;  %s7178_s22 = sld [smem:[#allocation28_spill]] }
 0x50e   : > { %v5272_v25 = vpop.f32.mrf.mxu0 }
 0x515   : > { %v6499_v59 = vpop.f32.mrf.mxu0 }
 0x517   : > { %v1680_v60 = vpop.f32.mrf.mxu0 }
 0x57a   : > { %v1404_v26 = vpop.permute.xlu1 %1403 }
 0x57b   : > { %v1414_v28 = vsel %vm743_vm2, %v1170_v14, %v1404_v26 }
 0x57e   : > { %v1412_v27 = vpop.permute.xlu1 %1411 }
 0x57f   : > { %v1408_v29 = vpop.permute.xlu0 %1407 }
 0x580   : > { %v1416_v30 = vsel %vm1415_vm4, %v1414_v28, %v1408_v29 }
 0x581   : > { %v1418_v31 = vsel %vm1417_vm5, %v1416_v30, %v1412_v27 }
 0x582   : > { %5287 = vmatmul.mubr.msk.f32.vlgmr.msra.gmra.mxu1 %vm660_vm1, %v1418_v31 }
 0x583   : > { %5297 = vmatprep.mubr.msk.f32.mxu1 %vm6016_vm0, %v6015_v0  ;;  %5290 = vmatpush3.msra.mxu1 %v1530_v46 }
 0x584   : > { %5291 = vmatprep.subr.mxu1 %v6015_v0 }
 0x585   : > { %5292 = vmatpush3.msra.mxu1 %v1529_v47 }
 0x586   : > { %5293 = vmatprep.subr.mxu1 %v6015_v0 }
 0x587   : > { %5294 = vmatpush3.msra.mxu1 %v1528_v48 }
 0x588   : > { %5295 = vmatprep.subr.mxu1 %v6015_v0 }
 0x589   : > { %5296 = vmatpush3.msra.mxu1 %v1527_v49 }
 0x58a   : > { %5311 = vmatprep.subr.mxu1 %v6015_v0 }
 0x642   : > { %v1492_v32 = vpop.f32.mrf.mxu1 }
 0x643   : > { %v1496_v33 = vadd.f32 %v1492_v32, %v6336_v5 }
 0x644   : > { %v5288_v34 = vpop.f32.mrf.mxu1 }
 0x645   : > { %v1499_v35 = vsel %vm660_vm1, %v1496_v33, 0.0 }
 0x646   : > { %1500 = vadd.xlane.f32.xlu0 %v1499_v35 }
 0x65c   : > { %1700 = vrot.lane.b32.xlu0 %v6499_v59, %s6018_s10 }
 0x660   : > { %1704 = vrot.lane.b32.xlu0 %v6499_v59, %s6020_s1 }
 0x664   : > { %1708 = vrot.lane.b32.xlu0 %v6499_v59, %s6017_s30 }
 0x668   : > { %1706 = vrot.lane.b32.xlu0 %v1680_v60, %s6017_s30 }
 0x6cf   : > { %v1501_v38 = vpop.xlane.xlu0 %1500 }
 0x6d0   : > { %v1503_v5 = vmul.f32 0.03125, %v1501_v38 }
 0x6d2   : > { %v1504_v39 = vsub.f32 %v1496_v33, %v1503_v5 }
 0x6d3   : > { %v1701_v61 = vpop.permute.xlu0 %1700 }
 0x6d4   : > { %v1505_v40 = vmul.f32 %v1504_v39, %v1504_v39  ;;  %5319 = vmatpush3.xpose.msk.msra.mxu0 %vm743_vm2, %v1701_v61 }
 0x6d5   : > { %5320 = vmatprep.subr.mxu0 %v6015_v0 }
 0x6d6   : > { %v1506_v41 = vsel %vm660_vm1, %v1505_v40, 0.0 }
 0x6d7   : > { %1507 = vadd.xlane.f32.xlu1 %v1506_v41  ;;  %v1705_v2 = vpop.permute.xlu0 %1704 }
 0x6db   : > { %v1709_v3 = vpop.permute.xlu0 %1708 }
 0x6df   : > { %v6532_v6 = vpop.permute.xlu0 %1706 }
 0x6e8   : > { %1698 = vrot.lane.b32.xlu1 %v1680_v60, %s6018_s10 }
 0x760   : > { %v1508_v50 = vpop.xlane.xlu1 %1507 }
 0x761   : > { %v1509_v51 = vmul.f32 0.03125, %v1508_v50 }
 0x763   : > { %v1510_v52 = vadd.f32 1e-05, %v1509_v51 }
 0x764   : > { %v1699_v62 = vpop.permute.xlu1 %1698 }
 0x765   : > { %5733 = vrsqrt.f32 %v1510_v52  ;;  %5321 = vmatpush3.xpose.msk.msra.mxu0 %vm743_vm2, %v1699_v62 }
 0x766   : > { %5332 = vmatprep.subr.mxu0 %v6015_v0 }
 0x772   : > { %v5734_v53 = vpop.eup %5733 }
 0x773   : > { %v1512_v55 = vmul.f32 %v5734_v53, %v1504_v39 }
 0x775   : > { %v1519_v57 = vmul.f32 %v4932_v54, %v1512_v55 }
 0x777   : > { %v6493_v58 = vadd.f32 %v4933_v56, %v1519_v57 }
 0x779   : > { %5298 = vmatmul.mubr.msk.f32.vlgmr.msra.gmra.mxu1 %vm660_vm1, %v6493_v58 }
 0x77a   : > { %5315 = vmatprep.mubr.msk.f32.mxu1 %vm6016_vm0, %v6015_v0  ;;  %5312 = vmatpush3.xpose.msk.msra.mxu1 %vm743_vm2, %v6499_v59 }
 0x77b   : > { %5313 = vmatprep.subr.mxu1 %v6015_v0 }
 0x77e   : > { %5314 = vmatpush3.xpose.msk.msra.mxu1 %vm743_vm2, %v1680_v60 }
 0x77f   : > { %5325 = vmatprep.subr.mxu1 %v6015_v0 }
 0x839   : > { %v1600_v63 = vpop.f32.mrf.mxu1 }
 0x83a   : > { %1694 = vrot.lane.b32.xlu0 %v1600_v63, %s6017_s30  ;;  %1690 = vrot.lane.b32.xlu1 %v1600_v63, %s6018_s10 }
 0x83b   : > { %5316 = vmatmul.mubr.msk.f32.vlgmr.msra.gmra.mxu1 %vm743_vm2, %v1600_v63  ;;  %v5299_v1 = vpop.f32.mrf.mxu1 }
 0x83c   : > { %5326 = vmatpush3.xpose.msk.msra.mxu1 %vm743_vm2, %v1705_v2  ;;  %5329 = vmatprep.mubr.msk.f32.mxu1 %vm6016_vm0, %v6015_v0 }
 0x83d   : > { %5327 = vmatprep.subr.mxu1 %v6015_v0 }
 0x83e   : > { %1702 = vrot.lane.b32.xlu1 %v1680_v60, %s6020_s1 }
 0x842   : > { %1692 = vrot.lane.b32.xlu1 %v1600_v63, %s6020_s1 }
 0x8ac   : > { %v1691_v4 = vpop.permute.xlu1 %1690  ;;  %v1695_v8 = vpop.permute.xlu0 %1694 }
 0x8ad   : > { %5323 = vmatmul.mubr.msk.f32.vlgmr.msra.gmra.mxu0 %vm743_vm2, %v1691_v4 }
 0x8ae   : > { %5333 = vmatpush3.xpose.msk.msra.mxu0 %vm743_vm2, %v1709_v3  ;;  %5336 = vmatprep.mubr.msk.f32.mxu0 %vm6016_vm0, %v6015_v0 }
 0x8af   : > { %5334 = vmatprep.subr.mxu0 %v6015_v0 }
 0x8b0   : > { %v6534_v7 = vpop.permute.xlu1 %1702 }
 0x8b1   : > { %5328 = vmatpush3.xpose.msk.msra.mxu1 %vm743_vm2, %v6534_v7 }
 0x8b2   : > { %5335 = vmatpush3.xpose.msk.msra.mxu0 %vm743_vm2, %v6532_v6  ;;  %5339 = vmatprep.subr.mxu1 %v6015_v0 }
 0x8b3   : > { %5353 = vmatprep.subr.mxu0 %v6015_v0 }
 0x8b4   : > { %v1693_v9 = vpop.permute.xlu1 %1692 }
 0x8b5   : > { %5337 = vmatmul.mubr.msk.f32.vlgmr.msra.gmra.mxu0 %vm743_vm2, %v1695_v8  ;;  %5330 = vmatmul.mubr.msk.f32.vlgmr.msra.gmra.mxu1 %vm743_vm2, %v1693_v9  ;;  %v2396_v8 = vld [vmem:[%s7108_s8 + $0x18] sm:$0xff]  ;;  %v2395_v9 = vld [vmem:[%s7108_s8 + $0x10] sm:$0xff] }
 0x8b6   : > { %5343 = vmatprep.mubr.msk.f32.mxu1 %vm6016_vm0, %v6015_v0  ;;  %5357 = vmatprep.mubr.msk.f32.mxu0 %vm6016_vm0, %v6015_v0 }
 0x8fb   : > { %v1782_v10 = vpop.f32.mrf.mxu1 }
 0x8fc   : > { %v2014_v11 = vmul.f32 0.35355338, %v1782_v10  ;;  %v2394_v10 = vld [vmem:[%s7108_s8 + $0x8] sm:$0xff] }
 0x8fd   : > { %v5317_v12 = vpop.f32.mrf.mxu1 }
 0x8fe   : > { %v2018_v13 = vsel %vm1415_vm4, %v2014_v11, -inf }
 0x8ff   : > { %2019 = vmax.xlane.f32.xlu1 %v2018_v13 }
 0x96d   : > { %v1858_v14 = vpop.f32.mrf.mxu0 }
 0x96e   : > { %v2015_v15 = vmul.f32 0.35355338, %v1858_v14 }
 0x96f   : > { %v5324_v16 = vpop.f32.mrf.mxu0 }
 0x970   : > { %v2021_v17 = vsel %vm1415_vm4, %v2015_v15, -inf }
 0x971   : > { %2022 = vmax.xlane.f32.xlu0 %v2021_v17 }
 0x975   : > { %v2010_v18 = vpop.f32.mrf.mxu0  ;;  %v1934_v20 = vpop.f32.mrf.mxu1 }
 0x976   : > { %v2017_v21 = vmul.f32 0.35355338, %v2010_v18  ;;  %v2016_v22 = vmul.f32 0.35355338, %v1934_v20 }
 0x977   : > { %v5338_v23 = vpop.f32.mrf.mxu0  ;;  %v5331_v24 = vpop.f32.mrf.mxu1 }
 0x978   : > { %v2027_v25 = vsel %vm1415_vm4, %v2017_v21, -inf  ;;  %v2024_v26 = vsel %vm1415_vm4, %v2016_v22, -inf }
 0x979   : > { %2028 = vmax.xlane.f32.xlu1 %v2027_v25  ;;  %2025 = vmax.xlane.f32.xlu0 %v2024_v26 }
 0x988   : > { %v2020_v27 = vpop.xlane.xlu1 %2019 }
 0x989   : > { %v2030_v28 = vsub.f32 %v2014_v11, %v2020_v27  ;;  %v2393_v11 = vld [vmem:[%s7108_s8] sm:$0xff] }
 0x98a   : > { %2062 = vrot.lane.b32.xlu1 %v1680_v60, %s6019_s18 }
 0x98b   : > { %v2034_v29 = vmul.f32 1.442695, %v2030_v28 }
 0x98d   : > { %5735 = vpow2.f32 %v2034_v29 }
 0x98e   : > { %2143 = vrot.lane.b32.xlu1 %v1701_v61, %s6019_s18 }
 0x98f   : > { %2064 = vrot.lane.b32.xlu0 %v6499_v59, %s6019_s18 }
 0x992   : > { %2222 = vrot.lane.b32.xlu1 %v1705_v2, %s6019_s18 }
 0x993   : > { %2141 = vrot.lane.b32.xlu0 %v1699_v62, %s6019_s18 }
 0x997   : > { %2301 = vrot.lane.b32.xlu0 %v1709_v3, %s6019_s18 }
 0x99a   : > { %v5736_v30 = vpop.eup %5735 }
 0x99b   : > { %v2042_v31 = vsel %vm1415_vm4, %v5736_v30, 0.0 }
 0x9b6   : > { %2043 = vadd.xlane.f32.xlu0 %v2042_v31 }
 0x9fa   : > { %v2023_v32 = vpop.xlane.xlu0 %2022 }
 0x9fb   : > { %v2031_v33 = vsub.f32 %v2015_v15, %v2023_v32 }
 0x9fd   : > { %v2036_v34 = vmul.f32 1.442695, %v2031_v33 }
 0x9ff   : > { %5737 = vpow2.f32 %v2036_v34  ;;  %v2503_v34 = vld [vmem:[#allocation10 + $0x18] sm:$0xff] }
 0xa02   : > { %v2029_v35 = vpop.xlane.xlu1 %2028  ;;  %v2026_v36 = vpop.xlane.xlu0 %2025 }
 0xa03   : > { %v2033_v37 = vsub.f32 %v2017_v21, %v2029_v35  ;;  %v2032_v38 = vsub.f32 %v2016_v22, %v2026_v36  ;;  %v2502_v35 = vld [vmem:[#allocation10 + $0x10] sm:$0xff]  ;;  %v2501_v36 = vld [vmem:[#allocation10 + $0x8] sm:$0xff] }
 0xa05   : > { %v2040_v5 = vmul.f32 1.442695, %v2033_v37  ;;  %v2038_v39 = vmul.f32 1.442695, %v2032_v38  ;;  %v2600_v37 = vld [vmem:[%s7113_s13 + $0x78] sm:$0xff]  ;;  %v2599_v38 = vld [vmem:[%s7113_s13 + $0x70] sm:$0xff] }
 0xa06   : > { %v2063_v40 = vpop.permute.xlu1 %2062  ;;  %v2065_v41 = vpop.permute.xlu0 %2064 }
 0xa07   : > { %5739 = vpow2.f32 %v2040_v5  ;;  %5340 = vmatpush3.msra.mxu1 %v2065_v41  ;;  %v2598_v5 = vld [vmem:[%s7113_s13 + $0x68] sm:$0xff]  ;;  %v2595_v41 = vld [vmem:[%s7113_s13 + $0x50] sm:$0xff] }
 0xa08   : > { %5741 = vpow2.f32 %v2038_v39  ;;  %5341 = vmatprep.subr.mxu1 %v6015_v0  ;;  %v2597_v39 = vld [vmem:[%s7113_s13 + $0x60] sm:$0xff] }
 0xa09   : > { %5342 = vmatpush3.msra.mxu1 %v2063_v40  ;;  %v2596_v40 = vld [vmem:[%s7113_s13 + $0x58] sm:$0xff] }
 0xa0a   : > { %v2144_v42 = vpop.permute.xlu1 %2143  ;;  %5346 = vmatprep.subr.mxu1 %v6015_v0  ;;  %v2142_v51 = vpop.permute.xlu0 %2141 }
 0xa0c   : > { %v5738_v43 = vpop.eup %5737 }
 0xa0d   : > { %v2045_v45 = vsel %vm1415_vm4, %v5738_v43, 0.0 }
 0xa0e   : > { %v2223_v46 = vpop.permute.xlu1 %2222  ;;  %2046 = vadd.xlane.f32.xlu1 %v2045_v45  ;;  %v2302_v52 = vpop.permute.xlu0 %2301  ;;  %v2592_v45 = vld [vmem:[%s7113_s13 + $0x38] sm:$0xff] }
 0xa0f   : > { %5354 = vmatpush3.msra.mxu0 %v2223_v46  ;;  %v2591_v46 = vld [vmem:[%s7113_s13 + $0x30] sm:$0xff] }
 0xa10   : > { %5355 = vmatprep.subr.mxu0 %v6015_v0 }
 0xa14   : > { %v5740_v47 = vpop.eup %5739 }
 0xa15   : > { %v5742_v48 = vpop.eup %5741  ;;  %v2051_v49 = vsel %vm1415_vm4, %v5740_v47, 0.0 }
 0xa16   : > { %2052 = vadd.xlane.f32.xlu1 %v2051_v49  ;;  %v2048_v50 = vsel %vm1415_vm4, %v5742_v48, 0.0  ;;  %v2588_v49 = vld [vmem:[%s7113_s13 + $0x18] sm:$0xff] }
 0xa17   : > { %2049 = vadd.xlane.f32.xlu0 %v2048_v50 }
 0xa27   : > { %2220 = vrot.lane.b32.xlu1 %v6534_v7, %s6019_s18 }
 0xa2d   : > { %2299 = vrot.lane.b32.xlu0 %v6532_v6, %s6019_s18 }
 0xa3f   : > { %v2044_v53 = vpop.xlane.xlu0 %2043 }
 0xa40   : > { %5743 = vrcp.f32 %v2044_v53 }
 0xa4d   : > { %v5744_v54 = vpop.eup %5743 }
 0xa4e   : > { %v2058_v55 = vmul.f32 %v5744_v54, %v5736_v30  ;;  %v4954_v54 = vld [vmem:[#allocation7] ss:$0 sm:$0xff] }
 0xa50   : > { %5344 = vmatmul.mubr.msk.f32.vlgmr.msra.gmra.mxu1 %vm1415_vm4, %v2058_v55 }
 0xa51   : > { %5347 = vmatpush3.msra.mxu1 %v2144_v42  ;;  %5350 = vmatprep.mubr.msk.f32.mxu1 %vm6016_vm0, %v6015_v0  ;;  %v2594_v42 = vld [vmem:[%s7113_s13 + $0x48] sm:$0xff] }
 0xa52   : > { %5348 = vmatprep.subr.mxu1 %v6015_v0 }
 0xa53   : > { %5349 = vmatpush3.msra.mxu1 %v2142_v51 }
 0xa54   : > { %5360 = vmatprep.subr.mxu1 %v6015_v0 }
 0xa97   : > { %v2047_v56 = vpop.xlane.xlu1 %2046 }
 0xa98   : > { %5745 = vrcp.f32 %v2047_v56  ;;  %v4955_v56 = vld [vmem:[#allocation8] ss:$0 sm:$0xff] }
 0xa9f   : > { %v2053_v57 = vpop.xlane.xlu1 %2052 }
 0xaa0   : > { %5747 = vrcp.f32 %v2053_v57  ;;  %v2050_v59 = vpop.xlane.xlu0 %2049 }
 0xaa1   : > { %5749 = vrcp.f32 %v2050_v59 }
 0xaa3   : > { %v2221_v60 = vpop.permute.xlu1 %2220 }
 0xaa4   : > { %5356 = vmatpush3.msra.mxu0 %v2221_v60  ;;  %v2300_v63 = vpop.permute.xlu0 %2299  ;;  %v2587_v60 = vld [vmem:[%s7113_s13 + $0x10] sm:$0xff] }
 0xaa5   : > { %v5746_v61 = vpop.eup %5745  ;;  %5367 = vmatprep.subr.mxu0 %v6015_v0 }
 0xaa6   : > { %v2059_v62 = vmul.f32 %v5746_v61, %v5738_v43  ;;  %v2593_v43 = vld [vmem:[%s7113_s13 + $0x40] sm:$0xff]  ;;  %v2586_v61 = vld [vmem:[%s7113_s13 + $0x8] sm:$0xff] }
 0xaa8   : > { %5351 = vmatmul.mubr.msk.f32.vlgmr.msra.gmra.mxu1 %vm1415_vm4, %v2059_v62  ;;  %v2585_v62 = vld [vmem:[%s7113_s13] sm:$0xff] }
 0xaa9   : > { %5361 = vmatpush3.msra.mxu1 %v2302_v52  ;;  %5364 = vmatprep.mubr.msk.f32.mxu1 %vm6016_vm0, %v6015_v0 }
 0xaaa   : > { %5362 = vmatprep.subr.mxu1 %v6015_v0 }
 0xaab   : > { %5363 = vmatpush3.msra.mxu1 %v2300_v63  ;;  %v4956_v63 = vld [vmem:[%s7112_s12] ss:$0 sm:$0xff] }
 0xaac   : > { %5378 = vmatprep.subr.mxu1 %v6015_v0 }
 0xaad   : > { %v5748_v1 = vpop.eup %5747 }
 0xaae   : > { %v5750_v2 = vpop.eup %5749  ;;  %v2061_v3 = vmul.f32 %v5748_v1, %v5740_v47  ;;  %v2590_v47 = vld [vmem:[%s7113_s13 + $0x28] sm:$0xff] }
 0xaaf   : > { %v2060_v4 = vmul.f32 %v5750_v2, %v5742_v48  ;;  %v2589_v48 = vld [vmem:[%s7113_s13 + $0x20] sm:$0xff] }
 0xab0   : > { %5365 = vmatmul.mubr.msk.f32.vlgmr.msra.gmra.mxu1 %vm1415_vm4, %v2061_v3 }
 0xab1   : > { %5358 = vmatmul.mubr.msk.f32.vlgmr.msra.gmra.mxu0 %vm1415_vm4, %v2060_v4  ;;  %5386 = vmatprep.mubr.msk.f32.mxu1 %vm6016_vm0, %v6015_v0 }
 0xab2   : > { %5375 = vmatprep.mubr.msk.f32.mxu0 %vm6016_vm0, %v6015_v0  ;;  %5368 = vmatpush3.msra.mxu0 %v2396_v8 }
 0xab3   : > { %5369 = vmatprep.subr.mxu0 %v6015_v0  ;;  %5379 = vmatpush3.msra.mxu1 %v2503_v34 }
 0xab4   : > { %5370 = vmatpush3.msra.mxu0 %v2395_v9  ;;  %5380 = vmatprep.subr.mxu1 %v6015_v0 }
 0xab5   : > { %5371 = vmatprep.subr.mxu0 %v6015_v0  ;;  %5381 = vmatpush3.msra.mxu1 %v2502_v35 }
 0xab6   : > { %5372 = vmatpush3.msra.mxu0 %v2394_v10  ;;  %5382 = vmatprep.subr.mxu1 %v6015_v0 }
 0xab7   : > { %5373 = vmatprep.subr.mxu0 %v6015_v0  ;;  %5383 = vmatpush3.msra.mxu1 %v2501_v36 }
 0xab8   : > { %5374 = vmatpush3.msra.mxu0 %v2393_v11  ;;  %5384 = vmatprep.subr.mxu1 %v6015_v0 }
 0xab9   : > { %5389 = vmatprep.subr.mxu0 %v6015_v0 }
 0xb10   : > { %v2137_v6 = vpop.f32.mrf.mxu1 }
 0xb12   : > { %v5345_v7 = vpop.f32.mrf.mxu1 }
 0xb68   : > { %v2216_v12 = vpop.f32.mrf.mxu1 }
 0xb69   : > { %2379 = vrot.lane.b32.xlu1 %v2216_v12, %s7143_s0 }
 0xb6a   : > { %v5352_v13 = vpop.f32.mrf.mxu1 }
 0xb70   : > { %v2374_v14 = vpop.f32.mrf.mxu1 }
 0xb71   : > { %v2295_v15 = vpop.f32.mrf.mxu0  ;;  %2387 = vrot.lane.b32.xlu1 %v2374_v14, %s7141_s26 }
 0xb72   : > { %2383 = vrot.lane.b32.xlu0 %v2295_v15, %s7177_s24  ;;  %v5366_v16 = vpop.f32.mrf.mxu1 }
 0xb73   : > { %v5359_v17 = vpop.f32.mrf.mxu0 }
 0xb74   : > { %v4964_v17 = vld [vmem:[%s7102_s2 + $0x38] sm:$0xff] }
 0xbdb   : > { %v2380_v18 = vpop.permute.xlu1 %2379 }
 0xbdc   : > { %v2390_v20 = vsel %vm743_vm2, %v2137_v6, %v2380_v18  ;;  %v4958_v6 = vld [vmem:[%s7114_s14] ss:$0 sm:$0xff]  ;;  %v4963_v18 = vld [vmem:[%s7102_s2 + $0x30] sm:$0xff] }
 0xbe3   : > { %v2388_v22 = vpop.permute.xlu1 %2387 }
 0xbe4   : > { %v2384_v21 = vpop.permute.xlu0 %2383 }
 0xbe5   : > { %v2391_v23 = vsel %vm1415_vm4, %v2390_v20, %v2384_v21  ;;  %v4962_v20 = vld [vmem:[%s7102_s2 + $0x28] sm:$0xff]  ;;  %v4961_v21 = vld [vmem:[%s7102_s2 + $0x20] sm:$0xff] }
 0xbe6   : > { %v2392_v24 = vsel %vm1417_vm5, %v2391_v23, %v2388_v22 }
 0xbe7   : > { %5376 = vmatmul.mubr.msk.f32.vlgmr.msra.gmra.mxu0 %vm660_vm1, %v2392_v24 }
 0xbe8   : > { %5421 = vmatprep.mubr.msk.f32.mxu0 %vm6016_vm0, %v6015_v0  ;;  %5390 = vmatpush3.msra.mxu0 %v2600_v37 }
 0xbe9   : > { %5391 = vmatprep.subr.mxu0 %v6015_v0 }
 0xbea   : > { %5392 = vmatpush3.msra.mxu0 %v2599_v38 }
 0xbeb   : > { %5393 = vmatprep.subr.mxu0 %v6015_v0 }
 0xbec   : > { %5394 = vmatpush3.msra.mxu0 %v2598_v5 }
 0xbed   : > { %5395 = vmatprep.subr.mxu0 %v6015_v0 }
 0xbee   : > { %5396 = vmatpush3.msra.mxu0 %v2597_v39 }
 0xbef   : > { %5397 = vmatprep.subr.mxu0 %v6015_v0 }
 0xbf0   : > { %5398 = vmatpush3.msra.mxu0 %v2596_v40 }
 0xbf1   : > { %5399 = vmatprep.subr.mxu0 %v6015_v0 }
 0xbf2   : > { %5400 = vmatpush3.msra.mxu0 %v2595_v41 }
 0xbf3   : > { %5401 = vmatprep.subr.mxu0 %v6015_v0 }
 0xbf4   : > { %5402 = vmatpush3.msra.mxu0 %v2594_v42 }
 0xbf5   : > { %5403 = vmatprep.subr.mxu0 %v6015_v0 }
 0xbf6   : > { %5404 = vmatpush3.msra.mxu0 %v2593_v43 }
 0xbf7   : > { %5405 = vmatprep.subr.mxu0 %v6015_v0 }
 0xbf8   : > { %5406 = vmatpush3.msra.mxu0 %v2592_v45 }
 0xbf9   : > { %5407 = vmatprep.subr.mxu0 %v6015_v0 }
 0xbfa   : > { %5408 = vmatpush3.msra.mxu0 %v2591_v46 }
 0xbfb   : > { %5409 = vmatprep.subr.mxu0 %v6015_v0 }
 0xbfc   : > { %5410 = vmatpush3.msra.mxu0 %v2590_v47 }
 0xbfd   : > { %5411 = vmatprep.subr.mxu0 %v6015_v0 }
 0xbfe   : > { %5412 = vmatpush3.msra.mxu0 %v2589_v48 }
 0xbff   : > { %5413 = vmatprep.subr.mxu0 %v6015_v0 }
 0xc00   : > { %5414 = vmatpush3.msra.mxu0 %v2588_v49 }
 0xc01   : > { %5415 = vmatprep.subr.mxu0 %v6015_v0 }
 0xc02   : > { %5416 = vmatpush3.msra.mxu0 %v2587_v60 }
 0xc03   : > { %5417 = vmatprep.subr.mxu0 %v6015_v0 }
 0xc04   : > { %5418 = vmatpush3.msra.mxu0 %v2586_v61 }
 0xc05   : > { %5419 = vmatprep.subr.mxu0 %v6015_v0 }
 0xc06   : > { %5420 = vmatpush3.msra.mxu0 %v2585_v62 }
 0xc07   : > { %5465 = vmatprep.subr.mxu0 %v6015_v0 }
 0xca7   : > { %v2466_v25 = vpop.f32.mrf.mxu0 }
 0xca8   : > { %v2470_v26 = vadd.f32 %v2466_v25, %v6493_v58  ;;  %v2500_v58 = vld [vmem:[#allocation10] sm:$0xff] }
 0xca9   : > { %v5377_v27 = vpop.f32.mrf.mxu0  ;;  %5385 = vmatpush3.msra.mxu1 %v2500_v58 }
 0xcaa   : > { %v2473_v28 = vsel %vm660_vm1, %v2470_v26, 0.0  ;;  %5424 = vmatprep.subr.mxu1 %v6015_v0 }
 0xcab   : > { %2474 = vadd.xlane.f32.xlu0 %v2473_v28  ;;  %v4960_v28 = vld [vmem:[%s7178_s22] ss:$0 sm:$0xff] }
 0xd34   : > { %v2475_v29 = vpop.xlane.xlu0 %2474 }
 0xd35   : > { %v2476_v30 = vmul.f32 0.03125, %v2475_v29 }
 0xd37   : > { %v2477_v31 = vsub.f32 %v2470_v26, %v2476_v30  ;;  %v4959_v26 = vld [vmem:[%s7115_s15] ss:$0 sm:$0xff] }
 0xd39   : > { %v2478_v32 = vmul.f32 %v2477_v31, %v2477_v31 }
 0xd3b   : > { %v2479_v33 = vsel %vm660_vm1, %v2478_v32, 0.0 }
 0xd3c   : > { %2480 = vadd.xlane.f32.xlu1 %v2479_v33 }
 0xdc5   : > { %v2481_v50 = vpop.xlane.xlu1 %2480 }
 0xdc6   : > { %v2482_v51 = vmul.f32 0.03125, %v2481_v50 }
 0xdc8   : > { %v2483_v52 = vadd.f32 1e-05, %v2482_v51 }
 0xdca   : > { %5751 = vrsqrt.f32 %v2483_v52 }
 0xdd7   : > { %v5752_v53 = vpop.eup %5751 }
 0xdd8   : > { %v2485_v55 = vmul.f32 %v5752_v53, %v2477_v31 }
 0xdda   : > { %v2492_v57 = vmul.f32 %v4954_v54, %v2485_v55 }
 0xddc   : > { %v2499_v59 = vadd.f32 %v4955_v56, %v2492_v57 }
 0xdde   : > { %5387 = vmatmul.mubr.msk.f32.vlgmr.msra.gmra.mxu1 %vm660_vm1, %v2499_v59 }
 0xddf   : > { %5432 = vmatprep.mubr.msk.f32.mxu1 %vm6016_vm0, %v6015_v0  ;;  %5425 = vmatpush3.msra.mxu1 %v4964_v17 }
 0xde0   : > { %5426 = vmatprep.subr.mxu1 %v6015_v0 }
 0xde1   : > { %5427 = vmatpush3.msra.mxu1 %v4963_v18 }
 0xde2   : > { %5428 = vmatprep.subr.mxu1 %v6015_v0 }
 0xde3   : > { %5429 = vmatpush3.msra.mxu1 %v4962_v20 }
 0xde4   : > { %5430 = vmatprep.subr.mxu1 %v6015_v0 }
 0xde5   : > { %5431 = vmatpush3.msra.mxu1 %v4961_v21 }
 0xde6   : > { %5435 = vmatprep.subr.mxu1 %v6015_v0 }
 0xe9e   : > { %v2580_v1 = vpop.f32.mrf.mxu1 }
 0xe9f   : > { %v2581_v2 = vadd.f32 %v4956_v63, %v2580_v1 }
 0xea0   : > { %v5388_v3 = vpop.f32.mrf.mxu1 }
 0xea1   : > { %v2584_v4 = vmax.f32 %v2581_v2, 0.0 }
 0xea3   : > { %5422 = vmatmul.mubr.f32.vlgmr.msra.gmra.mxu0 %v2584_v4 }
 0xea4   : > { %5467 = vmatprep.mubr.msk.f32.mxu0 %vm6016_vm0, %v6015_v0 }
 0xf63   : > { %v2674_v7 = vpop.f32.mrf.mxu0 }
 0xf64   : > { %v2675_v8 = vadd.f32 %v4958_v6, %v2674_v7 }
 0xf65   : > { %v5423_v9 = vpop.f32.mrf.mxu0 }
 0xf66   : > { %v2678_v10 = vadd.f32 %v2675_v8, %v2499_v59 }
 0xf68   : > { %v2681_v11 = vsel %vm660_vm1, %v2678_v10, 0.0 }
 0xf69   : > { %2682 = vadd.xlane.f32.xlu0 %v2681_v11 }
 0xff2   : > { %v2683_v12 = vpop.xlane.xlu0 %2682 }
 0xff3   : > { %v2684_v13 = vmul.f32 0.03125, %v2683_v12 }
 0xff5   : > { %v2685_v14 = vsub.f32 %v2678_v10, %v2684_v13 }
 0xff7   : > { %v2686_v15 = vmul.f32 %v2685_v14, %v2685_v14 }
 0xff9   : > { %v2687_v16 = vsel %vm660_vm1, %v2686_v15, 0.0 }
 0xffa   : > { %2688 = vadd.xlane.f32.xlu0 %v2687_v16 }
0x1083   : > { %v2689_v22 = vpop.xlane.xlu0 %2688 }
0x1084   : > { %v2690_v23 = vmul.f32 0.03125, %v2689_v22 }
0x1086   : > { %v2691_v24 = vadd.f32 1e-05, %v2690_v23 }
0x1088   : > { %5753 = vrsqrt.f32 %v2691_v24 }
0x1095   : > { %v5754_v25 = vpop.eup %5753 }
0x1096   : > { %v2693_v27 = vmul.f32 %v5754_v25, %v2685_v14 }
0x1098   : > { %v2700_v29 = vmul.f32 %v4959_v26, %v2693_v27 }
0x109a   : > { %v6718_v30 = vadd.f32 %v4960_v28, %v2700_v29 }
0x109c   : > { %5433 = vmatmul.mubr.msk.f32.vlgmr.msra.gmra.mxu1 %vm660_vm1, %v6718_v30 }
0x109d   : > { %5437 = vmatprep.mubr.msk.f32.mxu1 %vm6016_vm0, %v6015_v0 }
0x115c   : > { %v2782_v31 = vpop.f32.mrf.mxu1 }
0x115d   : > { %2789 = vrot.lane.b32.xlu0 %v2782_v31, %s6020_s1  ;;  %2787 = vrot.lane.b32.xlu1 %v2782_v31, %s6018_s10 }
0x115e   : > { %v5434_v32 = vpop.f32.mrf.mxu1 }
0x1161   : > { %2791 = vrot.lane.b32.xlu1 %v2782_v31, %s6017_s30 }
0x1165   : > { %2793 = vrot.lane.b32.xlu1 %v2782_v31, %s6019_s18 }
0x11cf   : > { %v6728_v33 = vpop.permute.xlu0 %2789  ;;  %v2788_v34 = vpop.permute.xlu1 %2787 }
0x11d0   : > { %2945 = vrot.lane.b32.xlu1 %v6728_v33, %s6019_s18  ;;  %2869 = vrot.lane.b32.xlu0 %v2788_v34, %s6019_s18 }
0x11d3   : > { %v6733_v35 = vpop.permute.xlu1 %2791 }
0x11d4   : > { %3021 = vrot.lane.b32.xlu0 %v6733_v35, %s6019_s18 }
0x11d7   : > { %v2794_v36 = vpop.permute.xlu1 %2793 }
0x11d8   : > { %5436 = vmatpush3.xpose.msk.msra.mxu1 %vm743_vm2, %v2794_v36 }
0x11d9   : > { %5440 = vmatprep.subr.mxu1 %v6015_v0 }
0x11db   : > { %5438 = vmatmul.mubr.msk.f32.vlgmr.msra.gmra.mxu1 %vm743_vm2, %v2782_v31 }
0x11dc   : > { %5442 = vmatprep.mubr.msk.f32.mxu1 %vm6016_vm0, %v6015_v0 }
0x1242   : > { %v2870_v58 = vpop.permute.xlu0 %2869  ;;  %v2946_v37 = vpop.permute.xlu1 %2945 }
0x1243   : > { %5441 = vmatpush3.xpose.msk.msra.mxu1 %vm743_vm2, %v2870_v58  ;;  %v4981_v58 = vld [vmem:[%s7103_s3 + $0x38] sm:$0xff] }
0x1244   : > { %5445 = vmatprep.subr.mxu1 %v6015_v0 }
0x1246   : > { %5443 = vmatmul.mubr.msk.f32.vlgmr.msra.gmra.mxu1 %vm743_vm2, %v2788_v34  ;;  %v3022_v38 = vpop.permute.xlu0 %3021 }
0x1247   : > { %5446 = vmatpush3.xpose.msk.msra.mxu1 %vm743_vm2, %v2946_v37  ;;  %5447 = vmatprep.mubr.msk.f32.mxu1 %vm6016_vm0, %v6015_v0  ;;  %v4980_v37 = vld [vmem:[%s7103_s3 + $0x30] sm:$0xff] }
0x1248   : > { %5450 = vmatprep.subr.mxu1 %v6015_v0 }
0x124a   : > { %5448 = vmatmul.mubr.msk.f32.vlgmr.msra.gmra.mxu1 %vm743_vm2, %v6728_v33 }
0x124b   : > { %5451 = vmatpush3.xpose.msk.msra.mxu1 %vm743_vm2, %v3022_v38  ;;  %5452 = vmatprep.mubr.msk.f32.mxu1 %vm6016_vm0, %v6015_v0  ;;  %v4979_v38 = vld [vmem:[%s7103_s3 + $0x28] sm:$0xff] }
0x124c   : > { %5455 = vmatprep.subr.mxu1 %v6015_v0 }
0x124e   : > { %5453 = vmatmul.mubr.msk.f32.vlgmr.msra.gmra.mxu1 %vm743_vm2, %v6733_v35 }
0x124f   : > { %5457 = vmatprep.mubr.msk.f32.mxu1 %vm6016_vm0, %v6015_v0 }
0x129b   : > { %v2865_v5 = vpop.f32.mrf.mxu1 }
0x129c   : > { %v3097_v39 = vmul.f32 0.35355338, %v2865_v5  ;;  %v4978_v5 = vld [vmem:[%s7103_s3 + $0x20] sm:$0xff] }
0x129d   : > { %v5439_v40 = vpop.f32.mrf.mxu1 }
0x129e   : > { %v3101_v41 = vadd.f32 %v3097_v39, %v6387_v19 }
0x12a0   : > { %v3105_v42 = vsel %vm743_vm2, %v3101_v41, -inf }
0x12a1   : > { %3106 = vmax.xlane.f32.xlu1 %v3105_v42 }
0x1306   : > { %v2941_v43 = vpop.f32.mrf.mxu1 }
0x1307   : > { %v3098_v45 = vmul.f32 0.35355338, %v2941_v43 }
0x1308   : > { %v5444_v46 = vpop.f32.mrf.mxu1 }
0x1309   : > { %v3102_v47 = vadd.f32 %v3098_v45, %v6387_v19 }
0x130a   : > { %v3017_v48 = vpop.f32.mrf.mxu1 }
0x130b   : > { %v3099_v49 = vmul.f32 0.35355338, %v3017_v48  ;;  %v3108_v50 = vsel %vm743_vm2, %v3102_v47, -inf }
0x130c   : > { %3109 = vmax.xlane.f32.xlu0 %v3108_v50  ;;  %v5449_v51 = vpop.f32.mrf.mxu1 }
0x130d   : > { %v3103_v52 = vadd.f32 %v3099_v49, %v6387_v19 }
0x130e   : > { %v3093_v53 = vpop.f32.mrf.mxu1 }
0x130f   : > { %v3100_v54 = vmul.f32 0.35355338, %v3093_v53  ;;  %v3111_v55 = vsel %vm743_vm2, %v3103_v52, -inf }
0x1310   : > { %3112 = vmax.xlane.f32.xlu0 %v3111_v55  ;;  %v5454_v56 = vpop.f32.mrf.mxu1 }
0x1311   : > { %v3104_v57 = vadd.f32 %v3100_v54, %v6387_v19  ;;  %v4995_v56 = vld [vmem:[%s7107_s7 + $0x38] sm:$0xff] }
0x1313   : > { %v3114_v59 = vsel %vm743_vm2, %v3104_v57, -inf }
0x1314   : > { %3115 = vmax.xlane.f32.xlu1 %v3114_v59 }
0x1325   : > { %3225 = vrot.lane.b32.xlu1 %v2788_v34, %s7179_s21 }
0x1326   : > { %3149 = vrot.lane.b32.xlu0 %v2782_v31, %s7179_s21 }
0x132a   : > { %v3107_v60 = vpop.xlane.xlu1 %3106 }
0x132b   : > { %v3117_v61 = vsub.f32 %v3101_v41, %v3107_v60 }
0x132d   : > { %v3121_v62 = vmul.f32 1.442695, %v3117_v61 }
0x132f   : > { %5755 = vpow2.f32 %v3121_v62  ;;  %v4993_v62 = vld [vmem:[%s7107_s7 + $0x28] sm:$0xff] }
0x133c   : > { %v5756_v63 = vpop.eup %5755 }
0x133d   : > { %v3129_v1 = vsel %vm743_vm2, %v5756_v63, 0.0 }
0x1345   : > { %3130 = vadd.xlane.f32.xlu0 %v3129_v1  ;;  %v5793_v1 = vld [vmem:[%s6302_s29 + $0x8] sm:$0xff] }
0x1395   : > { %v3110_v2 = vpop.xlane.xlu0 %3109 }
0x1396   : > { %v3118_v3 = vsub.f32 %v3102_v47, %v3110_v2  ;;  %v4990_v2 = vld [vmem:[%s7106_s6 + $0x38] sm:$0xff] }
0x1398   : > { %v3123_v4 = vmul.f32 1.442695, %v3118_v3  ;;  %v4989_v3 = vld [vmem:[%s7106_s6 + $0x30] sm:$0xff] }
0x1399   : > { %v3113_v6 = vpop.xlane.xlu0 %3112 }
0x139a   : > { %5757 = vpow2.f32 %v3123_v4  ;;  %v3119_v19 = vsub.f32 %v3103_v52, %v3113_v6  ;;  %v4988_v4 = vld [vmem:[%s7106_s6 + $0x28] sm:$0xff]  ;;  %v4987_v6 = vld [vmem:[%s7106_s6 + $0x20] sm:$0xff] }
0x139c   : > { %v3125_v7 = vmul.f32 1.442695, %v3119_v19 }
0x139d   : > { %v3150_v8 = vpop.permute.xlu0 %3149  ;;  %v3116_v9 = vpop.xlane.xlu1 %3115 }
0x139e   : > { %5759 = vpow2.f32 %v3125_v7  ;;  %v3120_v10 = vsub.f32 %v3104_v57, %v3116_v9  ;;  %5456 = vmatpush3.msra.mxu1 %v3150_v8 }
0x139f   : > { %5460 = vmatprep.subr.mxu1 %v6015_v0 }
0x13a0   : > { %v3127_v11 = vmul.f32 1.442695, %v3120_v10  ;;  %v4985_v10 = vld [vmem:[%s7104_s4 + $0x1] ss:$0 sm:$0xff] }
0x13a1   : > { %v3226_v22 = vpop.permute.xlu1 %3225 }
0x13a2   : > { %5761 = vpow2.f32 %v3127_v11 }
0x13a7   : > { %v5758_v12 = vpop.eup %5757 }
0x13a8   : > { %v3132_v13 = vsel %vm743_vm2, %v5758_v12, 0.0 }
0x13a9   : > { %3133 = vadd.xlane.f32.xlu1 %v3132_v13 }
0x13ab   : > { %v5760_v14 = vpop.eup %5759 }
0x13ac   : > { %v3135_v15 = vsel %vm743_vm2, %v5760_v14, 0.0 }
0x13ad   : > { %3136 = vadd.xlane.f32.xlu0 %v3135_v15 }
0x13af   : > { %v5762_v16 = vpop.eup %5761 }
0x13b0   : > { %v3138_v17 = vsel %vm743_vm2, %v5762_v16, 0.0 }
0x13b1   : > { %3139 = vadd.xlane.f32.xlu1 %v3138_v17 }
0x13c2   : > { %3301 = vrot.lane.b32.xlu1 %v6728_v33, %s7179_s21 }
0x13c3   : > { %3377 = vrot.lane.b32.xlu0 %v6733_v35, %s7179_s21 }
0x13ce   : > { %v3131_v18 = vpop.xlane.xlu0 %3130 }
0x13cf   : > { %5763 = vrcp.f32 %v3131_v18 }
0x13dc   : > { %v5764_v20 = vpop.eup %5763 }
0x13dd   : > { %v3145_v21 = vmul.f32 %v5764_v20, %v5756_v63  ;;  %v4992_v63 = vld [vmem:[%s7107_s7 + $0x20] sm:$0xff] }
0x13df   : > { %5458 = vmatmul.mubr.msk.f32.vlgmr.msra.gmra.mxu1 %vm743_vm2, %v3145_v21 }
0x13e0   : > { %5461 = vmatpush3.msra.mxu1 %v3226_v22  ;;  %5462 = vmatprep.mubr.msk.f32.mxu1 %vm6016_vm0, %v6015_v0 }
0x13e1   : > { %5470 = vmatprep.subr.mxu1 %v6015_v0 }
0x1432   : > { %v3134_v23 = vpop.xlane.xlu1 %3133 }
0x1433   : > { %5765 = vrcp.f32 %v3134_v23 }
0x1436   : > { %v3137_v24 = vpop.xlane.xlu0 %3136 }
0x1437   : > { %5767 = vrcp.f32 %v3137_v24 }
0x143a   : > { %v3140_v25 = vpop.xlane.xlu1 %3139  ;;  %v3378_v29 = vpop.permute.xlu0 %3377 }
0x143b   : > { %5769 = vrcp.f32 %v3140_v25 }
0x143e   : > { %v3302_v26 = vpop.permute.xlu1 %3301 }
0x143f   : > { %5466 = vmatpush3.msra.mxu0 %v3302_v26 }
0x1440   : > { %v5766_v27 = vpop.eup %5765  ;;  %5475 = vmatprep.subr.mxu0 %v6015_v0 }
0x1441   : > { %v3146_v28 = vmul.f32 %v5766_v27, %v5758_v12  ;;  %v4986_v12 = vld [vmem:[%s7105_s5 + $0x1] ss:$0 sm:$0xff] }
0x1443   : > { %5463 = vmatmul.mubr.msk.f32.vlgmr.msra.gmra.mxu1 %vm743_vm2, %v3146_v28 }
0x1444   : > { %v5768_v31 = vpop.eup %5767  ;;  %5471 = vmatpush3.msra.mxu1 %v3378_v29  ;;  %5472 = vmatprep.mubr.msk.f32.mxu1 %vm6016_vm0, %v6015_v0 }
0x1445   : > { %v3147_v32 = vmul.f32 %v5768_v31, %v5760_v14  ;;  %5486 = vmatprep.subr.mxu1 %v6015_v0 }
0x1447   : > { %5468 = vmatmul.mubr.msk.f32.vlgmr.msra.gmra.mxu0 %vm743_vm2, %v3147_v32 }
0x1448   : > { %v5770_v33 = vpop.eup %5769  ;;  %5483 = vmatprep.mubr.msk.f32.mxu0 %vm6016_vm0, %v6015_v0  ;;  %5476 = vmatpush3.msra.mxu0 %v4981_v58 }
0x1449   : > { %v3148_v34 = vmul.f32 %v5770_v33, %v5762_v16  ;;  %5477 = vmatprep.subr.mxu0 %v6015_v0 }
0x144a   : > { %5478 = vmatpush3.msra.mxu0 %v4980_v37 }
0x144b   : > { %5473 = vmatmul.mubr.msk.f32.vlgmr.msra.gmra.mxu1 %vm743_vm2, %v3148_v34  ;;  %5479 = vmatprep.subr.mxu0 %v6015_v0 }
0x144c   : > { %5494 = vmatprep.mubr.msk.f32.mxu1 %vm6016_vm0, %v6015_v0  ;;  %5480 = vmatpush3.msra.mxu0 %v4979_v38 }
0x144d   : > { %5481 = vmatprep.subr.mxu0 %v6015_v0  ;;  %5487 = vmatpush3.msra.mxu1 %v4990_v2 }
0x144e   : > { %5482 = vmatpush3.msra.mxu0 %v4978_v5  ;;  %5488 = vmatprep.subr.mxu1 %v6015_v0 }
0x144f   : > { %5497 = vmatprep.subr.mxu0 %v4995_v56  ;;  %5489 = vmatpush3.msra.mxu1 %v4989_v3 }
0x1450   : > { %5490 = vmatprep.subr.mxu1 %v6015_v0 }
0x1451   : > { %5491 = vmatpush3.msra.mxu1 %v4988_v4 }
0x1452   : > { %5492 = vmatprep.subr.mxu1 %v6015_v0 }
0x1453   : > { %5493 = vmatpush3.msra.mxu1 %v4987_v6 }
0x1454   : > { %5508 = vmatprep.subr.mxu1 %v6015_v0 }
0x149f   : > { %v3221_v35 = vpop.f32.mrf.mxu1 }
0x14a1   : > { %v5459_v36 = vpop.f32.mrf.mxu1 }
0x1503   : > { %v3297_v39 = vpop.f32.mrf.mxu1 }
0x1504   : > { %3454 = vrot.lane.b32.xlu1 %v3297_v39, %s7143_s0 }
0x1505   : > { %v5464_v40 = vpop.f32.mrf.mxu1 }
0x1507   : > { %v3373_v41 = vpop.f32.mrf.mxu0 }
0x1508   : > { %3458 = vrot.lane.b32.xlu0 %v3373_v41, %s7177_s24 }
0x1509   : > { %v5469_v42 = vpop.f32.mrf.mxu0 }
0x150b   : > { %v3449_v43 = vpop.f32.mrf.mxu1 }
0x150c   : > { %3462 = vrot.lane.b32.xlu1 %v3449_v43, %s7180_s16 }
0x150d   : > { %v5474_v45 = vpop.f32.mrf.mxu1 }
0x1576   : > { %v3455_v46 = vpop.permute.xlu1 %3454 }
0x1577   : > { %v3465_v48 = vsel %vm743_vm2, %v3221_v35, %v3455_v46 }
0x157a   : > { %v3459_v47 = vpop.permute.xlu0 %3458 }
0x157b   : > { %v3466_v49 = vsel %vm1415_vm4, %v3465_v48, %v3459_v47 }
0x157e   : > { %v3463_v50 = vpop.permute.xlu1 %3462 }
0x157f   : > { %v3467_v51 = vsel %vm1417_vm5, %v3466_v49, %v3463_v50 }
0x1580   : > { %5484 = vmatmul.mubr.msk.f32.vlgmr.msra.gmra.mxu0 %vm660_vm1, %v3467_v51 }
0x1581   : > { %5505 = vmatprep.mubr.msk.f32.mxu0 %vm660_vm1, %v6462_v44  ;;  %5498 = vmatpush3.msra.mxu0 %v4995_v56 }
0x1640   : > { %v3542_v52 = vpop.f32.mrf.mxu0 }
0x1641   : > { %v3546_v53 = vadd.f32 %v3542_v52, %v6718_v30  ;;  %v4994_v30 = vld [vmem:[%s7107_s7 + $0x30] sm:$0xff] }
0x1642   : > { %v5485_v54 = vpop.f32.mrf.mxu0  ;;  %5499 = vmatprep.subr.mxu0 %v4994_v30 }
0x1643   : > { %v3551_v55 = vsel %vm660_vm1, %v3546_v53, 0.0  ;;  %5500 = vmatpush3.msra.mxu0 %v4994_v30 }
0x1644   : > { %3552 = vadd.xlane.f32.xlu0 %v3551_v55  ;;  %5501 = vmatprep.subr.mxu0 %v4993_v62 }
0x1645   : > { %5502 = vmatpush3.msra.mxu0 %v4993_v62 }
0x1646   : > { %5503 = vmatprep.subr.mxu0 %v4992_v63 }
0x1647   : > { %5504 = vmatpush3.msra.mxu0 %v4992_v63 }
0x1648   : > { %5506 = vmatmul.mubr.msk.f32.vlgmr.msra.gmra.mxu0 %vm660_vm1, %v5793_v1  ;;  %5515 = vmatprep.subr.mxu0 %v6015_v0 }
0x1649   : > { %5519 = vmatprep.mubr.msk.f32.mxu0 %vm6016_vm0, %v6015_v0 }
0x16cd   : > { %v3553_v57 = vpop.xlane.xlu0 %3552 }
0x16ce   : > { %v3554_v59 = vmul.f32 0.03125, %v3553_v57 }
0x16d0   : > { %v3555_v60 = vsub.f32 %v3546_v53, %v3554_v59 }
0x16d2   : > { %v3556_v61 = vmul.f32 %v3555_v60, %v3555_v60 }
0x16d4   : > { %v3557_v44 = vsel %vm660_vm1, %v3556_v61, 0.0 }
0x16d5   : > { %3558 = vadd.xlane.f32.xlu1 %v3557_v44 }
0x1708   : > { %v6865_v15 = vpop.f32.mrf.mxu0 }
0x1709   : > { %3747 = vrot.lane.b32.xlu0 %v6865_v15, %s6018_s10 }
0x170a   : > { %v3727_v16 = vpop.f32.mrf.mxu0 }
0x170b   : > { %3745 = vrot.lane.b32.xlu1 %v3727_v16, %s6018_s10 }
0x170d   : > { %3751 = vrot.lane.b32.xlu0 %v6865_v15, %s6020_s1 }
0x1711   : > { %3755 = vrot.lane.b32.xlu0 %v6865_v15, %s6017_s30 }
0x1715   : > { %3753 = vrot.lane.b32.xlu0 %v3727_v16, %s6017_s30 }
0x175e   : > { %v3559_v19 = vpop.xlane.xlu1 %3558 }
0x175f   : > { %v3560_v7 = vmul.f32 0.03125, %v3559_v19 }
0x1761   : > { %v3561_v8 = vadd.f32 1e-05, %v3560_v7 }
0x1763   : > { %5771 = vrsqrt.f32 %v3561_v8 }
0x1770   : > { %v5772_v9 = vpop.eup %5771 }
0x1771   : > { %v3563_v11 = vmul.f32 %v5772_v9, %v3555_v60 }
0x1773   : > { %v3570_v13 = vmul.f32 %v4985_v10, %v3563_v11 }
0x1775   : > { %v6859_v14 = vadd.f32 %v4986_v12, %v3570_v13 }
0x1777   : > { %5495 = vmatmul.mubr.msk.f32.vlgmr.msra.gmra.mxu1 %vm660_vm1, %v6859_v14 }
0x1778   : > { %5512 = vmatprep.mubr.msk.f32.mxu1 %vm6016_vm0, %v6015_v0  ;;  %5509 = vmatpush3.xpose.msk.msra.mxu1 %vm743_vm2, %v6865_v15 }
0x1779   : > { %5510 = vmatprep.subr.mxu1 %v6015_v0 }
0x177b   : > { %v3748_v17 = vpop.permute.xlu0 %3747 }
0x177c   : > { %5511 = vmatpush3.xpose.msk.msra.mxu1 %vm743_vm2, %v3727_v16  ;;  %5516 = vmatpush3.xpose.msk.msra.mxu0 %vm743_vm2, %v3748_v17 }
0x177d   : > { %5522 = vmatprep.subr.mxu1 %v6015_v0  ;;  %5517 = vmatprep.subr.mxu0 %v6015_v0  ;;  %v3746_v18 = vpop.permute.xlu1 %3745 }
0x177f   : > { %v3752_v22 = vpop.permute.xlu0 %3751 }
0x1780   : > { %5518 = vmatpush3.xpose.msk.msra.mxu0 %vm743_vm2, %v3746_v18 }
0x1781   : > { %5529 = vmatprep.subr.mxu0 %v6015_v0 }
0x1783   : > { %v3756_v23 = vpop.permute.xlu0 %3755 }
0x1787   : > { %v6898_v25 = vpop.permute.xlu0 %3753 }
0x1837   : > { %v3652_v20 = vpop.f32.mrf.mxu1 }
0x1838   : > { %3741 = vrot.lane.b32.xlu0 %v3652_v20, %s6017_s30  ;;  %3737 = vrot.lane.b32.xlu1 %v3652_v20, %s6018_s10  ;;  %s7184_s30 = sld [smem:[#allocation29_spill]] }
0x1839   : > { %5513 = vmatmul.mubr.msk.f32.vlgmr.msra.gmra.mxu1 %vm743_vm2, %v3652_v20  ;;  %v5496_v21 = vpop.f32.mrf.mxu1 }
0x183a   : > { %5523 = vmatpush3.xpose.msk.msra.mxu1 %vm743_vm2, %v3752_v22  ;;  %5526 = vmatprep.mubr.msk.f32.mxu1 %vm6016_vm0, %v6015_v0 }
0x183b   : > { %5524 = vmatprep.subr.mxu1 %v6015_v0 }
0x183c   : > { %3749 = vrot.lane.b32.xlu1 %v3727_v16, %s6020_s1 }
0x1840   : > { %3739 = vrot.lane.b32.xlu1 %v3652_v20, %s6020_s1  ;;  %s7182_s1 = sld [smem:[#allocation22_spill]] }
0x1846   : > { %p7185_p0 = scmp.ne.s32.totalorder %s7182_s1, 0 }
0x18aa   : > { %v3738_v24 = vpop.permute.xlu1 %3737  ;;  %v3742_v27 = vpop.permute.xlu0 %3741 }
0x18ab   : > { %5520 = vmatmul.mubr.msk.f32.vlgmr.msra.gmra.mxu0 %vm743_vm2, %v3738_v24 }
0x18ac   : > { %5530 = vmatpush3.xpose.msk.msra.mxu0 %vm743_vm2, %v3756_v23  ;;  %5533 = vmatprep.mubr.msk.f32.mxu0 %vm6016_vm0, %v6015_v0 }
0x18ad   : > { %5531 = vmatprep.subr.mxu0 %v6015_v0 }
0x18ae   : > { %v6900_v26 = vpop.permute.xlu1 %3749 }
0x18af   : > { %5525 = vmatpush3.xpose.msk.msra.mxu1 %vm743_vm2, %v6900_v26 }
0x18b0   : > { %5532 = vmatpush3.xpose.msk.msra.mxu0 %vm743_vm2, %v6898_v25  ;;  %5536 = vmatprep.subr.mxu1 %v6015_v0 }
0x18b1   : > { %5550 = vmatprep.subr.mxu0 %v6015_v0 }
0x18b2   : > { %v3740_v28 = vpop.permute.xlu1 %3739 }
0x18b3   : > { %5534 = vmatmul.mubr.msk.f32.vlgmr.msra.gmra.mxu0 %vm743_vm2, %v3742_v27  ;;  %5527 = vmatmul.mubr.msk.f32.vlgmr.msra.gmra.mxu1 %vm743_vm2, %v3740_v28  ;;  %v5015_v27 = vld [vmem:[%s7108_s8 + $0x28] sm:$0xff]  ;;  %v5014_v28 = vld [vmem:[%s7108_s8 + $0x20] sm:$0xff] }
0x18b4   : > { %5540 = vmatprep.mubr.msk.f32.mxu1 %vm6016_vm0, %v6015_v0  ;;  %5554 = vmatprep.mubr.msk.f32.mxu0 %vm6016_vm0, %v6015_v0 }
0x18f9   : > { %v3829_v29 = vpop.f32.mrf.mxu1 }
0x18fa   : > { %v4061_v31 = vmul.f32 0.35355338, %v3829_v29 }
0x18fb   : > { %v5514_v32 = vpop.f32.mrf.mxu1 }
0x18fc   : > { %v4065_v33 = vsel %vm1415_vm4, %v4061_v31, -inf }
0x18fd   : > { %4066 = vmax.xlane.f32.xlu1 %v4065_v33 }
0x196b   : > { %v3905_v34 = vpop.f32.mrf.mxu0 }
0x196c   : > { %v4062_v35 = vmul.f32 0.35355338, %v3905_v34 }
0x196d   : > { %v5521_v36 = vpop.f32.mrf.mxu0 }
0x196e   : > { %v4068_v58 = vsel %vm1415_vm4, %v4062_v35, -inf }
0x196f   : > { %4069 = vmax.xlane.f32.xlu0 %v4068_v58 }
0x1973   : > { %v4057_v37 = vpop.f32.mrf.mxu0  ;;  %v3981_v38 = vpop.f32.mrf.mxu1 }
0x1974   : > { %v4064_v5 = vmul.f32 0.35355338, %v4057_v37  ;;  %v4063_v39 = vmul.f32 0.35355338, %v3981_v38 }
0x1975   : > { %v5535_v40 = vpop.f32.mrf.mxu0  ;;  %v5528_v41 = vpop.f32.mrf.mxu1 }
0x1976   : > { %v4074_v42 = vsel %vm1415_vm4, %v4064_v5, -inf  ;;  %v4071_v43 = vsel %vm1415_vm4, %v4063_v39, -inf }
0x1977   : > { %4075 = vmax.xlane.f32.xlu1 %v4074_v42  ;;  %4072 = vmax.xlane.f32.xlu0 %v4071_v43 }
0x1986   : > { %v4067_v45 = vpop.xlane.xlu1 %4066 }
0x1987   : > { %v4077_v46 = vsub.f32 %v4061_v31, %v4067_v45 }
0x1988   : > { %4109 = vrot.lane.b32.xlu1 %v3727_v16, %s6019_s18 }
0x1989   : > { %v4081_v47 = vmul.f32 1.442695, %v4077_v46 }
0x198b   : > { %5773 = vpow2.f32 %v4081_v47 }
0x198c   : > { %4190 = vrot.lane.b32.xlu1 %v3748_v17, %s6019_s18 }
0x198d   : > { %4111 = vrot.lane.b32.xlu0 %v6865_v15, %s6019_s18 }
0x1990   : > { %4269 = vrot.lane.b32.xlu1 %v3752_v22, %s6019_s18 }
0x1991   : > { %4188 = vrot.lane.b32.xlu0 %v3746_v18, %s6019_s18 }
0x1995   : > { %4348 = vrot.lane.b32.xlu0 %v3756_v23, %s6019_s18 }
0x1998   : > { %v5774_v48 = vpop.eup %5773 }
0x1999   : > { %v4089_v49 = vsel %vm1415_vm4, %v5774_v48, 0.0 }
0x19b4   : > { %4090 = vadd.xlane.f32.xlu0 %v4089_v49 }
0x19f8   : > { %v4070_v50 = vpop.xlane.xlu0 %4069 }
0x19f9   : > { %v4078_v51 = vsub.f32 %v4062_v35, %v4070_v50  ;;  %v4554_v50 = vld [vmem:[#allocation10 + $0x38] sm:$0xff] }
0x19fb   : > { %v4083_v52 = vmul.f32 1.442695, %v4078_v51  ;;  %v4553_v51 = vld [vmem:[#allocation10 + $0x30] sm:$0xff] }
0x19fd   : > { %5775 = vpow2.f32 %v4083_v52  ;;  %v4552_v52 = vld [vmem:[#allocation10 + $0x28] sm:$0xff] }
0x1a00   : > { %v4076_v53 = vpop.xlane.xlu1 %4075  ;;  %v4073_v54 = vpop.xlane.xlu0 %4072 }
0x1a01   : > { %v4080_v55 = vsub.f32 %v4064_v5, %v4076_v53  ;;  %v4079_v56 = vsub.f32 %v4063_v39, %v4073_v54  ;;  %v5039_v53 = vld [vmem:[%s7113_s13 + $0xf8] sm:$0xff]  ;;  %v5038_v54 = vld [vmem:[%s7113_s13 + $0xf0] sm:$0xff] }
0x1a03   : > { %v4087_v57 = vmul.f32 1.442695, %v4080_v55  ;;  %v4085_v59 = vmul.f32 1.442695, %v4079_v56  ;;  %v5037_v55 = vld [vmem:[%s7113_s13 + $0xe8] sm:$0xff]  ;;  %v5036_v56 = vld [vmem:[%s7113_s13 + $0xe0] sm:$0xff] }
0x1a04   : > { %v4110_v60 = vpop.permute.xlu1 %4109  ;;  %v4112_v61 = vpop.permute.xlu0 %4111 }
0x1a05   : > { %5777 = vpow2.f32 %v4087_v57  ;;  %5537 = vmatpush3.msra.mxu1 %v4112_v61  ;;  %v5035_v57 = vld [vmem:[%s7113_s13 + $0xd8] sm:$0xff]  ;;  %v5032_v61 = vld [vmem:[%s7113_s13 + $0xc0] sm:$0xff] }
0x1a06   : > { %5779 = vpow2.f32 %v4085_v59  ;;  %5538 = vmatprep.subr.mxu1 %v6015_v0  ;;  %v5034_v59 = vld [vmem:[%s7113_s13 + $0xd0] sm:$0xff] }
0x1a07   : > { %5539 = vmatpush3.msra.mxu1 %v4110_v60  ;;  %v5033_v60 = vld [vmem:[%s7113_s13 + $0xc8] sm:$0xff] }
0x1a08   : > { %v4191_v44 = vpop.permute.xlu1 %4190  ;;  %5543 = vmatprep.subr.mxu1 %v6015_v0  ;;  %v4189_v6 = vpop.permute.xlu0 %4188 }
0x1a0a   : > { %v5776_v30 = vpop.eup %5775 }
0x1a0b   : > { %v4092_v62 = vsel %vm1415_vm4, %v5776_v30, 0.0 }
0x1a0c   : > { %v4270_v63 = vpop.permute.xlu1 %4269  ;;  %4093 = vadd.xlane.f32.xlu1 %v4092_v62  ;;  %v4349_v19 = vpop.permute.xlu0 %4348  ;;  %v5029_v62 = vld [vmem:[%s7113_s13 + $0xa8] sm:$0xff] }
0x1a0d   : > { %5551 = vmatpush3.msra.mxu0 %v4270_v63  ;;  %v5028_v63 = vld [vmem:[%s7113_s13 + $0xa0] sm:$0xff] }
0x1a0e   : > { %5552 = vmatprep.subr.mxu0 %v6015_v0 }
0x1a12   : > { %v5778_v1 = vpop.eup %5777 }
0x1a13   : > { %v5780_v2 = vpop.eup %5779  ;;  %v4098_v3 = vsel %vm1415_vm4, %v5778_v1, 0.0 }
0x1a14   : > { %4099 = vadd.xlane.f32.xlu1 %v4098_v3  ;;  %v4095_v4 = vsel %vm1415_vm4, %v5780_v2, 0.0 }
0x1a15   : > { %4096 = vadd.xlane.f32.xlu0 %v4095_v4 }
0x1a25   : > { %4267 = vrot.lane.b32.xlu1 %v6900_v26, %s6019_s18  ;;  %v5016_v26 = vld [vmem:[%s7108_s8 + $0x30] sm:$0xff] }
0x1a2b   : > { %4346 = vrot.lane.b32.xlu0 %v6898_v25, %s6019_s18  ;;  %v5017_v25 = vld [vmem:[%s7108_s8 + $0x38] sm:$0xff]  ;;  %s4766_s18 = scalar_lea.sflag [#allocation4], %s6290_s11 }
0x1a3d   : > { %v4091_v7 = vpop.xlane.xlu0 %4090 }
0x1a3e   : > { %5781 = vrcp.f32 %v4091_v7 }
0x1a4b   : > { %v5782_v8 = vpop.eup %5781 }
0x1a4c   : > { %v4105_v9 = vmul.f32 %v5782_v8, %v5774_v48  ;;  %v5020_v8 = vld [vmem:[#allocation8 + $0x1] ss:$0 sm:$0xff] }
0x1a4e   : > { %5541 = vmatmul.mubr.msk.f32.vlgmr.msra.gmra.mxu1 %vm1415_vm4, %v4105_v9 }
0x1a4f   : > { %5544 = vmatpush3.msra.mxu1 %v4191_v44  ;;  %5547 = vmatprep.mubr.msk.f32.mxu1 %vm6016_vm0, %v6015_v0  ;;  %v5031_v44 = vld [vmem:[%s7113_s13 + $0xb8] sm:$0xff] }
0x1a50   : > { %5545 = vmatprep.subr.mxu1 %v6015_v0 }
0x1a51   : > { %5546 = vmatpush3.msra.mxu1 %v4189_v6 }
0x1a52   : > { %5557 = vmatprep.subr.mxu1 %v6015_v0 }
0x1a95   : > { %v4094_v10 = vpop.xlane.xlu1 %4093 }
0x1a96   : > { %5783 = vrcp.f32 %v4094_v10 }
0x1a9d   : > { %v4100_v11 = vpop.xlane.xlu1 %4099 }
0x1a9e   : > { %5785 = vrcp.f32 %v4100_v11  ;;  %v4097_v12 = vpop.xlane.xlu0 %4096  ;;  %v5026_v11 = vld [vmem:[%s7113_s13 + $0x90] sm:$0xff] }
0x1a9f   : > { %5787 = vrcp.f32 %v4097_v12  ;;  %v5025_v12 = vld [vmem:[%s7113_s13 + $0x88] sm:$0xff] }
0x1aa1   : > { %v4268_v13 = vpop.permute.xlu1 %4267 }
0x1aa2   : > { %5553 = vmatpush3.msra.mxu0 %v4268_v13  ;;  %v4347_v17 = vpop.permute.xlu0 %4346  ;;  %v5024_v13 = vld [vmem:[%s7113_s13 + $0x80] sm:$0xff] }
0x1aa3   : > { %v5784_v15 = vpop.eup %5783  ;;  %5564 = vmatprep.subr.mxu0 %v6015_v0 }
0x1aa4   : > { %v4106_v16 = vmul.f32 %v5784_v15, %v5776_v30  ;;  %v5030_v30 = vld [vmem:[%s7113_s13 + $0xb0] sm:$0xff]  ;;  %v5022_v15 = vld [vmem:[%s7112_s12 + $0x1] ss:$0 sm:$0xff] }
0x1aa6   : > { %5548 = vmatmul.mubr.msk.f32.vlgmr.msra.gmra.mxu1 %vm1415_vm4, %v4106_v16 }
0x1aa7   : > { %5558 = vmatpush3.msra.mxu1 %v4349_v19  ;;  %5561 = vmatprep.mubr.msk.f32.mxu1 %vm6016_vm0, %v6015_v0  ;;  %v5019_v19 = vld [vmem:[#allocation7 + $0x1] ss:$0 sm:$0xff] }
0x1aa8   : > { %5559 = vmatprep.subr.mxu1 %v6015_v0 }
0x1aa9   : > { %5560 = vmatpush3.msra.mxu1 %v4347_v17 }
0x1aaa   : > { %5575 = vmatprep.subr.mxu1 %v6015_v0 }
0x1aab   : > { %v5786_v18 = vpop.eup %5785 }
0x1aac   : > { %v5788_v20 = vpop.eup %5787  ;;  %v4108_v21 = vmul.f32 %v5786_v18, %v5778_v1  ;;  %v5027_v1 = vld [vmem:[%s7113_s13 + $0x98] sm:$0xff] }
0x1aad   : > { %v4107_v22 = vmul.f32 %v5788_v20, %v5780_v2 }
0x1aae   : > { %5562 = vmatmul.mubr.msk.f32.vlgmr.msra.gmra.mxu1 %vm1415_vm4, %v4108_v21  ;;  %v5041_v21 = vld [vmem:[%s7114_s14 + $0x1] ss:$0 sm:$0xff] }
0x1aaf   : > { %5555 = vmatmul.mubr.msk.f32.vlgmr.msra.gmra.mxu0 %vm1415_vm4, %v4107_v22  ;;  %5583 = vmatprep.mubr.msk.f32.mxu1 %vm6016_vm0, %v6015_v0 }
0x1ab0   : > { %5572 = vmatprep.mubr.msk.f32.mxu0 %vm6016_vm0, %v6015_v0  ;;  %5565 = vmatpush3.msra.mxu0 %v5017_v25 }
0x1ab1   : > { %5566 = vmatprep.subr.mxu0 %v6015_v0  ;;  %5576 = vmatpush3.msra.mxu1 %v4554_v50 }
0x1ab2   : > { %5567 = vmatpush3.msra.mxu0 %v5016_v26  ;;  %5577 = vmatprep.subr.mxu1 %v6015_v0 }
0x1ab3   : > { %5568 = vmatprep.subr.mxu0 %v6015_v0  ;;  %5578 = vmatpush3.msra.mxu1 %v4553_v51 }
0x1ab4   : > { %5569 = vmatpush3.msra.mxu0 %v5015_v27  ;;  %5579 = vmatprep.subr.mxu1 %v6015_v0 }
0x1ab5   : > { %5570 = vmatprep.subr.mxu0 %v6015_v0  ;;  %5580 = vmatpush3.msra.mxu1 %v4552_v52 }
0x1ab6   : > { %5571 = vmatpush3.msra.mxu0 %v5014_v28  ;;  %5581 = vmatprep.subr.mxu1 %v6015_v0 }
0x1ab7   : > { %5586 = vmatprep.subr.mxu0 %v6015_v0 }
0x1b0e   : > { %v4184_v23 = vpop.f32.mrf.mxu1 }
0x1b10   : > { %v5542_v24 = vpop.f32.mrf.mxu1 }
0x1b66   : > { %v4263_v29 = vpop.f32.mrf.mxu1 }
0x1b67   : > { %4426 = vrot.lane.b32.xlu1 %v4263_v29, %s7181_s9  ;;  %s5047_s9 = sshll.u32 %s6137_s28, 7  ;;  %s5932_s28 = sshll.u32 %s6025_s17, 4  ;;  %s5933_s28 = int_to_ptr.vmem [resolvable:$false] %s5932_s28 }
0x1b68   : > { %v5549_v31 = vpop.f32.mrf.mxu1  ;;  %s4777_s10 = scalar_lea.hbm %s7184_s30, %s5047_s9  ;;  %s5934_s29 = scalar_lea.vmem %s5933_s28, 256 }
0x1b6e   : > { %v4421_v32 = vpop.f32.mrf.mxu1 }
0x1b6f   : > { %v4342_v33 = vpop.f32.mrf.mxu0  ;;  %4434 = vrot.lane.b32.xlu1 %v4421_v32, %s7180_s16 }
0x1b70   : > { %4430 = vrot.lane.b32.xlu0 %v4342_v33, %s7177_s24  ;;  %v5563_v34 = vpop.f32.mrf.mxu1  ;;  %s7183_s24 = sshll.u32 %s6290_s11, 3 }
0x1b71   : > { %v5556_v35 = vpop.f32.mrf.mxu0  ;;  %s646_s16 = scalar_lea.vmem [#allocation11], %s7183_s24 }
0x1b72   : > { %s4779_s19 = sshll.u32 %s646_s16, 4  ;;  %s4780_s19 = int_to_ptr.vmem [resolvable:$true] %s4779_s19 }
0x1b73   : > { %s5928_s0 = scalar_lea.vmem %s4780_s19, 128  ;;  %p5935_p7 = scmp.lt.s32.totalorder %s4780_s19, %s5933_s28 }
0x1b74   : > { %p5929_p12 = scmp.ne.s32.totalorder %s4780_s19, %s5928_s0  ;;  %p5936_p9 = scmp.lt.s32.totalorder %s5934_s29, %s5928_s0 }
0x1b76   : > { %p5930_p5 = pnand %p5929_p12, %p7185_p0  ;;  %p5937_p8 = por %p5936_p9, %p5935_p7 }
0x1b78   : > { %p5931_p3 = pneg %p5930_p5 }
0x1b7a   : > { %p5938_p10 = pnand %p5937_p8, %p5931_p3 }
0x1bd9   : > { %v4427_v36 = vpop.permute.xlu1 %4426 }
0x1bda   : > { %v4437_v58 = vsel %vm743_vm2, %v4184_v23, %v4427_v36  ;;  %v5044_v36 = vld [vmem:[%s7115_s15 + $0x1] ss:$0 sm:$0xff] }
0x1be1   : > { %v4435_v38 = vpop.permute.xlu1 %4434 }
0x1be2   : > { %v4431_v37 = vpop.permute.xlu0 %4430 }
0x1be3   : > { %v4438_v5 = vsel %vm1415_vm4, %v4437_v58, %v4431_v37  ;;  %v5045_v37 = vld [vmem:[%s7178_s22 + $0x1] ss:$0 sm:$0xff] }
0x1be4   : > { %v4439_v39 = vsel %vm1417_vm5, %v4438_v5, %v4435_v38 }
0x1be5   : > { %5573 = vmatmul.mubr.msk.f32.vlgmr.msra.gmra.mxu0 %vm660_vm1, %v4439_v39 }
0x1be6   : > { %5618 = vmatprep.mubr.msk.f32.mxu0 %vm6016_vm0, %v6015_v0  ;;  %5587 = vmatpush3.msra.mxu0 %v5039_v53 }
0x1be7   : > { %5588 = vmatprep.subr.mxu0 %v6015_v0 }
0x1be8   : > { %5589 = vmatpush3.msra.mxu0 %v5038_v54 }
0x1be9   : > { %5590 = vmatprep.subr.mxu0 %v6015_v0 }
0x1bea   : > { %5591 = vmatpush3.msra.mxu0 %v5037_v55 }
0x1beb   : > { %5592 = vmatprep.subr.mxu0 %v6015_v0 }
0x1bec   : > { %5593 = vmatpush3.msra.mxu0 %v5036_v56 }
0x1bed   : > { %5594 = vmatprep.subr.mxu0 %v6015_v0 }
0x1bee   : > { %5595 = vmatpush3.msra.mxu0 %v5035_v57 }
0x1bef   : > { %5596 = vmatprep.subr.mxu0 %v6015_v0 }
0x1bf0   : > { %5597 = vmatpush3.msra.mxu0 %v5034_v59 }
0x1bf1   : > { %5598 = vmatprep.subr.mxu0 %v6015_v0 }
0x1bf2   : > { %5599 = vmatpush3.msra.mxu0 %v5033_v60 }
0x1bf3   : > { %5600 = vmatprep.subr.mxu0 %v6015_v0 }
0x1bf4   : > { %5601 = vmatpush3.msra.mxu0 %v5032_v61 }
0x1bf5   : > { %5602 = vmatprep.subr.mxu0 %v6015_v0 }
0x1bf6   : > { %5603 = vmatpush3.msra.mxu0 %v5031_v44 }
0x1bf7   : > { %5604 = vmatprep.subr.mxu0 %v6015_v0 }
0x1bf8   : > { %5605 = vmatpush3.msra.mxu0 %v5030_v30 }
0x1bf9   : > { %5606 = vmatprep.subr.mxu0 %v6015_v0 }
0x1bfa   : > { %5607 = vmatpush3.msra.mxu0 %v5029_v62 }
0x1bfb   : > { %5608 = vmatprep.subr.mxu0 %v6015_v0 }
0x1bfc   : > { %5609 = vmatpush3.msra.mxu0 %v5028_v63 }
0x1bfd   : > { %5610 = vmatprep.subr.mxu0 %v6015_v0 }
0x1bfe   : > { %5611 = vmatpush3.msra.mxu0 %v5027_v1 }
0x1bff   : > { %5612 = vmatprep.subr.mxu0 %v6015_v0 }
0x1c00   : > { %5613 = vmatpush3.msra.mxu0 %v5026_v11 }
0x1c01   : > { %5614 = vmatprep.subr.mxu0 %v6015_v0 }
0x1c02   : > { %5615 = vmatpush3.msra.mxu0 %v5025_v12 }
0x1c03   : > { %5616 = vmatprep.subr.mxu0 %v6015_v0 }
0x1c04   : > { %5617 = vmatpush3.msra.mxu0 %v5024_v13 }
0x1ca5   : > { %v4514_v40 = vpop.f32.mrf.mxu0 }
0x1ca6   : > { %v4518_v41 = vadd.f32 %v4514_v40, %v6859_v14  ;;  %v4551_v14 = vld [vmem:[#allocation10 + $0x20] sm:$0xff] }
0x1ca7   : > { %v5574_v42 = vpop.f32.mrf.mxu0  ;;  %5582 = vmatpush3.msra.mxu1 %v4551_v14 }
0x1ca8   : > { %v4523_v43 = vsel %vm660_vm1, %v4518_v41, 0.0 }
0x1ca9   : > { %4524 = vadd.xlane.f32.xlu0 %v4523_v43 }
0x1d32   : > { %v4525_v45 = vpop.xlane.xlu0 %4524 }
0x1d33   : > { %v4526_v46 = vmul.f32 0.03125, %v4525_v45 }
0x1d35   : > { %v4527_v47 = vsub.f32 %v4518_v41, %v4526_v46 }
0x1d37   : > { %v4528_v48 = vmul.f32 %v4527_v47, %v4527_v47 }
0x1d39   : > { %v4529_v49 = vsel %vm660_vm1, %v4528_v48, 0.0 }
0x1d3a   : > { %4530 = vadd.xlane.f32.xlu1 %v4529_v49 }
0x1dc3   : > { %v4531_v2 = vpop.xlane.xlu1 %4530 }
0x1dc4   : > { %v4532_v3 = vmul.f32 0.03125, %v4531_v2 }
0x1dc6   : > { %v4533_v4 = vadd.f32 1e-05, %v4532_v3 }
0x1dc8   : > { %5789 = vrsqrt.f32 %v4533_v4 }
0x1dd5   : > { %v5790_v6 = vpop.eup %5789 }
0x1dd6   : > { %v4535_v7 = vmul.f32 %v5790_v6, %v4527_v47 }
0x1dd8   : > { %v4542_v9 = vmul.f32 %v5019_v19, %v4535_v7 }
0x1dda   : > { %v4549_v10 = vadd.f32 %v5020_v8, %v4542_v9 }
0x1ddc   : > { %5584 = vmatmul.mubr.msk.f32.vlgmr.msra.gmra.mxu1 %vm660_vm1, %v4549_v10 }
0x1e9c   : > { %v4632_v16 = vpop.f32.mrf.mxu1 }
0x1e9d   : > { %v4633_v17 = vadd.f32 %v5022_v15, %v4632_v16 }
0x1e9e   : > { %v5585_v18 = vpop.f32.mrf.mxu1 }
0x1e9f   : > { %v4636_v20 = vmax.f32 %v4633_v17, 0.0 }
0x1ea1   : > { %5619 = vmatmul.mubr.f32.vlgmr.msra.gmra.mxu0 %v4636_v20 }
0x1f61   : > { %v4728_v22 = vpop.f32.mrf.mxu0 }
0x1f62   : > { %v4729_v0 = vadd.f32 %v5041_v21, %v4728_v22 }
0x1f63   : > { %v5620_v23 = vpop.f32.mrf.mxu0 }
0x1f64   : > { %v4732_v24 = vadd.f32 %v4729_v0, %v4549_v10 }
0x1f66   : > { %v4737_v25 = vsel %vm660_vm1, %v4732_v24, 0.0 }
0x1f67   : > { %4738 = vadd.xlane.f32.xlu0 %v4737_v25 }
0x1ff0   : > { %v4739_v26 = vpop.xlane.xlu0 %4738 }
0x1ff1   : > { %v4740_v27 = vmul.f32 0.03125, %v4739_v26 }
0x1ff3   : > { %v4741_v28 = vsub.f32 %v4732_v24, %v4740_v27 }
0x1ff5   : > { %v4742_v29 = vmul.f32 %v4741_v28, %v4741_v28 }
0x1ff7   : > { %v4743_v31 = vsel %vm660_vm1, %v4742_v29, 0.0 }
0x1ff8   : > { %4744 = vadd.xlane.f32.xlu0 %v4743_v31 }
0x2081   : > { %v4745_v32 = vpop.xlane.xlu0 %4744 }
0x2082   : > { %v4746_v33 = vmul.f32 0.03125, %v4745_v32 }
0x2084   : > { %v4747_v34 = vadd.f32 1e-05, %v4746_v33 }
0x2086   : > { %5791 = vrsqrt.f32 %v4747_v34 }
0x2093   : > { %v5792_v35 = vpop.eup %5791 }
0x2094   : > { %v4749_v58 = vmul.f32 %v5792_v35, %v4741_v28 }
0x2096   : > { %v4756_v38 = vmul.f32 %v5044_v36, %v4749_v58 }
0x2098   : > { %v4763_v5 = vadd.f32 %v5045_v37, %v4756_v38 }
0x209a   : > { %4764 = vst.msk [vmem:[%s646_s16] sm:$0xff] %vm660_vm1, %v4763_v5 }
0x209b   : > { %5941 = shalt.err (!%p5938_p10)
}
0x209c   : > { %s5942_s26 = scalar_lea.hbm %s4777_s10, 128  ;;  %s5946_s24 = scalar_lea.hbm %s7184_s30, 256 }
0x209d   : > { %p5943_p1 = scmp.ne.s32.totalorder %s4777_s10, %s5942_s26  ;;  %p5947_p2 = scmp.lt.s32.totalorder %s4777_s10, %s7184_s30 }
0x209e   : > { %p5948_p4 = scmp.lt.s32.totalorder %s5946_s24, %s5942_s26 }
0x209f   : > { %p5944_p13 = pnand %p5943_p1, %p7185_p0 }
0x20a0   : > { %p5949_p6 = por %p5948_p4, %p5947_p2 }
0x20a1   : > { %p5945_p11 = pneg %p5944_p13 }
0x20a3   : > { %p5950_p12 = pnand %p5949_p6, %p5945_p11 }
0x20a5   : > { %5953 = shalt.err (!%p5950_p12)
}
0x20a6   : > { %5637 = dma.vmem_to_hbm [thread:$0]  (%p7185_p0), %s4780_s19, 128, %s4777_s10, %s4766_s18  }
0x20a7 PF: > { %s7186_s23 = sld [smem:[#allocation17_spill]]  ;;  %p7189_p3 = scmp.ge.s32.totalorder %s6004_s27, 2 }
0x20a8   : > { %s7187_s0 = sld [smem:[#allocation19_spill]] }
0x20ad   : > { %s4791_s17 = sand.u32 1, %s7186_s23  }
0x20ae   : > { %p7188_p5 = scmp.ne.s32.totalorder %s7187_s0, 0  ;;  %s4792_s28 = scalar_lea.sflag [#allocation4], %s4791_s17 }
0x20b0   : > { %p5657_p7 = pnand %p7189_p3, %p7188_p5 }
0x20b2   : > { %p5658_p9 = pneg %p5657_p7 }
0x20b4   : > { %5987 = dma.done.wait (%p5658_p9), %s4792_s28, 128  }
0x20b5   : > { %5989 = vsyncadd (%p5658_p9), %s4792_s28, 4294967168  ;;  %s7190_s27 = sld [smem:[#allocation20_spill]]  ;;  %s7193_s24 = smov %s5996_s25 }
0x20b6   : > { %s7191_s29 = sld [smem:[#allocation18_spill]] }
0x20b7   : > { %s7192_s26 = sld [smem:[#allocation21_spill]] }
0x20bb   : > { %p34_p8 = scmp.ge.s32.totalorder %s7190_s27, 4  }
0x20bc   : > { %s7194_s25 = smov %s7191_s29 }
0x20bd   :  { %36 = sbr.rel (!%p34_p8) target bundleno = 16 (0x10), region = 173 }
0x20c2   :  { %4797 = vsyncpa [#allocation3], 1 }
0x20c3   :  { %4799 = vsyncpa [#allocation3 + $0x1], 1 }
0x20c4   :  { %4800 = vsyncpa [#allocation6], 1 }
0x20c5   :  { %4802 = vsyncpa [#allocation6 + $0x1], 1 }
0x20c6   :  { %4803 = vsyncpa [#allocation9], 1 }
0x20c7   :  { %4804 = vsyncpa [#allocation4], 1 }
0x20c8   :  { %4806 = vsyncpa [#allocation4 + $0x1], 1 }

</bundles_post_ra>
